<compile_context>
chip_gen: v7x
topology: tpu7x:2x2x1
jax: 0.10.0
libtpu: 0.0.40
codegen_flags: <defaults>
</compile_context>

<pallas_src>
from functools import partial

import numpy as np
import jax
import jax.numpy as jnp
from jax import lax
from jax.experimental import pallas as pl
from jax.experimental.pallas import tpu as pltpu

_LN_EPS = 1e-5
_OUT_LANES = 128


# ----------------------------- static slab layout -----------------------------

def _round8(n):
    return ((n + 7) // 8) * 8


def _attn_mat_offsets(D, H):
    offs, r = {}, 0
    for name, nr in (("wkv", D), ("wqk", D), ("wvo", H), ("wg", 2 * D)):
        offs[name] = r
        r += _round8(nr)
    return offs, r


def _head_mat_offsets(D, H):
    offs, r = {}, 0
    for name, nr in (("wpg", D), ("w1", 4 * H + 4), ("w2", H + 4)):
        offs[name] = r
        r += _round8(nr)
    return offs, r


# ----------------------------- in-kernel helpers ------------------------------

def _layernorm(x, gamma, beta):
    mu = jnp.mean(x, axis=-1, keepdims=True)
    xc = x - mu
    var = jnp.mean(xc * xc, axis=-1, keepdims=True)
    return xc * lax.rsqrt(var + _LN_EPS) * gamma + beta


def _sparsemax_lastdim(s):
    """Sparsemax along the last (small, static) axis of a 2-D array (L, K).

    Sorting-free, whole-tile formulation: for each element z_i taken as a
    support-boundary candidate, k_i = #{j: z_j >= z_i}, S_i = sum_{z_j >= z_i} z_j;
    the candidate is feasible iff 1 + k_i*z_i > S_i, and tau is the max over
    feasible candidates of (S_i - 1)/k_i (identical to the sorted algorithm,
    including ties).  Only full-tile VPU ops + one lane reduction."""
    K = s.shape[-1]
    counts = jnp.zeros_like(s)
    sums = jnp.zeros_like(s)
    for j in range(K):
        cj = s[:, j:j + 1]                          # (L, 1)
        ge = (cj >= s).astype(s.dtype)              # [z_j >= z_i] for all i
        counts = counts + ge
        sums = sums + cj * ge
    feasible = (1.0 + counts * s) > sums
    tau_cand = (sums - 1.0) / counts
    tau = jnp.max(jnp.where(feasible, tau_cand, -jnp.inf), axis=-1, keepdims=True)
    return jnp.maximum(s - tau, 0.0)


# -------------------------------- fused kernel --------------------------------
# One grid step = one batch element.  Runs the full infer loop + predict head.
# TODO(synk): per-example mask slicing (batch_convert_mask_to_start_and_end) and
#             mem_init in {'attn','lstm','circular_*'} are data-dependent and not
#             implemented; kernel assumes all positions valid and mem_init='mean'.

def _fused_kernel(p_ref, g_ref, pm_ref, gm_ref, pool_p_ref, pool_g_ref,
                  wm_p_ref, wv_p_ref, wm_g_ref, wv_g_ref, wm_h_ref, wv_h_ref,
                  out_ref, *, D, H, infer_steps):
    p = p_ref[0]                     # (Lp, D)
    g = g_ref[0]                     # (Lg, D)
    pool_p = pool_p_ref[...]         # (M, Lp)
    pool_g = pool_g_ref[...]         # (M, Lg)
    Lp, Lg = p.shape[0], g.shape[0]

    ao, _ = _attn_mat_offsets(D, H)

    def load_attn(wm_ref, wv_ref):
        return dict(
            wkv=wm_ref[ao["wkv"]:ao["wkv"] + D, 0:2 * H],    # [Wpk | Wpv]
            wqk=wm_ref[ao["wqk"]:ao["wqk"] + D, 0:H],        # Wq @ Wk^T (folded)
            wvo=wm_ref[ao["wvo"]:ao["wvo"] + H, 0:D],        # Wv @ Wo   (folded)
            wg=wm_ref[ao["wg"]:ao["wg"] + 2 * D, 0:D],       # gate weight
            bkv=wv_ref[0:1, 0:2 * H],
            gq=wv_ref[1:2, 0:D], bq=wv_ref[2:3, 0:D],
            gk=wv_ref[3:4, 0:H], bk=wv_ref[4:5, 0:H],
            gv=wv_ref[5:6, 0:H], bv=wv_ref[6:7, 0:H],
            bg=wv_ref[7:8, 0:D],
        )

    wa_p = load_attn(wm_p_ref, wv_p_ref)
    wa_g = load_attn(wm_g_ref, wv_g_ref)

    def make_kv(x, pool, w):
        # proj_k / proj_v fused as one matmul; memory init ('mean') is a matmul
        # against the constant pooling matrix.  Bias is added after pooling,
        # scaled by the pool row-sums so zero-pad rows (seq_len <= mem_len case)
        # stay exactly zero as in init_mem.
        kv = jnp.dot(x, w["wkv"], preferred_element_type=jnp.float32)        # (L, 2H)
        rs = jnp.sum(pool, axis=-1, keepdims=True)                           # (M, 1)
        mem = jnp.dot(pool, kv, preferred_element_type=jnp.float32) + w["bkv"] * rs
        kn = _layernorm(mem[:, 0:H], w["gk"], w["bk"])                       # (M, H)
        vn = _layernorm(mem[:, H:2 * H], w["gv"], w["bv"])                   # (M, H)
        vho = jnp.dot(vn, w["wvo"], preferred_element_type=jnp.float32)      # (M, D)
        return kn, vho

    def attend(q, kn, vho, w):
        # DotAttention with num_heads=1, scale=1, pre_lnorm, sparsemax, gate.
        qn = _layernorm(q, w["gq"], w["bq"])                                  # (Lq, D)
        qs = jnp.dot(qn, w["wqk"], preferred_element_type=jnp.float32)        # (Lq, H)
        score = lax.dot_general(qs, kn, (((1,), (1,)), ((), ())),
                                preferred_element_type=jnp.float32)           # (Lq, M)
        attn = _sparsemax_lastdim(score)
        attn_vec = jnp.dot(attn, vho, preferred_element_type=jnp.float32)     # (Lq, D)
        gate = jax.nn.sigmoid(
            jnp.dot(jnp.concatenate([q, attn_vec], axis=-1), w["wg"],
                    preferred_element_type=jnp.float32) + w["bg"])
        return gate * q + (1.0 - gate) * attn_vec

    # p_attn key/value memory is step-invariant (key = value = p_rep): hoist it.
    kn_p, vho_p = make_kv(p, pool_p, wa_p)

    for _ in range(infer_steps):
        g = attend(g, kn_p, vho_p, wa_p)            # g = p_attn(g, p_rep, p_rep)
        kn_g, vho_g = make_kv(g, pool_g, wa_g)      # g_attn memory depends on g
        g = attend(g, kn_g, vho_g, wa_g)            # g = g_attn(g, g, g)

    # ------------------------------ PredictNet head ------------------------------
    ho, _ = _head_mat_offsets(D, H)
    wpg = wm_h_ref[ho["wpg"]:ho["wpg"] + D, 0:2 * H]                # [Wp | Wg]
    w1a = wm_h_ref[ho["w1"]:ho["w1"] + 4 * H, 0:H]                  # pred_fc1 4H block
    w1s = wm_h_ref[ho["w1"] + 4 * H:ho["w1"] + 4 * H + 4, 0:H]      # pl/gl/inv rows
    w2a = wm_h_ref[ho["w2"]:ho["w2"] + H, 0:1]                      # pred_fc2 H block
    w2s = wm_h_ref[ho["w2"] + H:ho["w2"] + H + 4, 0:1]
    bpg = wv_h_ref[0:1, 0:2 * H]
    b1 = wv_h_ref[1:2, 0:H]
    b2 = wv_h_ref[2:3, 0:1]

    pm = pm_ref[0]                  # (1, Lp)  float mask
    gm = gm_ref[0]                  # (1, Lg)
    pl_len = jnp.sum(pm, axis=-1, keepdims=True)    # (1, 1)
    gl_len = jnp.sum(gm, axis=-1, keepdims=True)
    pl_inv = 1.0 / pl_len
    gl_inv = 1.0 / gl_len

    # p_fc(p_rep) and g_fc(g) share the feature dim: one matmul on stacked rows.
    pg_h = jnp.dot(jnp.concatenate([p, g], axis=0), wpg,
                   preferred_element_type=jnp.float32) + bpg        # (Lp+Lg, 2H)
    p_h = pg_h[0:Lp, 0:H]
    g_h = pg_h[Lp:Lp + Lg, H:2 * H]

    # TODO(synk): agg_graph is abstract in PredictNet; mean aggregation assumed
    # (masked mean for the pattern, plain mean for the graph because forward()
    # calls agg_graph(g) without a mask).
    p_agg = jnp.dot(pm, p_h, preferred_element_type=jnp.float32) * pl_inv    # (1, H)
    g_agg = jnp.sum(g_h, axis=0, keepdims=True) * (1.0 / Lg)                 # (1, H)

    cat4 = jnp.concatenate([p_agg, g_agg, g_agg - p_agg, g_agg * p_agg],
                           axis=-1)                                          # (1, 4H)
    y1 = (jnp.dot(cat4, w1a, preferred_element_type=jnp.float32)
          + pl_len * w1s[0:1, :] + gl_len * w1s[1:2, :]
          + pl_inv * w1s[2:3, :] + gl_inv * w1s[3:4, :]
          + b1)
    y1 = jnp.maximum(y1, 0.0)                                                # relu
    y2 = (jnp.dot(y1, w2a, preferred_element_type=jnp.float32)
          + pl_len * w2s[0:1, :] + gl_len * w2s[1:2, :]
          + pl_inv * w2s[2:3, :] + gl_inv * w2s[3:4, :]
          + b2)                                                              # (1, 1)

    out_ref[0] = jnp.broadcast_to(y2, (1, _OUT_LANES))   # lane-dense store


# --------------------------------- wrapper ------------------------------------

def make_pool_matrix(seq_len, mem_len):
    """Constant matrix reproducing init_mem(..., mem_init='mean')."""
    P = np.zeros((mem_len, seq_len), dtype=np.float32)
    if seq_len <= mem_len:
        # mem = cat([zeros(mem_len - seq_len), x])
        for i in range(seq_len):
            P[mem_len - seq_len + i, i] = 1.0
    else:
        stride = seq_len // mem_len
        kernel = seq_len - (mem_len - 1) * stride
        for m in range(mem_len):
            P[m, m * stride: m * stride + kernel] = 1.0 / kernel
    return jnp.asarray(P)


def base_mem_attn_predict_net(packed, p_rep, p_mask, g_rep, g_mask,
                              *, hidden_dim, mem_len=4, infer_steps=3):
    B, Lp, D = p_rep.shape
    Lg = g_rep.shape[1]
    H = hidden_dim

    pool_p = make_pool_matrix(Lp, mem_len)
    pool_g = make_pool_matrix(Lg, mem_len)
    pm = p_mask.astype(jnp.float32).reshape(B, 1, Lp)
    gm = g_mask.astype(jnp.float32).reshape(B, 1, Lg)

    kernel = partial(_fused_kernel, D=D, H=H, infer_steps=infer_steps)

    def _const(arr):
        z = (0,) * arr.ndim
        return pl.BlockSpec(arr.shape, lambda b, _z=z: _z)

    wm_p, wv_p = packed["p_attn"]["wmat"], packed["p_attn"]["wvec"]
    wm_g, wv_g = packed["g_attn"]["wmat"], packed["g_attn"]["wvec"]
    wm_h, wv_h = packed["head"]["wmat"], packed["head"]["wvec"]

    in_specs = [
        pl.BlockSpec((1, Lp, D), lambda b: (b, 0, 0)),
        pl.BlockSpec((1, Lg, D), lambda b: (b, 0, 0)),
        pl.BlockSpec((1, 1, Lp), lambda b: (b, 0, 0)),
        pl.BlockSpec((1, 1, Lg), lambda b: (b, 0, 0)),
        _const(pool_p), _const(pool_g),
        _const(wm_p), _const(wv_p),
        _const(wm_g), _const(wv_g),
        _const(wm_h), _const(wv_h),
    ]

    y_full = pl.pallas_call(
        kernel,
        out_shape=jax.ShapeDtypeStruct((B, 1, _OUT_LANES), jnp.float32),
        grid=(B,),
        in_specs=in_specs,
        out_specs=pl.BlockSpec((1, 1, _OUT_LANES), lambda b: (b, 0, 0)),
        compiler_params=pltpu.CompilerParams(dimension_semantics=("parallel",)),
    )(p_rep, g_rep, pm, gm, pool_p, pool_g, wm_p, wv_p, wm_g, wv_g, wm_h, wv_h)

    return y_full[:, 0, :1], None   # return_weights=False -> w is None


# ----------------------- parameter creation & packing -------------------------

def init_attn_params(key, D, H, std=0.1):
    ks = jax.random.split(key, 9)
    n = lambda k, shape: (std * jax.random.normal(k, shape)).astype(jnp.float32)
    return {
        "wpk": n(ks[0], (D, H)), "bpk": n(ks[1], (1, H)),     # proj_k
        "wpv": n(ks[2], (D, H)), "bpv": n(ks[3], (1, H)),     # proj_v
        "gq": jnp.ones((1, D), jnp.float32), "bq": jnp.zeros((1, D), jnp.float32),
        "gk": jnp.ones((1, H), jnp.float32), "bk": jnp.zeros((1, H), jnp.float32),
        "gv": jnp.ones((1, H), jnp.float32), "bv": jnp.zeros((1, H), jnp.float32),
        "wq": n(ks[4], (D, H)), "wk": n(ks[5], (H, H)),       # weight_q / weight_k
        "wv": n(ks[6], (H, H)), "wo": n(ks[7], (H, D)),       # weight_v / weight_o
        "wg": n(ks[8], (2 * D, D)),                           # g_net weight
        "bg": jnp.ones((1, D), jnp.float32),                  # g_net bias init = 1.0
    }


def init_head_params(key, D, H, std=0.1):
    ks = jax.random.split(key, 8)
    n = lambda k, shape: (std * jax.random.normal(k, shape)).astype(jnp.float32)
    return {
        "wp": n(ks[0], (D, H)), "bp": n(ks[1], (1, H)),           # p_fc
        "wg": n(ks[2], (D, H)), "bg": n(ks[3], (1, H)),           # g_fc
        "w1": n(ks[4], (4 * H + 4, H)), "b1": n(ks[5], (1, H)),   # pred_fc1
        "w2": n(ks[6], (H + 4, 1)), "b2": n(ks[7], (1, 1)),       # pred_fc2
    }


def _pack_rows(vecs, width):
    rows = []
    for v in vecs:
        v = v.astype(jnp.float32).reshape(1, -1)
        rows.append(jnp.pad(v, ((0, 0), (0, width - v.shape[1]))))
    return jnp.concatenate(rows, axis=0)


def _pack_mat(blocks, offs, rows, width):
    wmat = jnp.zeros((rows, width), jnp.float32)
    for name, blk in blocks.items():
        r = offs[name]
        wmat = wmat.at[r:r + blk.shape[0], :blk.shape[1]].set(blk.astype(jnp.float32))
    return wmat


def pack_attn_params(raw, D, H):
    W = max(2 * H, D)
    offs, rows = _attn_mat_offsets(D, H)
    wkv = jnp.concatenate([raw["wpk"], raw["wpv"]], axis=1)     # (D, 2H)
    wqk = jnp.dot(raw["wq"], raw["wk"].T)                       # fold Wq @ Wk^T
    wvo = jnp.dot(raw["wv"], raw["wo"])                         # fold Wv @ Wo
    wmat = _pack_mat({"wkv": wkv, "wqk": wqk, "wvo": wvo, "wg": raw["wg"]},
                     offs, rows, W)
    bkv = jnp.concatenate([raw["bpk"], raw["bpv"]], axis=1)     # (1, 2H)
    wvec = _pack_rows([bkv, raw["gq"], raw["bq"], raw["gk"], raw["bk"],
                       raw["gv"], raw["bv"], raw["bg"]], W)
    return {"wmat": wmat, "wvec": wvec}


def pack_head_params(raw, D, H):
    W = max(2 * H, D)
    offs, rows = _head_mat_offsets(D, H)
    wpg = jnp.concatenate([raw["wp"], raw["wg"]], axis=1)       # (D, 2H)
    wmat = _pack_mat({"wpg": wpg, "w1": raw["w1"], "w2": raw["w2"]}, offs, rows, W)
    bpg = jnp.concatenate([raw["bp"], raw["bg"]], axis=1)       # (1, 2H)
    wvec = _pack_rows([bpg, raw["b1"], raw["b2"]], W)
    return {"wmat": wmat, "wvec": wvec}


def pack_params(params, D, H):
    return {"p_attn": pack_attn_params(params["p_attn"], D, H),
            "g_attn": pack_attn_params(params["g_attn"], D, H),
            "head": pack_head_params(params["head"], D, H)}


# ----------------------------------- driver -----------------------------------

if __name__ == "__main__":
    B, Lp, Lg, D, H = 2, 8, 8, 32, 32
    mem_len, infer_steps = 4, 3

    key = jax.random.PRNGKey(0)
    k_p, k_g, k_pa, k_ga, k_h = jax.random.split(key, 5)

    p_rep = jax.random.normal(k_p, (B, Lp, D), dtype=jnp.float32)
    g_rep = jax.random.normal(k_g, (B, Lg, D), dtype=jnp.float32)
    p_mask = jnp.ones((B, Lp), dtype=jnp.float32)
    g_mask = jnp.ones((B, Lg), dtype=jnp.float32)

    params = {
        "p_attn": init_attn_params(k_pa, D, H),
        "g_attn": init_attn_params(k_ga, D, H),
        "head": init_head_params(k_h, D, H),
    }
    packed = pack_params(params, D, H)   # one-time host-side folding/packing

    fwd = jax.jit(partial(base_mem_attn_predict_net, hidden_dim=H,
                          mem_len=mem_len, infer_steps=infer_steps))
    y, w = fwd(packed, p_rep, p_mask, g_rep, g_mask)
    y = jax.block_until_ready(y)

    assert y.shape == (B, 1)
    assert bool(jnp.all(jnp.isfinite(y)))
    assert w is None
    print("KERNEL_OK")
</pallas_src>

<mosaic_0001>
module attributes {stable_mosaic.version = 11 : i64} {
  func.func @_fused_kernel(%arg0: i32, %arg1: memref<1x8x32xf32, #tpu.memory_space<vmem>>, %arg2: memref<1x8x32xf32, #tpu.memory_space<vmem>>, %arg3: memref<1x1x8xf32, #tpu.memory_space<vmem>>, %arg4: memref<1x1x8xf32, #tpu.memory_space<vmem>>, %arg5: memref<4x8xf32, #tpu.memory_space<vmem>>, %arg6: memref<4x8xf32, #tpu.memory_space<vmem>>, %arg7: memref<160x64xf32, #tpu.memory_space<vmem>>, %arg8: memref<8x64xf32, #tpu.memory_space<vmem>>, %arg9: memref<160x64xf32, #tpu.memory_space<vmem>>, %arg10: memref<8x64xf32, #tpu.memory_space<vmem>>, %arg11: memref<208x64xf32, #tpu.memory_space<vmem>>, %arg12: memref<3x64xf32, #tpu.memory_space<vmem>>, %arg13: memref<1x1x128xf32, #tpu.memory_space<vmem>>) attributes {dimension_semantics = [#tpu.dimension_semantics<parallel>], iteration_bounds = array<i64: 2>, scalar_prefetch = 0 : i64, scratch_operands = 0 : i64, tpu.core_type = #tpu.core_type<tc>, window_params = [{transform_indices = @transform_0, window_bounds = array<i64: 1, 8, 32>}, {transform_indices = @transform_1, window_bounds = array<i64: 1, 8, 32>}, {transform_indices = @transform_2, window_bounds = array<i64: 1, 1, 8>}, {transform_indices = @transform_3, window_bounds = array<i64: 1, 1, 8>}, {pipeline_mode = #tpu.pipeline_mode<synchronous>, transform_indices = @transform_4, window_bounds = array<i64: 4, 8>}, {pipeline_mode = #tpu.pipeline_mode<synchronous>, transform_indices = @transform_5, window_bounds = array<i64: 4, 8>}, {pipeline_mode = #tpu.pipeline_mode<synchronous>, transform_indices = @transform_6, window_bounds = array<i64: 160, 64>}, {pipeline_mode = #tpu.pipeline_mode<synchronous>, transform_indices = @transform_7, window_bounds = array<i64: 8, 64>}, {pipeline_mode = #tpu.pipeline_mode<synchronous>, transform_indices = @transform_8, window_bounds = array<i64: 160, 64>}, {pipeline_mode = #tpu.pipeline_mode<synchronous>, transform_indices = @transform_9, window_bounds = array<i64: 8, 64>}, {pipeline_mode = #tpu.pipeline_mode<synchronous>, transform_indices = @transform_10, window_bounds = array<i64: 208, 64>}, {pipeline_mode = #tpu.pipeline_mode<synchronous>, transform_indices = @transform_11, window_bounds = array<i64: 3, 64>}, {transform_indices = @transform_12, window_bounds = array<i64: 1, 1, 128>}]} {
    %c0 = arith.constant 0 : index
    %c0_0 = arith.constant 0 : index
    %c0_1 = arith.constant 0 : index
    %0 = vector.load %arg1[%c0, %c0_0, %c0_1] : memref<1x8x32xf32, #tpu.memory_space<vmem>>, vector<1x8x32xf32>
    %1 = vector.shape_cast %0 : vector<1x8x32xf32> to vector<8x32xf32>
    %c0_2 = arith.constant 0 : index
    %c0_3 = arith.constant 0 : index
    %c0_4 = arith.constant 0 : index
    %2 = vector.load %arg2[%c0_2, %c0_3, %c0_4] : memref<1x8x32xf32, #tpu.memory_space<vmem>>, vector<1x8x32xf32>
    %3 = vector.shape_cast %2 : vector<1x8x32xf32> to vector<8x32xf32>
    %c0_5 = arith.constant 0 : index
    %c0_6 = arith.constant 0 : index
    %4 = vector.load %arg5[%c0_5, %c0_6] : memref<4x8xf32, #tpu.memory_space<vmem>>, vector<4x8xf32>
    %c0_7 = arith.constant 0 : index
    %c0_8 = arith.constant 0 : index
    %5 = vector.load %arg6[%c0_7, %c0_8] : memref<4x8xf32, #tpu.memory_space<vmem>>, vector<4x8xf32>
    %c0_9 = arith.constant 0 : index
    %c0_10 = arith.constant 0 : index
    %6 = vector.load %arg7[%c0_9, %c0_10] : memref<160x64xf32, #tpu.memory_space<vmem>>, vector<32x64xf32>
    %c32 = arith.constant 32 : index
    %c0_11 = arith.constant 0 : index
    %7 = vector.load %arg7[%c32, %c0_11] : memref<160x64xf32, #tpu.memory_space<vmem>>, vector<32x32xf32>
    %c64 = arith.constant 64 : index
    %c0_12 = arith.constant 0 : index
    %8 = vector.load %arg7[%c64, %c0_12] : memref<160x64xf32, #tpu.memory_space<vmem>>, vector<32x32xf32>
    %c96 = arith.constant 96 : index
    %c0_13 = arith.constant 0 : index
    %9 = vector.load %arg7[%c96, %c0_13] : memref<160x64xf32, #tpu.memory_space<vmem>>, vector<64x32xf32>
    %c0_14 = arith.constant 0 : index
    %c0_15 = arith.constant 0 : index
    %10 = vector.load %arg8[%c0_14, %c0_15] : memref<8x64xf32, #tpu.memory_space<vmem>>, vector<1x64xf32>
    %c1 = arith.constant 1 : index
    %c0_16 = arith.constant 0 : index
    %11 = vector.load %arg8[%c1, %c0_16] : memref<8x64xf32, #tpu.memory_space<vmem>>, vector<1x32xf32>
    %c2 = arith.constant 2 : index
    %c0_17 = arith.constant 0 : index
    %12 = vector.load %arg8[%c2, %c0_17] : memref<8x64xf32, #tpu.memory_space<vmem>>, vector<1x32xf32>
    %c3 = arith.constant 3 : index
    %c0_18 = arith.constant 0 : index
    %13 = vector.load %arg8[%c3, %c0_18] : memref<8x64xf32, #tpu.memory_space<vmem>>, vector<1x32xf32>
    %c4 = arith.constant 4 : index
    %c0_19 = arith.constant 0 : index
    %14 = vector.load %arg8[%c4, %c0_19] : memref<8x64xf32, #tpu.memory_space<vmem>>, vector<1x32xf32>
    %c5 = arith.constant 5 : index
    %c0_20 = arith.constant 0 : index
    %15 = vector.load %arg8[%c5, %c0_20] : memref<8x64xf32, #tpu.memory_space<vmem>>, vector<1x32xf32>
    %c6 = arith.constant 6 : index
    %c0_21 = arith.constant 0 : index
    %16 = vector.load %arg8[%c6, %c0_21] : memref<8x64xf32, #tpu.memory_space<vmem>>, vector<1x32xf32>
    %c7 = arith.constant 7 : index
    %c0_22 = arith.constant 0 : index
    %17 = vector.load %arg8[%c7, %c0_22] : memref<8x64xf32, #tpu.memory_space<vmem>>, vector<1x32xf32>
    %c0_23 = arith.constant 0 : index
    %c0_24 = arith.constant 0 : index
    %18 = vector.load %arg9[%c0_23, %c0_24] : memref<160x64xf32, #tpu.memory_space<vmem>>, vector<32x64xf32>
    %c32_25 = arith.constant 32 : index
    %c0_26 = arith.constant 0 : index
    %19 = vector.load %arg9[%c32_25, %c0_26] : memref<160x64xf32, #tpu.memory_space<vmem>>, vector<32x32xf32>
    %c64_27 = arith.constant 64 : index
    %c0_28 = arith.constant 0 : index
    %20 = vector.load %arg9[%c64_27, %c0_28] : memref<160x64xf32, #tpu.memory_space<vmem>>, vector<32x32xf32>
    %c96_29 = arith.constant 96 : index
    %c0_30 = arith.constant 0 : index
    %21 = vector.load %arg9[%c96_29, %c0_30] : memref<160x64xf32, #tpu.memory_space<vmem>>, vector<64x32xf32>
    %c0_31 = arith.constant 0 : index
    %c0_32 = arith.constant 0 : index
    %22 = vector.load %arg10[%c0_31, %c0_32] : memref<8x64xf32, #tpu.memory_space<vmem>>, vector<1x64xf32>
    %c1_33 = arith.constant 1 : index
    %c0_34 = arith.constant 0 : index
    %23 = vector.load %arg10[%c1_33, %c0_34] : memref<8x64xf32, #tpu.memory_space<vmem>>, vector<1x32xf32>
    %c2_35 = arith.constant 2 : index
    %c0_36 = arith.constant 0 : index
    %24 = vector.load %arg10[%c2_35, %c0_36] : memref<8x64xf32, #tpu.memory_space<vmem>>, vector<1x32xf32>
    %c3_37 = arith.constant 3 : index
    %c0_38 = arith.constant 0 : index
    %25 = vector.load %arg10[%c3_37, %c0_38] : memref<8x64xf32, #tpu.memory_space<vmem>>, vector<1x32xf32>
    %c4_39 = arith.constant 4 : index
    %c0_40 = arith.constant 0 : index
    %26 = vector.load %arg10[%c4_39, %c0_40] : memref<8x64xf32, #tpu.memory_space<vmem>>, vector<1x32xf32>
    %c5_41 = arith.constant 5 : index
    %c0_42 = arith.constant 0 : index
    %27 = vector.load %arg10[%c5_41, %c0_42] : memref<8x64xf32, #tpu.memory_space<vmem>>, vector<1x32xf32>
    %c6_43 = arith.constant 6 : index
    %c0_44 = arith.constant 0 : index
    %28 = vector.load %arg10[%c6_43, %c0_44] : memref<8x64xf32, #tpu.memory_space<vmem>>, vector<1x32xf32>
    %c7_45 = arith.constant 7 : index
    %c0_46 = arith.constant 0 : index
    %29 = vector.load %arg10[%c7_45, %c0_46] : memref<8x64xf32, #tpu.memory_space<vmem>>, vector<1x32xf32>
    %cst = arith.constant dense<0.000000e+00> : vector<8x64xf32>
    %30 = tpu.matmul %1, %6, %cst {dimension_numbers = #tpu.dot_dimension_numbers<[1], [0], [0], [1], [0, 0, 1, 1], [], []>} : vector<8x32xf32>, vector<32x64xf32>, vector<8x64xf32> -> vector<8x64xf32>
    %cst_47 = arith.constant dense<0.000000e+00> : vector<4xf32>
    %31 = vector.multi_reduction <add>, %4, %cst_47 [1] : vector<4x8xf32> to vector<4xf32>
    %32 = vector.shape_cast %31 : vector<4xf32> to vector<4x1xf32>
    %cst_48 = arith.constant dense<0.000000e+00> : vector<4x64xf32>
    %33 = tpu.matmul %4, %30, %cst_48 {dimension_numbers = #tpu.dot_dimension_numbers<[1], [0], [0], [1], [0, 0, 1, 1], [], []>} : vector<4x8xf32>, vector<8x64xf32>, vector<4x64xf32> -> vector<4x64xf32>
    %34 = vector.broadcast %10 : vector<1x64xf32> to vector<4x64xf32>
    %35 = vector.broadcast %32 : vector<4x1xf32> to vector<4x64xf32>
    %36 = arith.mulf %34, %35 : vector<4x64xf32>
    %37 = arith.addf %33, %36 : vector<4x64xf32>
    %38 = vector.extract_strided_slice %37 {offsets = [0, 0], sizes = [4, 32], strides = [1, 1]} : vector<4x64xf32> to vector<4x32xf32>
    %cst_49 = arith.constant dense<0.000000e+00> : vector<4xf32>
    %39 = vector.multi_reduction <add>, %38, %cst_49 [1] : vector<4x32xf32> to vector<4xf32>
    %40 = vector.shape_cast %39 : vector<4xf32> to vector<4x1xf32>
    %cst_50 = arith.constant 3.200000e+01 : f32
    %41 = vector.broadcast %cst_50 : f32 to vector<4x1xf32>
    %42 = arith.divf %40, %41 : vector<4x1xf32>
    %43 = vector.broadcast %42 : vector<4x1xf32> to vector<4x32xf32>
    %44 = arith.subf %38, %43 : vector<4x32xf32>
    %45 = arith.mulf %44, %44 : vector<4x32xf32>
    %cst_51 = arith.constant dense<0.000000e+00> : vector<4xf32>
    %46 = vector.multi_reduction <add>, %45, %cst_51 [1] : vector<4x32xf32> to vector<4xf32>
    %47 = vector.shape_cast %46 : vector<4xf32> to vector<4x1xf32>
    %cst_52 = arith.constant 3.200000e+01 : f32
    %48 = vector.broadcast %cst_52 : f32 to vector<4x1xf32>
    %49 = arith.divf %47, %48 : vector<4x1xf32>
    %cst_53 = arith.constant 9.99999974E-6 : f32
    %50 = vector.broadcast %cst_53 : f32 to vector<4x1xf32>
    %51 = arith.addf %49, %50 : vector<4x1xf32>
    %52 = math.rsqrt %51 : vector<4x1xf32>
    %53 = vector.broadcast %52 : vector<4x1xf32> to vector<4x32xf32>
    %54 = arith.mulf %44, %53 : vector<4x32xf32>
    %55 = vector.broadcast %13 : vector<1x32xf32> to vector<4x32xf32>
    %56 = arith.mulf %54, %55 : vector<4x32xf32>
    %57 = vector.broadcast %14 : vector<1x32xf32> to vector<4x32xf32>
    %58 = arith.addf %56, %57 : vector<4x32xf32>
    %59 = vector.extract_strided_slice %37 {offsets = [0, 32], sizes = [4, 32], strides = [1, 1]} : vector<4x64xf32> to vector<4x32xf32>
    %cst_54 = arith.constant dense<0.000000e+00> : vector<4xf32>
    %60 = vector.multi_reduction <add>, %59, %cst_54 [1] : vector<4x32xf32> to vector<4xf32>
    %61 = vector.shape_cast %60 : vector<4xf32> to vector<4x1xf32>
    %cst_55 = arith.constant 3.200000e+01 : f32
    %62 = vector.broadcast %cst_55 : f32 to vector<4x1xf32>
    %63 = arith.divf %61, %62 : vector<4x1xf32>
    %64 = vector.broadcast %63 : vector<4x1xf32> to vector<4x32xf32>
    %65 = arith.subf %59, %64 : vector<4x32xf32>
    %66 = arith.mulf %65, %65 : vector<4x32xf32>
    %cst_56 = arith.constant dense<0.000000e+00> : vector<4xf32>
    %67 = vector.multi_reduction <add>, %66, %cst_56 [1] : vector<4x32xf32> to vector<4xf32>
    %68 = vector.shape_cast %67 : vector<4xf32> to vector<4x1xf32>
    %cst_57 = arith.constant 3.200000e+01 : f32
    %69 = vector.broadcast %cst_57 : f32 to vector<4x1xf32>
    %70 = arith.divf %68, %69 : vector<4x1xf32>
    %cst_58 = arith.constant 9.99999974E-6 : f32
    %71 = vector.broadcast %cst_58 : f32 to vector<4x1xf32>
    %72 = arith.addf %70, %71 : vector<4x1xf32>
    %73 = math.rsqrt %72 : vector<4x1xf32>
    %74 = vector.broadcast %73 : vector<4x1xf32> to vector<4x32xf32>
    %75 = arith.mulf %65, %74 : vector<4x32xf32>
    %76 = vector.broadcast %15 : vector<1x32xf32> to vector<4x32xf32>
    %77 = arith.mulf %75, %76 : vector<4x32xf32>
    %78 = vector.broadcast %16 : vector<1x32xf32> to vector<4x32xf32>
    %79 = arith.addf %77, %78 : vector<4x32xf32>
    %cst_59 = arith.constant dense<0.000000e+00> : vector<4x32xf32>
    %80 = tpu.matmul %79, %8, %cst_59 {dimension_numbers = #tpu.dot_dimension_numbers<[1], [0], [0], [1], [0, 0, 1, 1], [], []>} : vector<4x32xf32>, vector<32x32xf32>, vector<4x32xf32> -> vector<4x32xf32>
    %cst_60 = arith.constant dense<0.000000e+00> : vector<8xf32>
    %81 = vector.multi_reduction <add>, %3, %cst_60 [1] : vector<8x32xf32> to vector<8xf32>
    %82 = vector.shape_cast %81 : vector<8xf32> to vector<8x1xf32>
    %cst_61 = arith.constant 3.200000e+01 : f32
    %83 = vector.broadcast %cst_61 : f32 to vector<8x1xf32>
    %84 = arith.divf %82, %83 : vector<8x1xf32>
    %85 = vector.broadcast %84 : vector<8x1xf32> to vector<8x32xf32>
    %86 = arith.subf %3, %85 : vector<8x32xf32>
    %87 = arith.mulf %86, %86 : vector<8x32xf32>
    %cst_62 = arith.constant dense<0.000000e+00> : vector<8xf32>
    %88 = vector.multi_reduction <add>, %87, %cst_62 [1] : vector<8x32xf32> to vector<8xf32>
    %89 = vector.shape_cast %88 : vector<8xf32> to vector<8x1xf32>
    %cst_63 = arith.constant 3.200000e+01 : f32
    %90 = vector.broadcast %cst_63 : f32 to vector<8x1xf32>
    %91 = arith.divf %89, %90 : vector<8x1xf32>
    %cst_64 = arith.constant 9.99999974E-6 : f32
    %92 = vector.broadcast %cst_64 : f32 to vector<8x1xf32>
    %93 = arith.addf %91, %92 : vector<8x1xf32>
    %94 = math.rsqrt %93 : vector<8x1xf32>
    %95 = vector.broadcast %94 : vector<8x1xf32> to vector<8x32xf32>
    %96 = arith.mulf %86, %95 : vector<8x32xf32>
    %97 = vector.broadcast %11 : vector<1x32xf32> to vector<8x32xf32>
    %98 = arith.mulf %96, %97 : vector<8x32xf32>
    %99 = vector.broadcast %12 : vector<1x32xf32> to vector<8x32xf32>
    %100 = arith.addf %98, %99 : vector<8x32xf32>
    %cst_65 = arith.constant dense<0.000000e+00> : vector<8x32xf32>
    %101 = tpu.matmul %100, %7, %cst_65 {dimension_numbers = #tpu.dot_dimension_numbers<[1], [0], [0], [1], [0, 0, 1, 1], [], []>} : vector<8x32xf32>, vector<32x32xf32>, vector<8x32xf32> -> vector<8x32xf32>
    %cst_66 = arith.constant dense<0.000000e+00> : vector<8x4xf32>
    %102 = tpu.matmul %101, %58, %cst_66 {dimension_numbers = #tpu.dot_dimension_numbers<[1], [1], [0], [0], [0, 0, 1, 0], [], []>} : vector<8x32xf32>, vector<4x32xf32>, vector<8x4xf32> -> vector<8x4xf32>
    %cst_67 = arith.constant 0.000000e+00 : f32
    %103 = vector.broadcast %cst_67 : f32 to vector<8x4xf32>
    %cst_68 = arith.constant 0.000000e+00 : f32
    %104 = vector.broadcast %cst_68 : f32 to vector<8x4xf32>
    %105 = vector.extract_strided_slice %102 {offsets = [0, 0], sizes = [8, 1], strides = [1, 1]} : vector<8x4xf32> to vector<8x1xf32>
    %106 = vector.broadcast %105 : vector<8x1xf32> to vector<8x4xf32>
    %107 = arith.cmpf oge, %106, %102 : vector<8x4xf32>
    %108 = arith.extui %107 : vector<8x4xi1> to vector<8x4xi32>
    %109 = arith.sitofp %108 : vector<8x4xi32> to vector<8x4xf32>
    %110 = arith.addf %103, %109 : vector<8x4xf32>
    %111 = vector.broadcast %105 : vector<8x1xf32> to vector<8x4xf32>
    %112 = arith.mulf %111, %109 : vector<8x4xf32>
    %113 = arith.addf %104, %112 : vector<8x4xf32>
    %114 = vector.extract_strided_slice %102 {offsets = [0, 1], sizes = [8, 1], strides = [1, 1]} : vector<8x4xf32> to vector<8x1xf32>
    %115 = vector.broadcast %114 : vector<8x1xf32> to vector<8x4xf32>
    %116 = arith.cmpf oge, %115, %102 : vector<8x4xf32>
    %117 = arith.extui %116 : vector<8x4xi1> to vector<8x4xi32>
    %118 = arith.sitofp %117 : vector<8x4xi32> to vector<8x4xf32>
    %119 = arith.addf %110, %118 : vector<8x4xf32>
    %120 = vector.broadcast %114 : vector<8x1xf32> to vector<8x4xf32>
    %121 = arith.mulf %120, %118 : vector<8x4xf32>
    %122 = arith.addf %113, %121 : vector<8x4xf32>
    %123 = vector.extract_strided_slice %102 {offsets = [0, 2], sizes = [8, 1], strides = [1, 1]} : vector<8x4xf32> to vector<8x1xf32>
    %124 = vector.broadcast %123 : vector<8x1xf32> to vector<8x4xf32>
    %125 = arith.cmpf oge, %124, %102 : vector<8x4xf32>
    %126 = arith.extui %125 : vector<8x4xi1> to vector<8x4xi32>
    %127 = arith.sitofp %126 : vector<8x4xi32> to vector<8x4xf32>
    %128 = arith.addf %119, %127 : vector<8x4xf32>
    %129 = vector.broadcast %123 : vector<8x1xf32> to vector<8x4xf32>
    %130 = arith.mulf %129, %127 : vector<8x4xf32>
    %131 = arith.addf %122, %130 : vector<8x4xf32>
    %132 = vector.extract_strided_slice %102 {offsets = [0, 3], sizes = [8, 1], strides = [1, 1]} : vector<8x4xf32> to vector<8x1xf32>
    %133 = vector.broadcast %132 : vector<8x1xf32> to vector<8x4xf32>
    %134 = arith.cmpf oge, %133, %102 : vector<8x4xf32>
    %135 = arith.extui %134 : vector<8x4xi1> to vector<8x4xi32>
    %136 = arith.sitofp %135 : vector<8x4xi32> to vector<8x4xf32>
    %137 = arith.addf %128, %136 : vector<8x4xf32>
    %138 = vector.broadcast %132 : vector<8x1xf32> to vector<8x4xf32>
    %139 = arith.mulf %138, %136 : vector<8x4xf32>
    %140 = arith.addf %131, %139 : vector<8x4xf32>
    %141 = arith.mulf %137, %102 : vector<8x4xf32>
    %cst_69 = arith.constant 1.000000e+00 : f32
    %142 = vector.broadcast %cst_69 : f32 to vector<8x4xf32>
    %143 = arith.addf %142, %141 : vector<8x4xf32>
    %144 = arith.cmpf ogt, %143, %140 : vector<8x4xf32>
    %cst_70 = arith.constant 1.000000e+00 : f32
    %145 = vector.broadcast %cst_70 : f32 to vector<8x4xf32>
    %146 = arith.subf %140, %145 : vector<8x4xf32>
    %147 = arith.divf %146, %137 : vector<8x4xf32>
    %cst_71 = arith.constant 0xFF800000 : f32
    %148 = vector.broadcast %cst_71 : f32 to vector<8x4xf32>
    %149 = arith.select %144, %147, %148 : vector<8x4xi1>, vector<8x4xf32>
    %cst_72 = arith.constant dense<0xFF800000> : vector<8xf32>
    %150 = vector.multi_reduction <maximumf>, %149, %cst_72 [1] : vector<8x4xf32> to vector<8xf32>
    %151 = vector.shape_cast %150 : vector<8xf32> to vector<8x1xf32>
    %152 = vector.broadcast %151 : vector<8x1xf32> to vector<8x4xf32>
    %153 = arith.subf %102, %152 : vector<8x4xf32>
    %cst_73 = arith.constant 0.000000e+00 : f32
    %154 = vector.broadcast %cst_73 : f32 to vector<8x4xf32>
    %155 = arith.maximumf %153, %154 : vector<8x4xf32>
    %cst_74 = arith.constant dense<0.000000e+00> : vector<8x32xf32>
    %156 = tpu.matmul %155, %80, %cst_74 {dimension_numbers = #tpu.dot_dimension_numbers<[1], [0], [0], [1], [0, 0, 1, 1], [], []>} : vector<8x4xf32>, vector<4x32xf32>, vector<8x32xf32> -> vector<8x32xf32>
    %157 = tpu.concatenate %3, %156 in 1 : vector<8x32xf32>, vector<8x32xf32> -> vector<8x64xf32>
    %cst_75 = arith.constant dense<0.000000e+00> : vector<8x32xf32>
    %158 = tpu.matmul %157, %9, %cst_75 {dimension_numbers = #tpu.dot_dimension_numbers<[1], [0], [0], [1], [0, 0, 1, 1], [], []>} : vector<8x64xf32>, vector<64x32xf32>, vector<8x32xf32> -> vector<8x32xf32>
    %159 = vector.broadcast %17 : vector<1x32xf32> to vector<8x32xf32>
    %160 = arith.addf %158, %159 : vector<8x32xf32>
    %161 = arith.negf %160 : vector<8x32xf32>
    %162 = math.exp %161 : vector<8x32xf32>
    %cst_76 = arith.constant 1.000000e+00 : f32
    %163 = vector.broadcast %cst_76 : f32 to vector<8x32xf32>
    %164 = arith.addf %163, %162 : vector<8x32xf32>
    %165 = arith.divf %163, %164 : vector<8x32xf32>
    %166 = arith.mulf %165, %3 : vector<8x32xf32>
    %cst_77 = arith.constant 1.000000e+00 : f32
    %167 = vector.broadcast %cst_77 : f32 to vector<8x32xf32>
    %168 = arith.subf %167, %165 : vector<8x32xf32>
    %169 = arith.mulf %168, %156 : vector<8x32xf32>
    %170 = arith.addf %166, %169 : vector<8x32xf32>
    %cst_78 = arith.constant dense<0.000000e+00> : vector<8x64xf32>
    %171 = tpu.matmul %170, %18, %cst_78 {dimension_numbers = #tpu.dot_dimension_numbers<[1], [0], [0], [1], [0, 0, 1, 1], [], []>} : vector<8x32xf32>, vector<32x64xf32>, vector<8x64xf32> -> vector<8x64xf32>
    %cst_79 = arith.constant dense<0.000000e+00> : vector<4xf32>
    %172 = vector.multi_reduction <add>, %5, %cst_79 [1] : vector<4x8xf32> to vector<4xf32>
    %173 = vector.shape_cast %172 : vector<4xf32> to vector<4x1xf32>
    %cst_80 = arith.constant dense<0.000000e+00> : vector<4x64xf32>
    %174 = tpu.matmul %5, %171, %cst_80 {dimension_numbers = #tpu.dot_dimension_numbers<[1], [0], [0], [1], [0, 0, 1, 1], [], []>} : vector<4x8xf32>, vector<8x64xf32>, vector<4x64xf32> -> vector<4x64xf32>
    %175 = vector.broadcast %22 : vector<1x64xf32> to vector<4x64xf32>
    %176 = vector.broadcast %173 : vector<4x1xf32> to vector<4x64xf32>
    %177 = arith.mulf %175, %176 : vector<4x64xf32>
    %178 = arith.addf %174, %177 : vector<4x64xf32>
    %179 = vector.extract_strided_slice %178 {offsets = [0, 0], sizes = [4, 32], strides = [1, 1]} : vector<4x64xf32> to vector<4x32xf32>
    %cst_81 = arith.constant dense<0.000000e+00> : vector<4xf32>
    %180 = vector.multi_reduction <add>, %179, %cst_81 [1] : vector<4x32xf32> to vector<4xf32>
    %181 = vector.shape_cast %180 : vector<4xf32> to vector<4x1xf32>
    %cst_82 = arith.constant 3.200000e+01 : f32
    %182 = vector.broadcast %cst_82 : f32 to vector<4x1xf32>
    %183 = arith.divf %181, %182 : vector<4x1xf32>
    %184 = vector.broadcast %183 : vector<4x1xf32> to vector<4x32xf32>
    %185 = arith.subf %179, %184 : vector<4x32xf32>
    %186 = arith.mulf %185, %185 : vector<4x32xf32>
    %cst_83 = arith.constant dense<0.000000e+00> : vector<4xf32>
    %187 = vector.multi_reduction <add>, %186, %cst_83 [1] : vector<4x32xf32> to vector<4xf32>
    %188 = vector.shape_cast %187 : vector<4xf32> to vector<4x1xf32>
    %cst_84 = arith.constant 3.200000e+01 : f32
    %189 = vector.broadcast %cst_84 : f32 to vector<4x1xf32>
    %190 = arith.divf %188, %189 : vector<4x1xf32>
    %cst_85 = arith.constant 9.99999974E-6 : f32
    %191 = vector.broadcast %cst_85 : f32 to vector<4x1xf32>
    %192 = arith.addf %190, %191 : vector<4x1xf32>
    %193 = math.rsqrt %192 : vector<4x1xf32>
    %194 = vector.broadcast %193 : vector<4x1xf32> to vector<4x32xf32>
    %195 = arith.mulf %185, %194 : vector<4x32xf32>
    %196 = vector.broadcast %25 : vector<1x32xf32> to vector<4x32xf32>
    %197 = arith.mulf %195, %196 : vector<4x32xf32>
    %198 = vector.broadcast %26 : vector<1x32xf32> to vector<4x32xf32>
    %199 = arith.addf %197, %198 : vector<4x32xf32>
    %200 = vector.extract_strided_slice %178 {offsets = [0, 32], sizes = [4, 32], strides = [1, 1]} : vector<4x64xf32> to vector<4x32xf32>
    %cst_86 = arith.constant dense<0.000000e+00> : vector<4xf32>
    %201 = vector.multi_reduction <add>, %200, %cst_86 [1] : vector<4x32xf32> to vector<4xf32>
    %202 = vector.shape_cast %201 : vector<4xf32> to vector<4x1xf32>
    %cst_87 = arith.constant 3.200000e+01 : f32
    %203 = vector.broadcast %cst_87 : f32 to vector<4x1xf32>
    %204 = arith.divf %202, %203 : vector<4x1xf32>
    %205 = vector.broadcast %204 : vector<4x1xf32> to vector<4x32xf32>
    %206 = arith.subf %200, %205 : vector<4x32xf32>
    %207 = arith.mulf %206, %206 : vector<4x32xf32>
    %cst_88 = arith.constant dense<0.000000e+00> : vector<4xf32>
    %208 = vector.multi_reduction <add>, %207, %cst_88 [1] : vector<4x32xf32> to vector<4xf32>
    %209 = vector.shape_cast %208 : vector<4xf32> to vector<4x1xf32>
    %cst_89 = arith.constant 3.200000e+01 : f32
    %210 = vector.broadcast %cst_89 : f32 to vector<4x1xf32>
    %211 = arith.divf %209, %210 : vector<4x1xf32>
    %cst_90 = arith.constant 9.99999974E-6 : f32
    %212 = vector.broadcast %cst_90 : f32 to vector<4x1xf32>
    %213 = arith.addf %211, %212 : vector<4x1xf32>
    %214 = math.rsqrt %213 : vector<4x1xf32>
    %215 = vector.broadcast %214 : vector<4x1xf32> to vector<4x32xf32>
    %216 = arith.mulf %206, %215 : vector<4x32xf32>
    %217 = vector.broadcast %27 : vector<1x32xf32> to vector<4x32xf32>
    %218 = arith.mulf %216, %217 : vector<4x32xf32>
    %219 = vector.broadcast %28 : vector<1x32xf32> to vector<4x32xf32>
    %220 = arith.addf %218, %219 : vector<4x32xf32>
    %cst_91 = arith.constant dense<0.000000e+00> : vector<4x32xf32>
    %221 = tpu.matmul %220, %20, %cst_91 {dimension_numbers = #tpu.dot_dimension_numbers<[1], [0], [0], [1], [0, 0, 1, 1], [], []>} : vector<4x32xf32>, vector<32x32xf32>, vector<4x32xf32> -> vector<4x32xf32>
    %cst_92 = arith.constant dense<0.000000e+00> : vector<8xf32>
    %222 = vector.multi_reduction <add>, %170, %cst_92 [1] : vector<8x32xf32> to vector<8xf32>
    %223 = vector.shape_cast %222 : vector<8xf32> to vector<8x1xf32>
    %cst_93 = arith.constant 3.200000e+01 : f32
    %224 = vector.broadcast %cst_93 : f32 to vector<8x1xf32>
    %225 = arith.divf %223, %224 : vector<8x1xf32>
    %226 = vector.broadcast %225 : vector<8x1xf32> to vector<8x32xf32>
    %227 = arith.subf %170, %226 : vector<8x32xf32>
    %228 = arith.mulf %227, %227 : vector<8x32xf32>
    %cst_94 = arith.constant dense<0.000000e+00> : vector<8xf32>
    %229 = vector.multi_reduction <add>, %228, %cst_94 [1] : vector<8x32xf32> to vector<8xf32>
    %230 = vector.shape_cast %229 : vector<8xf32> to vector<8x1xf32>
    %cst_95 = arith.constant 3.200000e+01 : f32
    %231 = vector.broadcast %cst_95 : f32 to vector<8x1xf32>
    %232 = arith.divf %230, %231 : vector<8x1xf32>
    %cst_96 = arith.constant 9.99999974E-6 : f32
    %233 = vector.broadcast %cst_96 : f32 to vector<8x1xf32>
    %234 = arith.addf %232, %233 : vector<8x1xf32>
    %235 = math.rsqrt %234 : vector<8x1xf32>
    %236 = vector.broadcast %235 : vector<8x1xf32> to vector<8x32xf32>
    %237 = arith.mulf %227, %236 : vector<8x32xf32>
    %238 = vector.broadcast %23 : vector<1x32xf32> to vector<8x32xf32>
    %239 = arith.mulf %237, %238 : vector<8x32xf32>
    %240 = vector.broadcast %24 : vector<1x32xf32> to vector<8x32xf32>
    %241 = arith.addf %239, %240 : vector<8x32xf32>
    %cst_97 = arith.constant dense<0.000000e+00> : vector<8x32xf32>
    %242 = tpu.matmul %241, %19, %cst_97 {dimension_numbers = #tpu.dot_dimension_numbers<[1], [0], [0], [1], [0, 0, 1, 1], [], []>} : vector<8x32xf32>, vector<32x32xf32>, vector<8x32xf32> -> vector<8x32xf32>
    %cst_98 = arith.constant dense<0.000000e+00> : vector<8x4xf32>
    %243 = tpu.matmul %242, %199, %cst_98 {dimension_numbers = #tpu.dot_dimension_numbers<[1], [1], [0], [0], [0, 0, 1, 0], [], []>} : vector<8x32xf32>, vector<4x32xf32>, vector<8x4xf32> -> vector<8x4xf32>
    %cst_99 = arith.constant 0.000000e+00 : f32
    %244 = vector.broadcast %cst_99 : f32 to vector<8x4xf32>
    %cst_100 = arith.constant 0.000000e+00 : f32
    %245 = vector.broadcast %cst_100 : f32 to vector<8x4xf32>
    %246 = vector.extract_strided_slice %243 {offsets = [0, 0], sizes = [8, 1], strides = [1, 1]} : vector<8x4xf32> to vector<8x1xf32>
    %247 = vector.broadcast %246 : vector<8x1xf32> to vector<8x4xf32>
    %248 = arith.cmpf oge, %247, %243 : vector<8x4xf32>
    %249 = arith.extui %248 : vector<8x4xi1> to vector<8x4xi32>
    %250 = arith.sitofp %249 : vector<8x4xi32> to vector<8x4xf32>
    %251 = arith.addf %244, %250 : vector<8x4xf32>
    %252 = vector.broadcast %246 : vector<8x1xf32> to vector<8x4xf32>
    %253 = arith.mulf %252, %250 : vector<8x4xf32>
    %254 = arith.addf %245, %253 : vector<8x4xf32>
    %255 = vector.extract_strided_slice %243 {offsets = [0, 1], sizes = [8, 1], strides = [1, 1]} : vector<8x4xf32> to vector<8x1xf32>
    %256 = vector.broadcast %255 : vector<8x1xf32> to vector<8x4xf32>
    %257 = arith.cmpf oge, %256, %243 : vector<8x4xf32>
    %258 = arith.extui %257 : vector<8x4xi1> to vector<8x4xi32>
    %259 = arith.sitofp %258 : vector<8x4xi32> to vector<8x4xf32>
    %260 = arith.addf %251, %259 : vector<8x4xf32>
    %261 = vector.broadcast %255 : vector<8x1xf32> to vector<8x4xf32>
    %262 = arith.mulf %261, %259 : vector<8x4xf32>
    %263 = arith.addf %254, %262 : vector<8x4xf32>
    %264 = vector.extract_strided_slice %243 {offsets = [0, 2], sizes = [8, 1], strides = [1, 1]} : vector<8x4xf32> to vector<8x1xf32>
    %265 = vector.broadcast %264 : vector<8x1xf32> to vector<8x4xf32>
    %266 = arith.cmpf oge, %265, %243 : vector<8x4xf32>
    %267 = arith.extui %266 : vector<8x4xi1> to vector<8x4xi32>
    %268 = arith.sitofp %267 : vector<8x4xi32> to vector<8x4xf32>
    %269 = arith.addf %260, %268 : vector<8x4xf32>
    %270 = vector.broadcast %264 : vector<8x1xf32> to vector<8x4xf32>
    %271 = arith.mulf %270, %268 : vector<8x4xf32>
    %272 = arith.addf %263, %271 : vector<8x4xf32>
    %273 = vector.extract_strided_slice %243 {offsets = [0, 3], sizes = [8, 1], strides = [1, 1]} : vector<8x4xf32> to vector<8x1xf32>
    %274 = vector.broadcast %273 : vector<8x1xf32> to vector<8x4xf32>
    %275 = arith.cmpf oge, %274, %243 : vector<8x4xf32>
    %276 = arith.extui %275 : vector<8x4xi1> to vector<8x4xi32>
    %277 = arith.sitofp %276 : vector<8x4xi32> to vector<8x4xf32>
    %278 = arith.addf %269, %277 : vector<8x4xf32>
    %279 = vector.broadcast %273 : vector<8x1xf32> to vector<8x4xf32>
    %280 = arith.mulf %279, %277 : vector<8x4xf32>
    %281 = arith.addf %272, %280 : vector<8x4xf32>
    %282 = arith.mulf %278, %243 : vector<8x4xf32>
    %cst_101 = arith.constant 1.000000e+00 : f32
    %283 = vector.broadcast %cst_101 : f32 to vector<8x4xf32>
    %284 = arith.addf %283, %282 : vector<8x4xf32>
    %285 = arith.cmpf ogt, %284, %281 : vector<8x4xf32>
    %cst_102 = arith.constant 1.000000e+00 : f32
    %286 = vector.broadcast %cst_102 : f32 to vector<8x4xf32>
    %287 = arith.subf %281, %286 : vector<8x4xf32>
    %288 = arith.divf %287, %278 : vector<8x4xf32>
    %cst_103 = arith.constant 0xFF800000 : f32
    %289 = vector.broadcast %cst_103 : f32 to vector<8x4xf32>
    %290 = arith.select %285, %288, %289 : vector<8x4xi1>, vector<8x4xf32>
    %cst_104 = arith.constant dense<0xFF800000> : vector<8xf32>
    %291 = vector.multi_reduction <maximumf>, %290, %cst_104 [1] : vector<8x4xf32> to vector<8xf32>
    %292 = vector.shape_cast %291 : vector<8xf32> to vector<8x1xf32>
    %293 = vector.broadcast %292 : vector<8x1xf32> to vector<8x4xf32>
    %294 = arith.subf %243, %293 : vector<8x4xf32>
    %cst_105 = arith.constant 0.000000e+00 : f32
    %295 = vector.broadcast %cst_105 : f32 to vector<8x4xf32>
    %296 = arith.maximumf %294, %295 : vector<8x4xf32>
    %cst_106 = arith.constant dense<0.000000e+00> : vector<8x32xf32>
    %297 = tpu.matmul %296, %221, %cst_106 {dimension_numbers = #tpu.dot_dimension_numbers<[1], [0], [0], [1], [0, 0, 1, 1], [], []>} : vector<8x4xf32>, vector<4x32xf32>, vector<8x32xf32> -> vector<8x32xf32>
    %298 = tpu.concatenate %170, %297 in 1 : vector<8x32xf32>, vector<8x32xf32> -> vector<8x64xf32>
    %cst_107 = arith.constant dense<0.000000e+00> : vector<8x32xf32>
    %299 = tpu.matmul %298, %21, %cst_107 {dimension_numbers = #tpu.dot_dimension_numbers<[1], [0], [0], [1], [0, 0, 1, 1], [], []>} : vector<8x64xf32>, vector<64x32xf32>, vector<8x32xf32> -> vector<8x32xf32>
    %300 = vector.broadcast %29 : vector<1x32xf32> to vector<8x32xf32>
    %301 = arith.addf %299, %300 : vector<8x32xf32>
    %302 = arith.negf %301 : vector<8x32xf32>
    %303 = math.exp %302 : vector<8x32xf32>
    %cst_108 = arith.constant 1.000000e+00 : f32
    %304 = vector.broadcast %cst_108 : f32 to vector<8x32xf32>
    %305 = arith.addf %304, %303 : vector<8x32xf32>
    %306 = arith.divf %304, %305 : vector<8x32xf32>
    %307 = arith.mulf %306, %170 : vector<8x32xf32>
    %cst_109 = arith.constant 1.000000e+00 : f32
    %308 = vector.broadcast %cst_109 : f32 to vector<8x32xf32>
    %309 = arith.subf %308, %306 : vector<8x32xf32>
    %310 = arith.mulf %309, %297 : vector<8x32xf32>
    %311 = arith.addf %307, %310 : vector<8x32xf32>
    %cst_110 = arith.constant dense<0.000000e+00> : vector<8xf32>
    %312 = vector.multi_reduction <add>, %311, %cst_110 [1] : vector<8x32xf32> to vector<8xf32>
    %313 = vector.shape_cast %312 : vector<8xf32> to vector<8x1xf32>
    %cst_111 = arith.constant 3.200000e+01 : f32
    %314 = vector.broadcast %cst_111 : f32 to vector<8x1xf32>
    %315 = arith.divf %313, %314 : vector<8x1xf32>
    %316 = vector.broadcast %315 : vector<8x1xf32> to vector<8x32xf32>
    %317 = arith.subf %311, %316 : vector<8x32xf32>
    %318 = arith.mulf %317, %317 : vector<8x32xf32>
    %cst_112 = arith.constant dense<0.000000e+00> : vector<8xf32>
    %319 = vector.multi_reduction <add>, %318, %cst_112 [1] : vector<8x32xf32> to vector<8xf32>
    %320 = vector.shape_cast %319 : vector<8xf32> to vector<8x1xf32>
    %cst_113 = arith.constant 3.200000e+01 : f32
    %321 = vector.broadcast %cst_113 : f32 to vector<8x1xf32>
    %322 = arith.divf %320, %321 : vector<8x1xf32>
    %cst_114 = arith.constant 9.99999974E-6 : f32
    %323 = vector.broadcast %cst_114 : f32 to vector<8x1xf32>
    %324 = arith.addf %322, %323 : vector<8x1xf32>
    %325 = math.rsqrt %324 : vector<8x1xf32>
    %326 = vector.broadcast %325 : vector<8x1xf32> to vector<8x32xf32>
    %327 = arith.mulf %317, %326 : vector<8x32xf32>
    %328 = vector.broadcast %11 : vector<1x32xf32> to vector<8x32xf32>
    %329 = arith.mulf %327, %328 : vector<8x32xf32>
    %330 = vector.broadcast %12 : vector<1x32xf32> to vector<8x32xf32>
    %331 = arith.addf %329, %330 : vector<8x32xf32>
    %cst_115 = arith.constant dense<0.000000e+00> : vector<8x32xf32>
    %332 = tpu.matmul %331, %7, %cst_115 {dimension_numbers = #tpu.dot_dimension_numbers<[1], [0], [0], [1], [0, 0, 1, 1], [], []>} : vector<8x32xf32>, vector<32x32xf32>, vector<8x32xf32> -> vector<8x32xf32>
    %cst_116 = arith.constant dense<0.000000e+00> : vector<8x4xf32>
    %333 = tpu.matmul %332, %58, %cst_116 {dimension_numbers = #tpu.dot_dimension_numbers<[1], [1], [0], [0], [0, 0, 1, 0], [], []>} : vector<8x32xf32>, vector<4x32xf32>, vector<8x4xf32> -> vector<8x4xf32>
    %cst_117 = arith.constant 0.000000e+00 : f32
    %334 = vector.broadcast %cst_117 : f32 to vector<8x4xf32>
    %cst_118 = arith.constant 0.000000e+00 : f32
    %335 = vector.broadcast %cst_118 : f32 to vector<8x4xf32>
    %336 = vector.extract_strided_slice %333 {offsets = [0, 0], sizes = [8, 1], strides = [1, 1]} : vector<8x4xf32> to vector<8x1xf32>
    %337 = vector.broadcast %336 : vector<8x1xf32> to vector<8x4xf32>
    %338 = arith.cmpf oge, %337, %333 : vector<8x4xf32>
    %339 = arith.extui %338 : vector<8x4xi1> to vector<8x4xi32>
    %340 = arith.sitofp %339 : vector<8x4xi32> to vector<8x4xf32>
    %341 = arith.addf %334, %340 : vector<8x4xf32>
    %342 = vector.broadcast %336 : vector<8x1xf32> to vector<8x4xf32>
    %343 = arith.mulf %342, %340 : vector<8x4xf32>
    %344 = arith.addf %335, %343 : vector<8x4xf32>
    %345 = vector.extract_strided_slice %333 {offsets = [0, 1], sizes = [8, 1], strides = [1, 1]} : vector<8x4xf32> to vector<8x1xf32>
    %346 = vector.broadcast %345 : vector<8x1xf32> to vector<8x4xf32>
    %347 = arith.cmpf oge, %346, %333 : vector<8x4xf32>
    %348 = arith.extui %347 : vector<8x4xi1> to vector<8x4xi32>
    %349 = arith.sitofp %348 : vector<8x4xi32> to vector<8x4xf32>
    %350 = arith.addf %341, %349 : vector<8x4xf32>
    %351 = vector.broadcast %345 : vector<8x1xf32> to vector<8x4xf32>
    %352 = arith.mulf %351, %349 : vector<8x4xf32>
    %353 = arith.addf %344, %352 : vector<8x4xf32>
    %354 = vector.extract_strided_slice %333 {offsets = [0, 2], sizes = [8, 1], strides = [1, 1]} : vector<8x4xf32> to vector<8x1xf32>
    %355 = vector.broadcast %354 : vector<8x1xf32> to vector<8x4xf32>
    %356 = arith.cmpf oge, %355, %333 : vector<8x4xf32>
    %357 = arith.extui %356 : vector<8x4xi1> to vector<8x4xi32>
    %358 = arith.sitofp %357 : vector<8x4xi32> to vector<8x4xf32>
    %359 = arith.addf %350, %358 : vector<8x4xf32>
    %360 = vector.broadcast %354 : vector<8x1xf32> to vector<8x4xf32>
    %361 = arith.mulf %360, %358 : vector<8x4xf32>
    %362 = arith.addf %353, %361 : vector<8x4xf32>
    %363 = vector.extract_strided_slice %333 {offsets = [0, 3], sizes = [8, 1], strides = [1, 1]} : vector<8x4xf32> to vector<8x1xf32>
    %364 = vector.broadcast %363 : vector<8x1xf32> to vector<8x4xf32>
    %365 = arith.cmpf oge, %364, %333 : vector<8x4xf32>
    %366 = arith.extui %365 : vector<8x4xi1> to vector<8x4xi32>
    %367 = arith.sitofp %366 : vector<8x4xi32> to vector<8x4xf32>
    %368 = arith.addf %359, %367 : vector<8x4xf32>
    %369 = vector.broadcast %363 : vector<8x1xf32> to vector<8x4xf32>
    %370 = arith.mulf %369, %367 : vector<8x4xf32>
    %371 = arith.addf %362, %370 : vector<8x4xf32>
    %372 = arith.mulf %368, %333 : vector<8x4xf32>
    %cst_119 = arith.constant 1.000000e+00 : f32
    %373 = vector.broadcast %cst_119 : f32 to vector<8x4xf32>
    %374 = arith.addf %373, %372 : vector<8x4xf32>
    %375 = arith.cmpf ogt, %374, %371 : vector<8x4xf32>
    %cst_120 = arith.constant 1.000000e+00 : f32
    %376 = vector.broadcast %cst_120 : f32 to vector<8x4xf32>
    %377 = arith.subf %371, %376 : vector<8x4xf32>
    %378 = arith.divf %377, %368 : vector<8x4xf32>
    %cst_121 = arith.constant 0xFF800000 : f32
    %379 = vector.broadcast %cst_121 : f32 to vector<8x4xf32>
    %380 = arith.select %375, %378, %379 : vector<8x4xi1>, vector<8x4xf32>
    %cst_122 = arith.constant dense<0xFF800000> : vector<8xf32>
    %381 = vector.multi_reduction <maximumf>, %380, %cst_122 [1] : vector<8x4xf32> to vector<8xf32>
    %382 = vector.shape_cast %381 : vector<8xf32> to vector<8x1xf32>
    %383 = vector.broadcast %382 : vector<8x1xf32> to vector<8x4xf32>
    %384 = arith.subf %333, %383 : vector<8x4xf32>
    %cst_123 = arith.constant 0.000000e+00 : f32
    %385 = vector.broadcast %cst_123 : f32 to vector<8x4xf32>
    %386 = arith.maximumf %384, %385 : vector<8x4xf32>
    %cst_124 = arith.constant dense<0.000000e+00> : vector<8x32xf32>
    %387 = tpu.matmul %386, %80, %cst_124 {dimension_numbers = #tpu.dot_dimension_numbers<[1], [0], [0], [1], [0, 0, 1, 1], [], []>} : vector<8x4xf32>, vector<4x32xf32>, vector<8x32xf32> -> vector<8x32xf32>
    %388 = tpu.concatenate %311, %387 in 1 : vector<8x32xf32>, vector<8x32xf32> -> vector<8x64xf32>
    %cst_125 = arith.constant dense<0.000000e+00> : vector<8x32xf32>
    %389 = tpu.matmul %388, %9, %cst_125 {dimension_numbers = #tpu.dot_dimension_numbers<[1], [0], [0], [1], [0, 0, 1, 1], [], []>} : vector<8x64xf32>, vector<64x32xf32>, vector<8x32xf32> -> vector<8x32xf32>
    %390 = vector.broadcast %17 : vector<1x32xf32> to vector<8x32xf32>
    %391 = arith.addf %389, %390 : vector<8x32xf32>
    %392 = arith.negf %391 : vector<8x32xf32>
    %393 = math.exp %392 : vector<8x32xf32>
    %cst_126 = arith.constant 1.000000e+00 : f32
    %394 = vector.broadcast %cst_126 : f32 to vector<8x32xf32>
    %395 = arith.addf %394, %393 : vector<8x32xf32>
    %396 = arith.divf %394, %395 : vector<8x32xf32>
    %397 = arith.mulf %396, %311 : vector<8x32xf32>
    %cst_127 = arith.constant 1.000000e+00 : f32
    %398 = vector.broadcast %cst_127 : f32 to vector<8x32xf32>
    %399 = arith.subf %398, %396 : vector<8x32xf32>
    %400 = arith.mulf %399, %387 : vector<8x32xf32>
    %401 = arith.addf %397, %400 : vector<8x32xf32>
    %cst_128 = arith.constant dense<0.000000e+00> : vector<8x64xf32>
    %402 = tpu.matmul %401, %18, %cst_128 {dimension_numbers = #tpu.dot_dimension_numbers<[1], [0], [0], [1], [0, 0, 1, 1], [], []>} : vector<8x32xf32>, vector<32x64xf32>, vector<8x64xf32> -> vector<8x64xf32>
    %cst_129 = arith.constant dense<0.000000e+00> : vector<4xf32>
    %403 = vector.multi_reduction <add>, %5, %cst_129 [1] : vector<4x8xf32> to vector<4xf32>
    %404 = vector.shape_cast %403 : vector<4xf32> to vector<4x1xf32>
    %cst_130 = arith.constant dense<0.000000e+00> : vector<4x64xf32>
    %405 = tpu.matmul %5, %402, %cst_130 {dimension_numbers = #tpu.dot_dimension_numbers<[1], [0], [0], [1], [0, 0, 1, 1], [], []>} : vector<4x8xf32>, vector<8x64xf32>, vector<4x64xf32> -> vector<4x64xf32>
    %406 = vector.broadcast %22 : vector<1x64xf32> to vector<4x64xf32>
    %407 = vector.broadcast %404 : vector<4x1xf32> to vector<4x64xf32>
    %408 = arith.mulf %406, %407 : vector<4x64xf32>
    %409 = arith.addf %405, %408 : vector<4x64xf32>
    %410 = vector.extract_strided_slice %409 {offsets = [0, 0], sizes = [4, 32], strides = [1, 1]} : vector<4x64xf32> to vector<4x32xf32>
    %cst_131 = arith.constant dense<0.000000e+00> : vector<4xf32>
    %411 = vector.multi_reduction <add>, %410, %cst_131 [1] : vector<4x32xf32> to vector<4xf32>
    %412 = vector.shape_cast %411 : vector<4xf32> to vector<4x1xf32>
    %cst_132 = arith.constant 3.200000e+01 : f32
    %413 = vector.broadcast %cst_132 : f32 to vector<4x1xf32>
    %414 = arith.divf %412, %413 : vector<4x1xf32>
    %415 = vector.broadcast %414 : vector<4x1xf32> to vector<4x32xf32>
    %416 = arith.subf %410, %415 : vector<4x32xf32>
    %417 = arith.mulf %416, %416 : vector<4x32xf32>
    %cst_133 = arith.constant dense<0.000000e+00> : vector<4xf32>
    %418 = vector.multi_reduction <add>, %417, %cst_133 [1] : vector<4x32xf32> to vector<4xf32>
    %419 = vector.shape_cast %418 : vector<4xf32> to vector<4x1xf32>
    %cst_134 = arith.constant 3.200000e+01 : f32
    %420 = vector.broadcast %cst_134 : f32 to vector<4x1xf32>
    %421 = arith.divf %419, %420 : vector<4x1xf32>
    %cst_135 = arith.constant 9.99999974E-6 : f32
    %422 = vector.broadcast %cst_135 : f32 to vector<4x1xf32>
    %423 = arith.addf %421, %422 : vector<4x1xf32>
    %424 = math.rsqrt %423 : vector<4x1xf32>
    %425 = vector.broadcast %424 : vector<4x1xf32> to vector<4x32xf32>
    %426 = arith.mulf %416, %425 : vector<4x32xf32>
    %427 = vector.broadcast %25 : vector<1x32xf32> to vector<4x32xf32>
    %428 = arith.mulf %426, %427 : vector<4x32xf32>
    %429 = vector.broadcast %26 : vector<1x32xf32> to vector<4x32xf32>
    %430 = arith.addf %428, %429 : vector<4x32xf32>
    %431 = vector.extract_strided_slice %409 {offsets = [0, 32], sizes = [4, 32], strides = [1, 1]} : vector<4x64xf32> to vector<4x32xf32>
    %cst_136 = arith.constant dense<0.000000e+00> : vector<4xf32>
    %432 = vector.multi_reduction <add>, %431, %cst_136 [1] : vector<4x32xf32> to vector<4xf32>
    %433 = vector.shape_cast %432 : vector<4xf32> to vector<4x1xf32>
    %cst_137 = arith.constant 3.200000e+01 : f32
    %434 = vector.broadcast %cst_137 : f32 to vector<4x1xf32>
    %435 = arith.divf %433, %434 : vector<4x1xf32>
    %436 = vector.broadcast %435 : vector<4x1xf32> to vector<4x32xf32>
    %437 = arith.subf %431, %436 : vector<4x32xf32>
    %438 = arith.mulf %437, %437 : vector<4x32xf32>
    %cst_138 = arith.constant dense<0.000000e+00> : vector<4xf32>
    %439 = vector.multi_reduction <add>, %438, %cst_138 [1] : vector<4x32xf32> to vector<4xf32>
    %440 = vector.shape_cast %439 : vector<4xf32> to vector<4x1xf32>
    %cst_139 = arith.constant 3.200000e+01 : f32
    %441 = vector.broadcast %cst_139 : f32 to vector<4x1xf32>
    %442 = arith.divf %440, %441 : vector<4x1xf32>
    %cst_140 = arith.constant 9.99999974E-6 : f32
    %443 = vector.broadcast %cst_140 : f32 to vector<4x1xf32>
    %444 = arith.addf %442, %443 : vector<4x1xf32>
    %445 = math.rsqrt %444 : vector<4x1xf32>
    %446 = vector.broadcast %445 : vector<4x1xf32> to vector<4x32xf32>
    %447 = arith.mulf %437, %446 : vector<4x32xf32>
    %448 = vector.broadcast %27 : vector<1x32xf32> to vector<4x32xf32>
    %449 = arith.mulf %447, %448 : vector<4x32xf32>
    %450 = vector.broadcast %28 : vector<1x32xf32> to vector<4x32xf32>
    %451 = arith.addf %449, %450 : vector<4x32xf32>
    %cst_141 = arith.constant dense<0.000000e+00> : vector<4x32xf32>
    %452 = tpu.matmul %451, %20, %cst_141 {dimension_numbers = #tpu.dot_dimension_numbers<[1], [0], [0], [1], [0, 0, 1, 1], [], []>} : vector<4x32xf32>, vector<32x32xf32>, vector<4x32xf32> -> vector<4x32xf32>
    %cst_142 = arith.constant dense<0.000000e+00> : vector<8xf32>
    %453 = vector.multi_reduction <add>, %401, %cst_142 [1] : vector<8x32xf32> to vector<8xf32>
    %454 = vector.shape_cast %453 : vector<8xf32> to vector<8x1xf32>
    %cst_143 = arith.constant 3.200000e+01 : f32
    %455 = vector.broadcast %cst_143 : f32 to vector<8x1xf32>
    %456 = arith.divf %454, %455 : vector<8x1xf32>
    %457 = vector.broadcast %456 : vector<8x1xf32> to vector<8x32xf32>
    %458 = arith.subf %401, %457 : vector<8x32xf32>
    %459 = arith.mulf %458, %458 : vector<8x32xf32>
    %cst_144 = arith.constant dense<0.000000e+00> : vector<8xf32>
    %460 = vector.multi_reduction <add>, %459, %cst_144 [1] : vector<8x32xf32> to vector<8xf32>
    %461 = vector.shape_cast %460 : vector<8xf32> to vector<8x1xf32>
    %cst_145 = arith.constant 3.200000e+01 : f32
    %462 = vector.broadcast %cst_145 : f32 to vector<8x1xf32>
    %463 = arith.divf %461, %462 : vector<8x1xf32>
    %cst_146 = arith.constant 9.99999974E-6 : f32
    %464 = vector.broadcast %cst_146 : f32 to vector<8x1xf32>
    %465 = arith.addf %463, %464 : vector<8x1xf32>
    %466 = math.rsqrt %465 : vector<8x1xf32>
    %467 = vector.broadcast %466 : vector<8x1xf32> to vector<8x32xf32>
    %468 = arith.mulf %458, %467 : vector<8x32xf32>
    %469 = vector.broadcast %23 : vector<1x32xf32> to vector<8x32xf32>
    %470 = arith.mulf %468, %469 : vector<8x32xf32>
    %471 = vector.broadcast %24 : vector<1x32xf32> to vector<8x32xf32>
    %472 = arith.addf %470, %471 : vector<8x32xf32>
    %cst_147 = arith.constant dense<0.000000e+00> : vector<8x32xf32>
    %473 = tpu.matmul %472, %19, %cst_147 {dimension_numbers = #tpu.dot_dimension_numbers<[1], [0], [0], [1], [0, 0, 1, 1], [], []>} : vector<8x32xf32>, vector<32x32xf32>, vector<8x32xf32> -> vector<8x32xf32>
    %cst_148 = arith.constant dense<0.000000e+00> : vector<8x4xf32>
    %474 = tpu.matmul %473, %430, %cst_148 {dimension_numbers = #tpu.dot_dimension_numbers<[1], [1], [0], [0], [0, 0, 1, 0], [], []>} : vector<8x32xf32>, vector<4x32xf32>, vector<8x4xf32> -> vector<8x4xf32>
    %cst_149 = arith.constant 0.000000e+00 : f32
    %475 = vector.broadcast %cst_149 : f32 to vector<8x4xf32>
    %cst_150 = arith.constant 0.000000e+00 : f32
    %476 = vector.broadcast %cst_150 : f32 to vector<8x4xf32>
    %477 = vector.extract_strided_slice %474 {offsets = [0, 0], sizes = [8, 1], strides = [1, 1]} : vector<8x4xf32> to vector<8x1xf32>
    %478 = vector.broadcast %477 : vector<8x1xf32> to vector<8x4xf32>
    %479 = arith.cmpf oge, %478, %474 : vector<8x4xf32>
    %480 = arith.extui %479 : vector<8x4xi1> to vector<8x4xi32>
    %481 = arith.sitofp %480 : vector<8x4xi32> to vector<8x4xf32>
    %482 = arith.addf %475, %481 : vector<8x4xf32>
    %483 = vector.broadcast %477 : vector<8x1xf32> to vector<8x4xf32>
    %484 = arith.mulf %483, %481 : vector<8x4xf32>
    %485 = arith.addf %476, %484 : vector<8x4xf32>
    %486 = vector.extract_strided_slice %474 {offsets = [0, 1], sizes = [8, 1], strides = [1, 1]} : vector<8x4xf32> to vector<8x1xf32>
    %487 = vector.broadcast %486 : vector<8x1xf32> to vector<8x4xf32>
    %488 = arith.cmpf oge, %487, %474 : vector<8x4xf32>
    %489 = arith.extui %488 : vector<8x4xi1> to vector<8x4xi32>
    %490 = arith.sitofp %489 : vector<8x4xi32> to vector<8x4xf32>
    %491 = arith.addf %482, %490 : vector<8x4xf32>
    %492 = vector.broadcast %486 : vector<8x1xf32> to vector<8x4xf32>
    %493 = arith.mulf %492, %490 : vector<8x4xf32>
    %494 = arith.addf %485, %493 : vector<8x4xf32>
    %495 = vector.extract_strided_slice %474 {offsets = [0, 2], sizes = [8, 1], strides = [1, 1]} : vector<8x4xf32> to vector<8x1xf32>
    %496 = vector.broadcast %495 : vector<8x1xf32> to vector<8x4xf32>
    %497 = arith.cmpf oge, %496, %474 : vector<8x4xf32>
    %498 = arith.extui %497 : vector<8x4xi1> to vector<8x4xi32>
    %499 = arith.sitofp %498 : vector<8x4xi32> to vector<8x4xf32>
    %500 = arith.addf %491, %499 : vector<8x4xf32>
    %501 = vector.broadcast %495 : vector<8x1xf32> to vector<8x4xf32>
    %502 = arith.mulf %501, %499 : vector<8x4xf32>
    %503 = arith.addf %494, %502 : vector<8x4xf32>
    %504 = vector.extract_strided_slice %474 {offsets = [0, 3], sizes = [8, 1], strides = [1, 1]} : vector<8x4xf32> to vector<8x1xf32>
    %505 = vector.broadcast %504 : vector<8x1xf32> to vector<8x4xf32>
    %506 = arith.cmpf oge, %505, %474 : vector<8x4xf32>
    %507 = arith.extui %506 : vector<8x4xi1> to vector<8x4xi32>
    %508 = arith.sitofp %507 : vector<8x4xi32> to vector<8x4xf32>
    %509 = arith.addf %500, %508 : vector<8x4xf32>
    %510 = vector.broadcast %504 : vector<8x1xf32> to vector<8x4xf32>
    %511 = arith.mulf %510, %508 : vector<8x4xf32>
    %512 = arith.addf %503, %511 : vector<8x4xf32>
    %513 = arith.mulf %509, %474 : vector<8x4xf32>
    %cst_151 = arith.constant 1.000000e+00 : f32
    %514 = vector.broadcast %cst_151 : f32 to vector<8x4xf32>
    %515 = arith.addf %514, %513 : vector<8x4xf32>
    %516 = arith.cmpf ogt, %515, %512 : vector<8x4xf32>
    %cst_152 = arith.constant 1.000000e+00 : f32
    %517 = vector.broadcast %cst_152 : f32 to vector<8x4xf32>
    %518 = arith.subf %512, %517 : vector<8x4xf32>
    %519 = arith.divf %518, %509 : vector<8x4xf32>
    %cst_153 = arith.constant 0xFF800000 : f32
    %520 = vector.broadcast %cst_153 : f32 to vector<8x4xf32>
    %521 = arith.select %516, %519, %520 : vector<8x4xi1>, vector<8x4xf32>
    %cst_154 = arith.constant dense<0xFF800000> : vector<8xf32>
    %522 = vector.multi_reduction <maximumf>, %521, %cst_154 [1] : vector<8x4xf32> to vector<8xf32>
    %523 = vector.shape_cast %522 : vector<8xf32> to vector<8x1xf32>
    %524 = vector.broadcast %523 : vector<8x1xf32> to vector<8x4xf32>
    %525 = arith.subf %474, %524 : vector<8x4xf32>
    %cst_155 = arith.constant 0.000000e+00 : f32
    %526 = vector.broadcast %cst_155 : f32 to vector<8x4xf32>
    %527 = arith.maximumf %525, %526 : vector<8x4xf32>
    %cst_156 = arith.constant dense<0.000000e+00> : vector<8x32xf32>
    %528 = tpu.matmul %527, %452, %cst_156 {dimension_numbers = #tpu.dot_dimension_numbers<[1], [0], [0], [1], [0, 0, 1, 1], [], []>} : vector<8x4xf32>, vector<4x32xf32>, vector<8x32xf32> -> vector<8x32xf32>
    %529 = tpu.concatenate %401, %528 in 1 : vector<8x32xf32>, vector<8x32xf32> -> vector<8x64xf32>
    %cst_157 = arith.constant dense<0.000000e+00> : vector<8x32xf32>
    %530 = tpu.matmul %529, %21, %cst_157 {dimension_numbers = #tpu.dot_dimension_numbers<[1], [0], [0], [1], [0, 0, 1, 1], [], []>} : vector<8x64xf32>, vector<64x32xf32>, vector<8x32xf32> -> vector<8x32xf32>
    %531 = vector.broadcast %29 : vector<1x32xf32> to vector<8x32xf32>
    %532 = arith.addf %530, %531 : vector<8x32xf32>
    %533 = arith.negf %532 : vector<8x32xf32>
    %534 = math.exp %533 : vector<8x32xf32>
    %cst_158 = arith.constant 1.000000e+00 : f32
    %535 = vector.broadcast %cst_158 : f32 to vector<8x32xf32>
    %536 = arith.addf %535, %534 : vector<8x32xf32>
    %537 = arith.divf %535, %536 : vector<8x32xf32>
    %538 = arith.mulf %537, %401 : vector<8x32xf32>
    %cst_159 = arith.constant 1.000000e+00 : f32
    %539 = vector.broadcast %cst_159 : f32 to vector<8x32xf32>
    %540 = arith.subf %539, %537 : vector<8x32xf32>
    %541 = arith.mulf %540, %528 : vector<8x32xf32>
    %542 = arith.addf %538, %541 : vector<8x32xf32>
    %cst_160 = arith.constant dense<0.000000e+00> : vector<8xf32>
    %543 = vector.multi_reduction <add>, %542, %cst_160 [1] : vector<8x32xf32> to vector<8xf32>
    %544 = vector.shape_cast %543 : vector<8xf32> to vector<8x1xf32>
    %cst_161 = arith.constant 3.200000e+01 : f32
    %545 = vector.broadcast %cst_161 : f32 to vector<8x1xf32>
    %546 = arith.divf %544, %545 : vector<8x1xf32>
    %547 = vector.broadcast %546 : vector<8x1xf32> to vector<8x32xf32>
    %548 = arith.subf %542, %547 : vector<8x32xf32>
    %549 = arith.mulf %548, %548 : vector<8x32xf32>
    %cst_162 = arith.constant dense<0.000000e+00> : vector<8xf32>
    %550 = vector.multi_reduction <add>, %549, %cst_162 [1] : vector<8x32xf32> to vector<8xf32>
    %551 = vector.shape_cast %550 : vector<8xf32> to vector<8x1xf32>
    %cst_163 = arith.constant 3.200000e+01 : f32
    %552 = vector.broadcast %cst_163 : f32 to vector<8x1xf32>
    %553 = arith.divf %551, %552 : vector<8x1xf32>
    %cst_164 = arith.constant 9.99999974E-6 : f32
    %554 = vector.broadcast %cst_164 : f32 to vector<8x1xf32>
    %555 = arith.addf %553, %554 : vector<8x1xf32>
    %556 = math.rsqrt %555 : vector<8x1xf32>
    %557 = vector.broadcast %556 : vector<8x1xf32> to vector<8x32xf32>
    %558 = arith.mulf %548, %557 : vector<8x32xf32>
    %559 = vector.broadcast %11 : vector<1x32xf32> to vector<8x32xf32>
    %560 = arith.mulf %558, %559 : vector<8x32xf32>
    %561 = vector.broadcast %12 : vector<1x32xf32> to vector<8x32xf32>
    %562 = arith.addf %560, %561 : vector<8x32xf32>
    %cst_165 = arith.constant dense<0.000000e+00> : vector<8x32xf32>
    %563 = tpu.matmul %562, %7, %cst_165 {dimension_numbers = #tpu.dot_dimension_numbers<[1], [0], [0], [1], [0, 0, 1, 1], [], []>} : vector<8x32xf32>, vector<32x32xf32>, vector<8x32xf32> -> vector<8x32xf32>
    %cst_166 = arith.constant dense<0.000000e+00> : vector<8x4xf32>
    %564 = tpu.matmul %563, %58, %cst_166 {dimension_numbers = #tpu.dot_dimension_numbers<[1], [1], [0], [0], [0, 0, 1, 0], [], []>} : vector<8x32xf32>, vector<4x32xf32>, vector<8x4xf32> -> vector<8x4xf32>
    %cst_167 = arith.constant 0.000000e+00 : f32
    %565 = vector.broadcast %cst_167 : f32 to vector<8x4xf32>
    %cst_168 = arith.constant 0.000000e+00 : f32
    %566 = vector.broadcast %cst_168 : f32 to vector<8x4xf32>
    %567 = vector.extract_strided_slice %564 {offsets = [0, 0], sizes = [8, 1], strides = [1, 1]} : vector<8x4xf32> to vector<8x1xf32>
    %568 = vector.broadcast %567 : vector<8x1xf32> to vector<8x4xf32>
    %569 = arith.cmpf oge, %568, %564 : vector<8x4xf32>
    %570 = arith.extui %569 : vector<8x4xi1> to vector<8x4xi32>
    %571 = arith.sitofp %570 : vector<8x4xi32> to vector<8x4xf32>
    %572 = arith.addf %565, %571 : vector<8x4xf32>
    %573 = vector.broadcast %567 : vector<8x1xf32> to vector<8x4xf32>
    %574 = arith.mulf %573, %571 : vector<8x4xf32>
    %575 = arith.addf %566, %574 : vector<8x4xf32>
    %576 = vector.extract_strided_slice %564 {offsets = [0, 1], sizes = [8, 1], strides = [1, 1]} : vector<8x4xf32> to vector<8x1xf32>
    %577 = vector.broadcast %576 : vector<8x1xf32> to vector<8x4xf32>
    %578 = arith.cmpf oge, %577, %564 : vector<8x4xf32>
    %579 = arith.extui %578 : vector<8x4xi1> to vector<8x4xi32>
    %580 = arith.sitofp %579 : vector<8x4xi32> to vector<8x4xf32>
    %581 = arith.addf %572, %580 : vector<8x4xf32>
    %582 = vector.broadcast %576 : vector<8x1xf32> to vector<8x4xf32>
    %583 = arith.mulf %582, %580 : vector<8x4xf32>
    %584 = arith.addf %575, %583 : vector<8x4xf32>
    %585 = vector.extract_strided_slice %564 {offsets = [0, 2], sizes = [8, 1], strides = [1, 1]} : vector<8x4xf32> to vector<8x1xf32>
    %586 = vector.broadcast %585 : vector<8x1xf32> to vector<8x4xf32>
    %587 = arith.cmpf oge, %586, %564 : vector<8x4xf32>
    %588 = arith.extui %587 : vector<8x4xi1> to vector<8x4xi32>
    %589 = arith.sitofp %588 : vector<8x4xi32> to vector<8x4xf32>
    %590 = arith.addf %581, %589 : vector<8x4xf32>
    %591 = vector.broadcast %585 : vector<8x1xf32> to vector<8x4xf32>
    %592 = arith.mulf %591, %589 : vector<8x4xf32>
    %593 = arith.addf %584, %592 : vector<8x4xf32>
    %594 = vector.extract_strided_slice %564 {offsets = [0, 3], sizes = [8, 1], strides = [1, 1]} : vector<8x4xf32> to vector<8x1xf32>
    %595 = vector.broadcast %594 : vector<8x1xf32> to vector<8x4xf32>
    %596 = arith.cmpf oge, %595, %564 : vector<8x4xf32>
    %597 = arith.extui %596 : vector<8x4xi1> to vector<8x4xi32>
    %598 = arith.sitofp %597 : vector<8x4xi32> to vector<8x4xf32>
    %599 = arith.addf %590, %598 : vector<8x4xf32>
    %600 = vector.broadcast %594 : vector<8x1xf32> to vector<8x4xf32>
    %601 = arith.mulf %600, %598 : vector<8x4xf32>
    %602 = arith.addf %593, %601 : vector<8x4xf32>
    %603 = arith.mulf %599, %564 : vector<8x4xf32>
    %cst_169 = arith.constant 1.000000e+00 : f32
    %604 = vector.broadcast %cst_169 : f32 to vector<8x4xf32>
    %605 = arith.addf %604, %603 : vector<8x4xf32>
    %606 = arith.cmpf ogt, %605, %602 : vector<8x4xf32>
    %cst_170 = arith.constant 1.000000e+00 : f32
    %607 = vector.broadcast %cst_170 : f32 to vector<8x4xf32>
    %608 = arith.subf %602, %607 : vector<8x4xf32>
    %609 = arith.divf %608, %599 : vector<8x4xf32>
    %cst_171 = arith.constant 0xFF800000 : f32
    %610 = vector.broadcast %cst_171 : f32 to vector<8x4xf32>
    %611 = arith.select %606, %609, %610 : vector<8x4xi1>, vector<8x4xf32>
    %cst_172 = arith.constant dense<0xFF800000> : vector<8xf32>
    %612 = vector.multi_reduction <maximumf>, %611, %cst_172 [1] : vector<8x4xf32> to vector<8xf32>
    %613 = vector.shape_cast %612 : vector<8xf32> to vector<8x1xf32>
    %614 = vector.broadcast %613 : vector<8x1xf32> to vector<8x4xf32>
    %615 = arith.subf %564, %614 : vector<8x4xf32>
    %cst_173 = arith.constant 0.000000e+00 : f32
    %616 = vector.broadcast %cst_173 : f32 to vector<8x4xf32>
    %617 = arith.maximumf %615, %616 : vector<8x4xf32>
    %cst_174 = arith.constant dense<0.000000e+00> : vector<8x32xf32>
    %618 = tpu.matmul %617, %80, %cst_174 {dimension_numbers = #tpu.dot_dimension_numbers<[1], [0], [0], [1], [0, 0, 1, 1], [], []>} : vector<8x4xf32>, vector<4x32xf32>, vector<8x32xf32> -> vector<8x32xf32>
    %619 = tpu.concatenate %542, %618 in 1 : vector<8x32xf32>, vector<8x32xf32> -> vector<8x64xf32>
    %cst_175 = arith.constant dense<0.000000e+00> : vector<8x32xf32>
    %620 = tpu.matmul %619, %9, %cst_175 {dimension_numbers = #tpu.dot_dimension_numbers<[1], [0], [0], [1], [0, 0, 1, 1], [], []>} : vector<8x64xf32>, vector<64x32xf32>, vector<8x32xf32> -> vector<8x32xf32>
    %621 = vector.broadcast %17 : vector<1x32xf32> to vector<8x32xf32>
    %622 = arith.addf %620, %621 : vector<8x32xf32>
    %623 = arith.negf %622 : vector<8x32xf32>
    %624 = math.exp %623 : vector<8x32xf32>
    %cst_176 = arith.constant 1.000000e+00 : f32
    %625 = vector.broadcast %cst_176 : f32 to vector<8x32xf32>
    %626 = arith.addf %625, %624 : vector<8x32xf32>
    %627 = arith.divf %625, %626 : vector<8x32xf32>
    %628 = arith.mulf %627, %542 : vector<8x32xf32>
    %cst_177 = arith.constant 1.000000e+00 : f32
    %629 = vector.broadcast %cst_177 : f32 to vector<8x32xf32>
    %630 = arith.subf %629, %627 : vector<8x32xf32>
    %631 = arith.mulf %630, %618 : vector<8x32xf32>
    %632 = arith.addf %628, %631 : vector<8x32xf32>
    %cst_178 = arith.constant dense<0.000000e+00> : vector<8x64xf32>
    %633 = tpu.matmul %632, %18, %cst_178 {dimension_numbers = #tpu.dot_dimension_numbers<[1], [0], [0], [1], [0, 0, 1, 1], [], []>} : vector<8x32xf32>, vector<32x64xf32>, vector<8x64xf32> -> vector<8x64xf32>
    %cst_179 = arith.constant dense<0.000000e+00> : vector<4xf32>
    %634 = vector.multi_reduction <add>, %5, %cst_179 [1] : vector<4x8xf32> to vector<4xf32>
    %635 = vector.shape_cast %634 : vector<4xf32> to vector<4x1xf32>
    %cst_180 = arith.constant dense<0.000000e+00> : vector<4x64xf32>
    %636 = tpu.matmul %5, %633, %cst_180 {dimension_numbers = #tpu.dot_dimension_numbers<[1], [0], [0], [1], [0, 0, 1, 1], [], []>} : vector<4x8xf32>, vector<8x64xf32>, vector<4x64xf32> -> vector<4x64xf32>
    %637 = vector.broadcast %22 : vector<1x64xf32> to vector<4x64xf32>
    %638 = vector.broadcast %635 : vector<4x1xf32> to vector<4x64xf32>
    %639 = arith.mulf %637, %638 : vector<4x64xf32>
    %640 = arith.addf %636, %639 : vector<4x64xf32>
    %641 = vector.extract_strided_slice %640 {offsets = [0, 0], sizes = [4, 32], strides = [1, 1]} : vector<4x64xf32> to vector<4x32xf32>
    %cst_181 = arith.constant dense<0.000000e+00> : vector<4xf32>
    %642 = vector.multi_reduction <add>, %641, %cst_181 [1] : vector<4x32xf32> to vector<4xf32>
    %643 = vector.shape_cast %642 : vector<4xf32> to vector<4x1xf32>
    %cst_182 = arith.constant 3.200000e+01 : f32
    %644 = vector.broadcast %cst_182 : f32 to vector<4x1xf32>
    %645 = arith.divf %643, %644 : vector<4x1xf32>
    %646 = vector.broadcast %645 : vector<4x1xf32> to vector<4x32xf32>
    %647 = arith.subf %641, %646 : vector<4x32xf32>
    %648 = arith.mulf %647, %647 : vector<4x32xf32>
    %cst_183 = arith.constant dense<0.000000e+00> : vector<4xf32>
    %649 = vector.multi_reduction <add>, %648, %cst_183 [1] : vector<4x32xf32> to vector<4xf32>
    %650 = vector.shape_cast %649 : vector<4xf32> to vector<4x1xf32>
    %cst_184 = arith.constant 3.200000e+01 : f32
    %651 = vector.broadcast %cst_184 : f32 to vector<4x1xf32>
    %652 = arith.divf %650, %651 : vector<4x1xf32>
    %cst_185 = arith.constant 9.99999974E-6 : f32
    %653 = vector.broadcast %cst_185 : f32 to vector<4x1xf32>
    %654 = arith.addf %652, %653 : vector<4x1xf32>
    %655 = math.rsqrt %654 : vector<4x1xf32>
    %656 = vector.broadcast %655 : vector<4x1xf32> to vector<4x32xf32>
    %657 = arith.mulf %647, %656 : vector<4x32xf32>
    %658 = vector.broadcast %25 : vector<1x32xf32> to vector<4x32xf32>
    %659 = arith.mulf %657, %658 : vector<4x32xf32>
    %660 = vector.broadcast %26 : vector<1x32xf32> to vector<4x32xf32>
    %661 = arith.addf %659, %660 : vector<4x32xf32>
    %662 = vector.extract_strided_slice %640 {offsets = [0, 32], sizes = [4, 32], strides = [1, 1]} : vector<4x64xf32> to vector<4x32xf32>
    %cst_186 = arith.constant dense<0.000000e+00> : vector<4xf32>
    %663 = vector.multi_reduction <add>, %662, %cst_186 [1] : vector<4x32xf32> to vector<4xf32>
    %664 = vector.shape_cast %663 : vector<4xf32> to vector<4x1xf32>
    %cst_187 = arith.constant 3.200000e+01 : f32
    %665 = vector.broadcast %cst_187 : f32 to vector<4x1xf32>
    %666 = arith.divf %664, %665 : vector<4x1xf32>
    %667 = vector.broadcast %666 : vector<4x1xf32> to vector<4x32xf32>
    %668 = arith.subf %662, %667 : vector<4x32xf32>
    %669 = arith.mulf %668, %668 : vector<4x32xf32>
    %cst_188 = arith.constant dense<0.000000e+00> : vector<4xf32>
    %670 = vector.multi_reduction <add>, %669, %cst_188 [1] : vector<4x32xf32> to vector<4xf32>
    %671 = vector.shape_cast %670 : vector<4xf32> to vector<4x1xf32>
    %cst_189 = arith.constant 3.200000e+01 : f32
    %672 = vector.broadcast %cst_189 : f32 to vector<4x1xf32>
    %673 = arith.divf %671, %672 : vector<4x1xf32>
    %cst_190 = arith.constant 9.99999974E-6 : f32
    %674 = vector.broadcast %cst_190 : f32 to vector<4x1xf32>
    %675 = arith.addf %673, %674 : vector<4x1xf32>
    %676 = math.rsqrt %675 : vector<4x1xf32>
    %677 = vector.broadcast %676 : vector<4x1xf32> to vector<4x32xf32>
    %678 = arith.mulf %668, %677 : vector<4x32xf32>
    %679 = vector.broadcast %27 : vector<1x32xf32> to vector<4x32xf32>
    %680 = arith.mulf %678, %679 : vector<4x32xf32>
    %681 = vector.broadcast %28 : vector<1x32xf32> to vector<4x32xf32>
    %682 = arith.addf %680, %681 : vector<4x32xf32>
    %cst_191 = arith.constant dense<0.000000e+00> : vector<4x32xf32>
    %683 = tpu.matmul %682, %20, %cst_191 {dimension_numbers = #tpu.dot_dimension_numbers<[1], [0], [0], [1], [0, 0, 1, 1], [], []>} : vector<4x32xf32>, vector<32x32xf32>, vector<4x32xf32> -> vector<4x32xf32>
    %cst_192 = arith.constant dense<0.000000e+00> : vector<8xf32>
    %684 = vector.multi_reduction <add>, %632, %cst_192 [1] : vector<8x32xf32> to vector<8xf32>
    %685 = vector.shape_cast %684 : vector<8xf32> to vector<8x1xf32>
    %cst_193 = arith.constant 3.200000e+01 : f32
    %686 = vector.broadcast %cst_193 : f32 to vector<8x1xf32>
    %687 = arith.divf %685, %686 : vector<8x1xf32>
    %688 = vector.broadcast %687 : vector<8x1xf32> to vector<8x32xf32>
    %689 = arith.subf %632, %688 : vector<8x32xf32>
    %690 = arith.mulf %689, %689 : vector<8x32xf32>
    %cst_194 = arith.constant dense<0.000000e+00> : vector<8xf32>
    %691 = vector.multi_reduction <add>, %690, %cst_194 [1] : vector<8x32xf32> to vector<8xf32>
    %692 = vector.shape_cast %691 : vector<8xf32> to vector<8x1xf32>
    %cst_195 = arith.constant 3.200000e+01 : f32
    %693 = vector.broadcast %cst_195 : f32 to vector<8x1xf32>
    %694 = arith.divf %692, %693 : vector<8x1xf32>
    %cst_196 = arith.constant 9.99999974E-6 : f32
    %695 = vector.broadcast %cst_196 : f32 to vector<8x1xf32>
    %696 = arith.addf %694, %695 : vector<8x1xf32>
    %697 = math.rsqrt %696 : vector<8x1xf32>
    %698 = vector.broadcast %697 : vector<8x1xf32> to vector<8x32xf32>
    %699 = arith.mulf %689, %698 : vector<8x32xf32>
    %700 = vector.broadcast %23 : vector<1x32xf32> to vector<8x32xf32>
    %701 = arith.mulf %699, %700 : vector<8x32xf32>
    %702 = vector.broadcast %24 : vector<1x32xf32> to vector<8x32xf32>
    %703 = arith.addf %701, %702 : vector<8x32xf32>
    %cst_197 = arith.constant dense<0.000000e+00> : vector<8x32xf32>
    %704 = tpu.matmul %703, %19, %cst_197 {dimension_numbers = #tpu.dot_dimension_numbers<[1], [0], [0], [1], [0, 0, 1, 1], [], []>} : vector<8x32xf32>, vector<32x32xf32>, vector<8x32xf32> -> vector<8x32xf32>
    %cst_198 = arith.constant dense<0.000000e+00> : vector<8x4xf32>
    %705 = tpu.matmul %704, %661, %cst_198 {dimension_numbers = #tpu.dot_dimension_numbers<[1], [1], [0], [0], [0, 0, 1, 0], [], []>} : vector<8x32xf32>, vector<4x32xf32>, vector<8x4xf32> -> vector<8x4xf32>
    %cst_199 = arith.constant 0.000000e+00 : f32
    %706 = vector.broadcast %cst_199 : f32 to vector<8x4xf32>
    %cst_200 = arith.constant 0.000000e+00 : f32
    %707 = vector.broadcast %cst_200 : f32 to vector<8x4xf32>
    %708 = vector.extract_strided_slice %705 {offsets = [0, 0], sizes = [8, 1], strides = [1, 1]} : vector<8x4xf32> to vector<8x1xf32>
    %709 = vector.broadcast %708 : vector<8x1xf32> to vector<8x4xf32>
    %710 = arith.cmpf oge, %709, %705 : vector<8x4xf32>
    %711 = arith.extui %710 : vector<8x4xi1> to vector<8x4xi32>
    %712 = arith.sitofp %711 : vector<8x4xi32> to vector<8x4xf32>
    %713 = arith.addf %706, %712 : vector<8x4xf32>
    %714 = vector.broadcast %708 : vector<8x1xf32> to vector<8x4xf32>
    %715 = arith.mulf %714, %712 : vector<8x4xf32>
    %716 = arith.addf %707, %715 : vector<8x4xf32>
    %717 = vector.extract_strided_slice %705 {offsets = [0, 1], sizes = [8, 1], strides = [1, 1]} : vector<8x4xf32> to vector<8x1xf32>
    %718 = vector.broadcast %717 : vector<8x1xf32> to vector<8x4xf32>
    %719 = arith.cmpf oge, %718, %705 : vector<8x4xf32>
    %720 = arith.extui %719 : vector<8x4xi1> to vector<8x4xi32>
    %721 = arith.sitofp %720 : vector<8x4xi32> to vector<8x4xf32>
    %722 = arith.addf %713, %721 : vector<8x4xf32>
    %723 = vector.broadcast %717 : vector<8x1xf32> to vector<8x4xf32>
    %724 = arith.mulf %723, %721 : vector<8x4xf32>
    %725 = arith.addf %716, %724 : vector<8x4xf32>
    %726 = vector.extract_strided_slice %705 {offsets = [0, 2], sizes = [8, 1], strides = [1, 1]} : vector<8x4xf32> to vector<8x1xf32>
    %727 = vector.broadcast %726 : vector<8x1xf32> to vector<8x4xf32>
    %728 = arith.cmpf oge, %727, %705 : vector<8x4xf32>
    %729 = arith.extui %728 : vector<8x4xi1> to vector<8x4xi32>
    %730 = arith.sitofp %729 : vector<8x4xi32> to vector<8x4xf32>
    %731 = arith.addf %722, %730 : vector<8x4xf32>
    %732 = vector.broadcast %726 : vector<8x1xf32> to vector<8x4xf32>
    %733 = arith.mulf %732, %730 : vector<8x4xf32>
    %734 = arith.addf %725, %733 : vector<8x4xf32>
    %735 = vector.extract_strided_slice %705 {offsets = [0, 3], sizes = [8, 1], strides = [1, 1]} : vector<8x4xf32> to vector<8x1xf32>
    %736 = vector.broadcast %735 : vector<8x1xf32> to vector<8x4xf32>
    %737 = arith.cmpf oge, %736, %705 : vector<8x4xf32>
    %738 = arith.extui %737 : vector<8x4xi1> to vector<8x4xi32>
    %739 = arith.sitofp %738 : vector<8x4xi32> to vector<8x4xf32>
    %740 = arith.addf %731, %739 : vector<8x4xf32>
    %741 = vector.broadcast %735 : vector<8x1xf32> to vector<8x4xf32>
    %742 = arith.mulf %741, %739 : vector<8x4xf32>
    %743 = arith.addf %734, %742 : vector<8x4xf32>
    %744 = arith.mulf %740, %705 : vector<8x4xf32>
    %cst_201 = arith.constant 1.000000e+00 : f32
    %745 = vector.broadcast %cst_201 : f32 to vector<8x4xf32>
    %746 = arith.addf %745, %744 : vector<8x4xf32>
    %747 = arith.cmpf ogt, %746, %743 : vector<8x4xf32>
    %cst_202 = arith.constant 1.000000e+00 : f32
    %748 = vector.broadcast %cst_202 : f32 to vector<8x4xf32>
    %749 = arith.subf %743, %748 : vector<8x4xf32>
    %750 = arith.divf %749, %740 : vector<8x4xf32>
    %cst_203 = arith.constant 0xFF800000 : f32
    %751 = vector.broadcast %cst_203 : f32 to vector<8x4xf32>
    %752 = arith.select %747, %750, %751 : vector<8x4xi1>, vector<8x4xf32>
    %cst_204 = arith.constant dense<0xFF800000> : vector<8xf32>
    %753 = vector.multi_reduction <maximumf>, %752, %cst_204 [1] : vector<8x4xf32> to vector<8xf32>
    %754 = vector.shape_cast %753 : vector<8xf32> to vector<8x1xf32>
    %755 = vector.broadcast %754 : vector<8x1xf32> to vector<8x4xf32>
    %756 = arith.subf %705, %755 : vector<8x4xf32>
    %cst_205 = arith.constant 0.000000e+00 : f32
    %757 = vector.broadcast %cst_205 : f32 to vector<8x4xf32>
    %758 = arith.maximumf %756, %757 : vector<8x4xf32>
    %cst_206 = arith.constant dense<0.000000e+00> : vector<8x32xf32>
    %759 = tpu.matmul %758, %683, %cst_206 {dimension_numbers = #tpu.dot_dimension_numbers<[1], [0], [0], [1], [0, 0, 1, 1], [], []>} : vector<8x4xf32>, vector<4x32xf32>, vector<8x32xf32> -> vector<8x32xf32>
    %760 = tpu.concatenate %632, %759 in 1 : vector<8x32xf32>, vector<8x32xf32> -> vector<8x64xf32>
    %cst_207 = arith.constant dense<0.000000e+00> : vector<8x32xf32>
    %761 = tpu.matmul %760, %21, %cst_207 {dimension_numbers = #tpu.dot_dimension_numbers<[1], [0], [0], [1], [0, 0, 1, 1], [], []>} : vector<8x64xf32>, vector<64x32xf32>, vector<8x32xf32> -> vector<8x32xf32>
    %762 = vector.broadcast %29 : vector<1x32xf32> to vector<8x32xf32>
    %763 = arith.addf %761, %762 : vector<8x32xf32>
    %764 = arith.negf %763 : vector<8x32xf32>
    %765 = math.exp %764 : vector<8x32xf32>
    %cst_208 = arith.constant 1.000000e+00 : f32
    %766 = vector.broadcast %cst_208 : f32 to vector<8x32xf32>
    %767 = arith.addf %766, %765 : vector<8x32xf32>
    %768 = arith.divf %766, %767 : vector<8x32xf32>
    %769 = arith.mulf %768, %632 : vector<8x32xf32>
    %cst_209 = arith.constant 1.000000e+00 : f32
    %770 = vector.broadcast %cst_209 : f32 to vector<8x32xf32>
    %771 = arith.subf %770, %768 : vector<8x32xf32>
    %772 = arith.mulf %771, %759 : vector<8x32xf32>
    %773 = arith.addf %769, %772 : vector<8x32xf32>
    %c0_210 = arith.constant 0 : index
    %c0_211 = arith.constant 0 : index
    %774 = vector.load %arg11[%c0_210, %c0_211] : memref<208x64xf32, #tpu.memory_space<vmem>>, vector<32x64xf32>
    %c32_212 = arith.constant 32 : index
    %c0_213 = arith.constant 0 : index
    %775 = vector.load %arg11[%c32_212, %c0_213] : memref<208x64xf32, #tpu.memory_space<vmem>>, vector<128x32xf32>
    %c160 = arith.constant 160 : index
    %c0_214 = arith.constant 0 : index
    %776 = vector.load %arg11[%c160, %c0_214] : memref<208x64xf32, #tpu.memory_space<vmem>>, vector<4x32xf32>
    %c168 = arith.constant 168 : index
    %c0_215 = arith.constant 0 : index
    %777 = vector.load %arg11[%c168, %c0_215] : memref<208x64xf32, #tpu.memory_space<vmem>>, vector<32x1xf32>
    %c200 = arith.constant 200 : index
    %c0_216 = arith.constant 0 : index
    %778 = vector.load %arg11[%c200, %c0_216] : memref<208x64xf32, #tpu.memory_space<vmem>>, vector<4x1xf32>
    %c0_217 = arith.constant 0 : index
    %c0_218 = arith.constant 0 : index
    %779 = vector.load %arg12[%c0_217, %c0_218] : memref<3x64xf32, #tpu.memory_space<vmem>>, vector<1x64xf32>
    %c1_219 = arith.constant 1 : index
    %c0_220 = arith.constant 0 : index
    %780 = vector.load %arg12[%c1_219, %c0_220] : memref<3x64xf32, #tpu.memory_space<vmem>>, vector<1x32xf32>
    %c2_221 = arith.constant 2 : index
    %c0_222 = arith.constant 0 : index
    %781 = vector.load %arg12[%c2_221, %c0_222] : memref<3x64xf32, #tpu.memory_space<vmem>>, vector<1x1xf32>
    %c0_223 = arith.constant 0 : index
    %c0_224 = arith.constant 0 : index
    %c0_225 = arith.constant 0 : index
    %782 = vector.load %arg3[%c0_223, %c0_224, %c0_225] : memref<1x1x8xf32, #tpu.memory_space<vmem>>, vector<1x1x8xf32>
    %783 = vector.shape_cast %782 : vector<1x1x8xf32> to vector<1x8xf32>
    %c0_226 = arith.constant 0 : index
    %c0_227 = arith.constant 0 : index
    %c0_228 = arith.constant 0 : index
    %784 = vector.load %arg4[%c0_226, %c0_227, %c0_228] : memref<1x1x8xf32, #tpu.memory_space<vmem>>, vector<1x1x8xf32>
    %785 = vector.shape_cast %784 : vector<1x1x8xf32> to vector<1x8xf32>
    %cst_229 = arith.constant dense<0.000000e+00> : vector<1xf32>
    %786 = vector.multi_reduction <add>, %783, %cst_229 [1] : vector<1x8xf32> to vector<1xf32>
    %787 = vector.shape_cast %786 : vector<1xf32> to vector<1x1xf32>
    %cst_230 = arith.constant dense<0.000000e+00> : vector<1xf32>
    %788 = vector.multi_reduction <add>, %785, %cst_230 [1] : vector<1x8xf32> to vector<1xf32>
    %789 = vector.shape_cast %788 : vector<1xf32> to vector<1x1xf32>
    %cst_231 = arith.constant 1.000000e+00 : f32
    %790 = vector.broadcast %cst_231 : f32 to vector<1x1xf32>
    %791 = arith.divf %790, %787 : vector<1x1xf32>
    %cst_232 = arith.constant 1.000000e+00 : f32
    %792 = vector.broadcast %cst_232 : f32 to vector<1x1xf32>
    %793 = arith.divf %792, %789 : vector<1x1xf32>
    %794 = tpu.concatenate %1, %773 in 0 : vector<8x32xf32>, vector<8x32xf32> -> vector<16x32xf32>
    %cst_233 = arith.constant dense<0.000000e+00> : vector<16x64xf32>
    %795 = tpu.matmul %794, %774, %cst_233 {dimension_numbers = #tpu.dot_dimension_numbers<[1], [0], [0], [1], [0, 0, 1, 1], [], []>} : vector<16x32xf32>, vector<32x64xf32>, vector<16x64xf32> -> vector<16x64xf32>
    %796 = vector.broadcast %779 : vector<1x64xf32> to vector<16x64xf32>
    %797 = arith.addf %795, %796 : vector<16x64xf32>
    %798 = vector.extract_strided_slice %797 {offsets = [0, 0], sizes = [8, 32], strides = [1, 1]} : vector<16x64xf32> to vector<8x32xf32>
    %799 = vector.extract_strided_slice %797 {offsets = [8, 32], sizes = [8, 32], strides = [1, 1]} : vector<16x64xf32> to vector<8x32xf32>
    %cst_234 = arith.constant dense<0.000000e+00> : vector<1x32xf32>
    %800 = tpu.matmul %783, %798, %cst_234 {dimension_numbers = #tpu.dot_dimension_numbers<[1], [0], [0], [1], [0, 0, 1, 1], [], []>} : vector<1x8xf32>, vector<8x32xf32>, vector<1x32xf32> -> vector<1x32xf32>
    %801 = vector.broadcast %791 : vector<1x1xf32> to vector<1x32xf32>
    %802 = arith.mulf %800, %801 : vector<1x32xf32>
    %cst_235 = arith.constant dense<0.000000e+00> : vector<32xf32>
    %803 = vector.multi_reduction <add>, %799, %cst_235 [0] : vector<8x32xf32> to vector<32xf32>
    %804 = vector.shape_cast %803 : vector<32xf32> to vector<1x32xf32>
    %cst_236 = arith.constant 1.250000e-01 : f32
    %805 = vector.broadcast %cst_236 : f32 to vector<1x32xf32>
    %806 = arith.mulf %804, %805 : vector<1x32xf32>
    %807 = arith.subf %806, %802 : vector<1x32xf32>
    %808 = arith.mulf %806, %802 : vector<1x32xf32>
    %809 = tpu.concatenate %802, %806, %807, %808 in 1 : vector<1x32xf32>, vector<1x32xf32>, vector<1x32xf32>, vector<1x32xf32> -> vector<1x128xf32>
    %cst_237 = arith.constant dense<0.000000e+00> : vector<1x32xf32>
    %810 = tpu.matmul %809, %775, %cst_237 {dimension_numbers = #tpu.dot_dimension_numbers<[1], [0], [0], [1], [0, 0, 1, 1], [], []>} : vector<1x128xf32>, vector<128x32xf32>, vector<1x32xf32> -> vector<1x32xf32>
    %811 = vector.extract_strided_slice %776 {offsets = [0, 0], sizes = [1, 32], strides = [1, 1]} : vector<4x32xf32> to vector<1x32xf32>
    %812 = vector.broadcast %787 : vector<1x1xf32> to vector<1x32xf32>
    %813 = arith.mulf %812, %811 : vector<1x32xf32>
    %814 = arith.addf %810, %813 : vector<1x32xf32>
    %815 = vector.extract_strided_slice %776 {offsets = [1, 0], sizes = [1, 32], strides = [1, 1]} : vector<4x32xf32> to vector<1x32xf32>
    %816 = vector.broadcast %789 : vector<1x1xf32> to vector<1x32xf32>
    %817 = arith.mulf %816, %815 : vector<1x32xf32>
    %818 = arith.addf %814, %817 : vector<1x32xf32>
    %819 = vector.extract_strided_slice %776 {offsets = [2, 0], sizes = [1, 32], strides = [1, 1]} : vector<4x32xf32> to vector<1x32xf32>
    %820 = vector.broadcast %791 : vector<1x1xf32> to vector<1x32xf32>
    %821 = arith.mulf %820, %819 : vector<1x32xf32>
    %822 = arith.addf %818, %821 : vector<1x32xf32>
    %823 = vector.extract_strided_slice %776 {offsets = [3, 0], sizes = [1, 32], strides = [1, 1]} : vector<4x32xf32> to vector<1x32xf32>
    %824 = vector.broadcast %793 : vector<1x1xf32> to vector<1x32xf32>
    %825 = arith.mulf %824, %823 : vector<1x32xf32>
    %826 = arith.addf %822, %825 : vector<1x32xf32>
    %827 = arith.addf %826, %780 : vector<1x32xf32>
    %cst_238 = arith.constant 0.000000e+00 : f32
    %828 = vector.broadcast %cst_238 : f32 to vector<1x32xf32>
    %829 = arith.maximumf %827, %828 : vector<1x32xf32>
    %cst_239 = arith.constant dense<0.000000e+00> : vector<1x1xf32>
    %830 = tpu.matmul %829, %777, %cst_239 {dimension_numbers = #tpu.dot_dimension_numbers<[1], [0], [0], [1], [0, 0, 1, 1], [], []>} : vector<1x32xf32>, vector<32x1xf32>, vector<1x1xf32> -> vector<1x1xf32>
    %831 = vector.extract_strided_slice %778 {offsets = [0, 0], sizes = [1, 1], strides = [1, 1]} : vector<4x1xf32> to vector<1x1xf32>
    %832 = arith.mulf %787, %831 : vector<1x1xf32>
    %833 = arith.addf %830, %832 : vector<1x1xf32>
    %834 = vector.extract_strided_slice %778 {offsets = [1, 0], sizes = [1, 1], strides = [1, 1]} : vector<4x1xf32> to vector<1x1xf32>
    %835 = arith.mulf %789, %834 : vector<1x1xf32>
    %836 = arith.addf %833, %835 : vector<1x1xf32>
    %837 = vector.extract_strided_slice %778 {offsets = [2, 0], sizes = [1, 1], strides = [1, 1]} : vector<4x1xf32> to vector<1x1xf32>
    %838 = arith.mulf %791, %837 : vector<1x1xf32>
    %839 = arith.addf %836, %838 : vector<1x1xf32>
    %840 = vector.extract_strided_slice %778 {offsets = [3, 0], sizes = [1, 1], strides = [1, 1]} : vector<4x1xf32> to vector<1x1xf32>
    %841 = arith.mulf %793, %840 : vector<1x1xf32>
    %842 = arith.addf %839, %841 : vector<1x1xf32>
    %843 = arith.addf %842, %781 : vector<1x1xf32>
    %844 = vector.shape_cast %843 : vector<1x1xf32> to vector<1x1xf32>
    %845 = vector.broadcast %844 : vector<1x1xf32> to vector<1x128xf32>
    %c0_240 = arith.constant 0 : index
    %c0_241 = arith.constant 0 : index
    %c0_242 = arith.constant 0 : index
    %846 = vector.load %arg13[%c0_240, %c0_241, %c0_242] : memref<1x1x128xf32, #tpu.memory_space<vmem>>, vector<1x1x128xf32>
    %847 = vector.shape_cast %846 : vector<1x1x128xf32> to vector<1x128xf32>
    %848 = vector.shape_cast %845 : vector<1x128xf32> to vector<1x1x128xf32>
    tpu.vector_store %arg13[%c0_240, %c0_241, %c0_242], %848 {strides = array<i32>} : memref<1x1x128xf32, #tpu.memory_space<vmem>>, vector<1x1x128xf32>,
    return
  }
  func.func @transform_0(%arg0: i32) -> (i32, i32, i32) {
    %c0_i32 = arith.constant 0 : i32
    %c0_i32_0 = arith.constant 0 : i32
    %c0_i32_1 = arith.constant 0 : i32
    return %arg0, %c0_i32, %c0_i32_0 : i32, i32, i32
  }
  func.func @transform_1(%arg0: i32) -> (i32, i32, i32) {
    %c0_i32 = arith.constant 0 : i32
    %c0_i32_0 = arith.constant 0 : i32
    %c0_i32_1 = arith.constant 0 : i32
    return %arg0, %c0_i32, %c0_i32_0 : i32, i32, i32
  }
  func.func @transform_2(%arg0: i32) -> (i32, i32, i32) {
    %c0_i32 = arith.constant 0 : i32
    %c0_i32_0 = arith.constant 0 : i32
    %c0_i32_1 = arith.constant 0 : i32
    return %arg0, %c0_i32, %c0_i32_0 : i32, i32, i32
  }
  func.func @transform_3(%arg0: i32) -> (i32, i32, i32) {
    %c0_i32 = arith.constant 0 : i32
    %c0_i32_0 = arith.constant 0 : i32
    %c0_i32_1 = arith.constant 0 : i32
    return %arg0, %c0_i32, %c0_i32_0 : i32, i32, i32
  }
  func.func @transform_4(%arg0: i32) -> (i32, i32) {
    %c0_i32 = arith.constant 0 : i32
    %c0_i32_0 = arith.constant 0 : i32
    %c0_i32_1 = arith.constant 0 : i32
    return %c0_i32, %c0_i32_0 : i32, i32
  }
  func.func @transform_5(%arg0: i32) -> (i32, i32) {
    %c0_i32 = arith.constant 0 : i32
    %c0_i32_0 = arith.constant 0 : i32
    %c0_i32_1 = arith.constant 0 : i32
    return %c0_i32, %c0_i32_0 : i32, i32
  }
  func.func @transform_6(%arg0: i32) -> (i32, i32) {
    %c0_i32 = arith.constant 0 : i32
    %c0_i32_0 = arith.constant 0 : i32
    %c0_i32_1 = arith.constant 0 : i32
    return %c0_i32, %c0_i32_0 : i32, i32
  }
  func.func @transform_7(%arg0: i32) -> (i32, i32) {
    %c0_i32 = arith.constant 0 : i32
    %c0_i32_0 = arith.constant 0 : i32
    %c0_i32_1 = arith.constant 0 : i32
    return %c0_i32, %c0_i32_0 : i32, i32
  }
  func.func @transform_8(%arg0: i32) -> (i32, i32) {
    %c0_i32 = arith.constant 0 : i32
    %c0_i32_0 = arith.constant 0 : i32
    %c0_i32_1 = arith.constant 0 : i32
    return %c0_i32, %c0_i32_0 : i32, i32
  }
  func.func @transform_9(%arg0: i32) -> (i32, i32) {
    %c0_i32 = arith.constant 0 : i32
    %c0_i32_0 = arith.constant 0 : i32
    %c0_i32_1 = arith.constant 0 : i32
    return %c0_i32, %c0_i32_0 : i32, i32
  }
  func.func @transform_10(%arg0: i32) -> (i32, i32) {
    %c0_i32 = arith.constant 0 : i32
    %c0_i32_0 = arith.constant 0 : i32
    %c0_i32_1 = arith.constant 0 : i32
    return %c0_i32, %c0_i32_0 : i32, i32
  }
  func.func @transform_11(%arg0: i32) -> (i32, i32) {
    %c0_i32 = arith.constant 0 : i32
    %c0_i32_0 = arith.constant 0 : i32
    %c0_i32_1 = arith.constant 0 : i32
    return %c0_i32, %c0_i32_0 : i32, i32
  }
  func.func @transform_12(%arg0: i32) -> (i32, i32, i32) {
    %c0_i32 = arith.constant 0 : i32
    %c0_i32_0 = arith.constant 0 : i32
    %c0_i32_1 = arith.constant 0 : i32
    return %arg0, %c0_i32, %c0_i32_0 : i32, i32, i32
  }
}

</mosaic_0001>

<bundles_post_ra>
// kernel: base_mem_attn_predict_net.1
= control target key start
LH: loop header
LB: loop body
LE: loop exit
PB: predicated region body
PF: predicated region fallthrough
CT: control target
= control target key end

     0   :  { %s5499_s21 = smov 0   ;;  %s6339_s0 = inlined_call_operand.vmem [shape: f32[2,8,32], index: 0, kind: input, shape index: {}]   ;;  %s6340_s1 = inlined_call_operand.vmem [shape: f32[2,8,32], index: 1, kind: input, shape index: {}]   ;;  %s6341_s2 = inlined_call_operand.vmem [shape: f32[2,1,8], index: 2, kind: input, shape index: {}]   ;;  %s6342_s3 = inlined_call_operand.vmem [shape: f32[2,1,8], index: 3, kind: input, shape index: {}]   ;;  %s6343_s4 = inlined_call_operand.vmem [shape: f32[4,8], index: 4, kind: input, shape index: {}, may-alias: {4,5}]   ;;  %s6344_s5 = inlined_call_operand.vmem [shape: f32[4,8], index: 5, kind: input, shape index: {}, may-alias: {4,5}]   ;;  %s6345_s6 = inlined_call_operand.vmem [shape: f32[160,64], index: 6, kind: input, shape index: {}]   ;;  %s6346_s7 = inlined_call_operand.vmem [shape: f32[8,64], index: 7, kind: input, shape index: {}]   ;;  %s6347_s8 = inlined_call_operand.vmem [shape: f32[160,64], index: 8, kind: input, shape index: {}]   ;;  %s6348_s9 = inlined_call_operand.vmem [shape: f32[8,64], index: 9, kind: input, shape index: {}]   ;;  %s6349_s10 = inlined_call_operand.vmem [shape: f32[208,64], index: 10, kind: input, shape index: {}]   ;;  %s6350_s11 = inlined_call_operand.vmem [shape: f32[3,64], index: 11, kind: input, shape index: {}]   ;;  %s6351_s12 = inlined_call_operand.vmem [shape: f32[2,1,128], index: 12, kind: output, shape index: {}]  }
   0x1 LB: > { %s4394_s22 = sadd.s32 4294967295, %s5422_s21   ;;  %p4398_p0 = scmp.ge.s32.totalorder %s5422_s21, 1  ;;  %s5422_s21 = sphi %s5499_s21, %s22_s21  }
   0x2   : > { %p386_p1 = scmp.lt.s32.totalorder %s5422_s21, 3 }
   0x4   : > { %p387_p2 = pnand %p4398_p0, %p386_p1 }
   0x5   : > { %v456_v0 = vld [vmem:[%s6345_s6] sm:$0xff] (!%p387_p2)  ;;  %v457_v1 = vld [vmem:[%s6345_s6 + $0x8] sm:$0xff] (!%p387_p2)  ;;  %v458_v2 = vld [vmem:[%s6345_s6 + $0x10] sm:$0xff] (!%p387_p2)  ;;  %v5424_v3 = vmov (!%p387_p2), 0.0|0.0   ;;  %vm5425_vm0 = vmmov (!%p387_p2), 0   ;;  %v5426_v6 = vmov (!%p387_p2), 0.0  }
   0x6   : > { %390 = sbr.rel (%p387_p2) target bundleno = 13196 (0x338c), region = 68  ;;  %5104 = vmatprep.subr.bf16.mxu1 (!%p387_p2), %v5424_v3  ;;  %v5105_v4 = vpack.c.bf16 (!%p387_p2), %v457_v1, %v456_v0  ;;  %v459_v5 = vld [vmem:[%s6345_s6 + $0x18] sm:$0xff] (!%p387_p2)  ;;  %4702 = vmatprep.mubr.msk.f32.mxu1 (!%p387_p2), %vm5425_vm0, %v5426_v6  ;;  %p435_p3 = scmp.lt.s32.totalorder (!%p387_p2), %s4394_s22, 1  ;;  %vm512_vm1 = vcmask (!%p387_p2), 261120   ;;  %v454_v9 = vld [vmem:[%s6343_s4] sm:$0xf] (!%p387_p2) }
   0x7   : > { %5116 = vmatprep.subr.bf16.mxu0 (!%p387_p2), %v5424_v3  ;;  %4729 = vmatprep.mubr.msk.f32.mxu0 (!%p387_p2), %vm5425_vm0, %v5426_v6  ;;  %v5108_v7 = vpack.c.bf16 (!%p387_p2), %v459_v5, %v458_v2  ;;  %vm586_vm2 = vcmask (!%p387_p2), 60416   ;;  %vm595_vm3 = vcmask (!%p387_p2), 64512   ;;  %v4402_v15 = vld [vmem:[%s6346_s7] ss:$0 sm:$0xff] (!%p387_p2)  ;;  %s5427_s26 = smov (!%p387_p2), 96   ;;  %v461_v27 = vld [vmem:[%s6345_s6 + $0x28] sm:$0xff] (!%p387_p2) }
   0x8   : > { %5106 = vmatpush3.bf16.msra.mxu1 (!%p387_p2), %v5105_v4  ;;  %v587_v10 = vsel (!%p387_p2), %vm586_vm2, %v454_v9, 0.0  ;;  %v460_v26 = vld [vmem:[%s6345_s6 + $0x20] sm:$0xff] (!%p387_p2)  ;;  %vm669_vm4 = vcmask (!%p387_p2), 257024   ;;  %v462_v31 = vld [vmem:[%s6345_s6 + $0x30] sm:$0xff] (!%p387_p2)  ;;  %v463_v32 = vld [vmem:[%s6345_s6 + $0x38] sm:$0xff] (!%p387_p2)  ;;  %s5428_s20 = smov (!%p387_p2), 32  }
   0x9   : > { %5107 = vmatprep.subr.bf16.mxu1 (!%p387_p2), %v5424_v3  ;;  %588 = vadd.xlane.f32.xlu0 (!%p387_p2), %v587_v10  ;;  %v5566_v28 = vpack.c.bf16 (!%p387_p2), %v461_v27, %v460_v26  ;;  %v5577_v33 = vpack.c.bf16 (!%p387_p2), %v463_v32, %v462_v31  ;;  %v4406_v34 = vld [vmem:[%s6346_s7 + $0x5] ss:$0 sm:$0xff] (!%p387_p2)  ;;  %v5588_v39 = vld [vmem:[%s6346_s7 + $0x1] ss:$0 sm:$0xff] (!%p387_p2)  ;;  %v5593_v41 = vld [vmem:[%s6346_s7 + $0x2] ss:$0 sm:$0xff] (!%p387_p2) }
   0xa   : > { %v4407_v51 = vld [vmem:[%s6346_s7 + $0x6] ss:$0 sm:$0xff] (!%p387_p2)  ;;  %v465_v60 = vld [vmem:[%s6345_s6 + $0x48] sm:$0xff] (!%p387_p2)  ;;  %v466_v61 = vld [vmem:[%s6345_s6 + $0x50] sm:$0xff] (!%p387_p2)  ;;  %vm1037_vm5 = vcmask (!%p387_p2), 1043456   ;;  %v5432_v31 = vmov (!%p387_p2), 3  }
   0xb   : > { %5118 = vmatpush3.bf16.msra.mxu0 (!%p387_p2), %v5566_v28  ;;  %v464_v59 = vld [vmem:[%s6345_s6 + $0x40] sm:$0xff] (!%p387_p2)  ;;  %v467_v63 = vld [vmem:[%s6345_s6 + $0x58] sm:$0xff] (!%p387_p2)  ;;  %vm1028_vm10 = vcmask (!%p387_p2), 31744   ;;  %vm1120_vm12 = vcmask (!%p387_p2), 523264  }
   0xc   : > { %5109 = vmatpush3.bf16.msra.mxu1 (!%p387_p2), %v5108_v7  ;;  %5119 = vmatprep.subr.bf16.mxu0 (!%p387_p2), %v5424_v3  ;;  %v5111_v62 = vpack.c.bf16 (!%p387_p2), %v465_v60, %v464_v59  ;;  %v5114_v0 = vpack.c.bf16 (!%p387_p2), %v467_v63, %v466_v61  ;;  %v468_v63 = vld [vmem:[%s6345_s6 + $0x60] sm:$0xff] (!%p387_p2) }
   0xd   : > { %s6353_s22 = smov (!%p435_p3, %s4394_s22), 1  ;;  %4705 = vmatprep.subr.mxu1 %v5426_v6 }
   0xe   : > { %s4399_s13 = sshll.u32 %s6353_s22, 3  ;;  %s445_s27 = scalar_lea.vmem %s6341_s2, %s6353_s22 }
   0xf   : > { %s5532_s16 = scalar_lea.vmem %s6339_s0, %s4399_s13  ;;  %s442_s23 = scalar_lea.vmem %s6340_s1, %s4399_s13  ;;  %5121 = vmatpush3.bf16.msra.mxu0 %v5577_v33 }
  0x10   : > { %v452_v8 = vld [vmem:[%s5532_s16] sm:$0xff]  ;;  %5122 = vmatprep.subr.bf16.mxu0 %v5424_v3  ;;  %s448_s15 = scalar_lea.vmem %s6342_s3, %s6353_s22  ;;  %s451_s18 = scalar_lea.vmem %s6351_s12, %s6353_s22 }
  0x11   : > { %4703 = vmatmul.mubr.msk.f32.vlgmr.msra.gmra.mrb[0].mxu1 %vm512_vm1, %v452_v8  ;;  %v5546_v11 = vld [vmem:[%s442_s23] sm:$0xff] }
  0x12   : > { %4707 = vmatprep.mubr.msk.f32.mxu1 %vm5425_vm0, %v5426_v6  ;;  %v808_v12 = vsel %vm512_vm1, %v5546_v11, 0.0 }
  0x13   : > { %809 = vadd.xlane.f32.xlu0 %v808_v12 }
  0x96   : > { %v589_v16 = vpop.xlane.xlu0 %588 }
  0x97   : > { %v594_v17 = vmul.f32 %v4402_v15, %v589_v16 }
  0xa0   : > { %v810_v21 = vpop.xlane.xlu0 %809 }
  0xa1   : > { %v811_v22 = vmul.f32 0.03125, %v810_v21 }
  0xa3   : > { %v812_v23 = vsub.f32 %v5546_v11, %v811_v22 }
  0xa5   : > { %v813_v24 = vmul.f32 %v812_v23, %v812_v23 }
  0xa7   : > { %v814_v25 = vsel %vm512_vm1, %v813_v24, 0.0  ;;  %v5430_v24 = vmov 0  }
  0xa8   : > { %5316 = vset.pattern.permute.xlu0 %v5430_v24 }
  0xe4   : > { %v582_v13 = vpop.f32.mrb[0].mxu1 }
  0xe5   : > { %v4704_v14 = vpop.f32.mrb[1].mxu1  ;;  %4706 = vmatpush3.msra.mxu1 %v582_v13 }
  0xe6   : > { %4708 = vmatmul.mubr.msk.f32.vlgmr.msra.gmra.mrb[2].mxu1 %vm595_vm3, %v454_v9  ;;  %5110 = vmatprep.subr.bf16.mxu1 %v5424_v3 }
  0xe7   : > { %4718 = vmatprep.mubr.msk.f32.mxu1 %vm5425_vm0, %v5426_v6  ;;  %5112 = vmatpush3.bf16.msra.mxu1 %v5111_v62 }
  0xe8   : > { %5113 = vmatprep.subr.bf16.mxu1 %v5424_v3 }
  0xeb   : > { %5115 = vmatpush3.bf16.msra.mxu1 %v5114_v0  ;;  %v469_v0 = vld [vmem:[%s6345_s6 + $0x68] sm:$0xff] }
  0xec   : > { %4732 = vmatprep.subr.mxu1 %v5426_v6 }
 0x1b9   : > { %v665_v18 = vpop.f32.mrb[2].mxu1 }
 0x1ba   : > { %v666_v19 = vadd.f32 %v665_v18, %v594_v17  ;;  %v4709_v20 = vpop.f32.mrb[3].mxu1  ;;  %v4404_v18 = vld [vmem:[%s6346_s7 + $0x3] ss:$0 sm:$0xff] }
 0x1bb   : > { %v4405_v20 = vld [vmem:[%s6346_s7 + $0x4] ss:$0 sm:$0xff] }
 0x1bc   : > { %695 = vrot.lane.b32.xlu1 %v666_v19, %s5427_s26  ;;  %v670_v48 = vsel %vm669_vm4, %v666_v19, 0.0 }
 0x1e0   : > { %815 = vadd.xlane.f32.xlu1 %v814_v25 }
 0x1f1   : > { %720 = vrot.lane.b32.xlu1 %v4406_v34, %s5428_s20 }
 0x22e   : > { %v696_v29 = vpop.permute.xlu1 %695 }
 0x22f   : > { %v698_v30 = vsel %vm669_vm4, %v696_v29, 0.0 }
 0x230   : > { %699 = vadd.xlane.f32.xlu0 %v698_v30  ;;  %v5431_v30 = vmov 2  }
 0x26d   : > { %v816_v35 = vpop.xlane.xlu1 %815 }
 0x26e   : > { %v817_v36 = vmul.f32 0.03125, %v816_v35 }
 0x270   : > { %v818_v37 = vadd.f32 1e-05, %v817_v36 }
 0x271   : > { %v721_v1 = vpop.permute.xlu1 %720 }
 0x272   : > { %5338 = vrsqrt.f32 %v818_v37 }
 0x27c   : > { %v5339_v38 = vpop.eup %5338 }
 0x27d   : > { %v820_v40 = vmul.f32 %v5339_v38, %v812_v23  ;;  %v5429_v23 = vmov 1  }
 0x27e   : > { %5317 = vset.pattern.permute.xlu1 %v5429_v23 }
 0x27f   : > { %v825_v42 = vmul.f32 %v5588_v39, %v820_v40 }
 0x281   : > { %v830_v43 = vadd.f32 %v5593_v41, %v825_v42 }
 0x283   : > { %4730 = vmatmul.mubr.msk.f32.vlgmr.msra.gmra.mrb[0].mxu0 %vm512_vm1, %v830_v43 }
 0x284   : > { %4758 = vmatprep.mubr.msk.f32.mxu0 %vm5425_vm0, %v5426_v6 }
 0x2bd   : > { %v700_v44 = vpop.xlane.xlu0 %699 }
 0x2be   : > { %v701_v45 = vmul.f32 0.03125, %v700_v44 }
 0x2c0   : > { %v702_v46 = vsub.f32 %v666_v19, %v701_v45 }
 0x2c2   : > { %v703_v47 = vmul.f32 %v702_v46, %v702_v46 }
 0x2c4   : > { %705 = vrot.lane.b32.xlu0 %v703_v47, %s5427_s26 }
 0x2e3   : > { %671 = vadd.xlane.f32.xlu0 %v670_v48 }
 0x336   : > { %v706_v49 = vpop.permute.xlu0 %705 }
 0x337   : > { %v708_v50 = vsel %vm669_vm4, %v706_v49, 0.0 }
 0x338   : > { %709 = vadd.xlane.f32.xlu1 %v708_v50 }
 0x349   : > { %729 = vrot.lane.b32.xlu1 %v4407_v51, %s5428_s20 }
 0x356   : > { %v900_v52 = vpop.f32.mrb[0].mxu0 }
 0x357   : > { %v4731_v53 = vpop.f32.mrb[1].mxu0 }
 0x370   : > { %v672_v54 = vpop.xlane.xlu0 %671 }
 0x371   : > { %v674_v55 = vmul.f32 0.03125, %v672_v54 }
 0x373   : > { %v675_v56 = vsub.f32 %v666_v19, %v674_v55 }
 0x375   : > { %v676_v57 = vmul.f32 %v675_v56, %v675_v56 }
 0x377   : > { %v677_v58 = vsel %vm669_vm4, %v676_v57, 0.0 }
 0x378   : > { %678 = vadd.xlane.f32.xlu0 %v677_v58 }
 0x3c5   : > { %v710_v2 = vpop.xlane.xlu1 %709 }
 0x3c6   : > { %v711_v4 = vmul.f32 0.03125, %v710_v2  ;;  %v5667_v2 = vpack.c.bf16 %v469_v0, %v468_v63  ;;  %v490_v0 = vld [vmem:[%s6347_s8 + $0x30] sm:$0xff] }
 0x3c8   : > { %v712_v5 = vadd.f32 1e-05, %v711_v4  ;;  %v471_v4 = vld [vmem:[%s6345_s6 + $0x78] sm:$0xff]  ;;  %5124 = vmatpush3.bf16.msra.mxu0 %v5667_v2 }
 0x3c9   : > { %v730_v9 = vpop.permute.xlu1 %729  ;;  %5125 = vmatprep.subr.bf16.mxu0 %v5424_v3 }
 0x3ca   : > { %5340 = vrsqrt.f32 %v712_v5 }
 0x3d4   : > { %v5341_v7 = vpop.eup %5340 }
 0x3d5   : > { %v714_v8 = vmul.f32 %v5341_v7, %v702_v46  ;;  %v472_v7 = vld [vmem:[%s6345_s6 + $0x80] sm:$0xff] }
 0x3d7   : > { %v723_v10 = vmul.f32 %v721_v1, %v714_v8  ;;  %v470_v1 = vld [vmem:[%s6345_s6 + $0x70] sm:$0xff]  ;;  %v473_v8 = vld [vmem:[%s6345_s6 + $0x88] sm:$0xff] }
 0x3d8   : > { %v5673_v5 = vpack.c.bf16 %v471_v4, %v470_v1  ;;  %v491_v1 = vld [vmem:[%s6347_s8 + $0x38] sm:$0xff] }
 0x3d9   : > { %v732_v12 = vadd.f32 %v730_v9, %v723_v10  ;;  %v5683_v9 = vpack.c.bf16 %v473_v8, %v472_v7  ;;  %v474_v10 = vld [vmem:[%s6345_s6 + $0x90] sm:$0xff]  ;;  %v5776_v4 = vpack.c.bf16 %v491_v1, %v490_v0 }
 0x3da   : > { %5127 = vmatpush3.bf16.msra.mxu0 %v5673_v5 }
 0x3db   : > { %734 = vrot.lane.b32.xlu1 %v732_v12, %s5427_s26  ;;  %5128 = vmatprep.subr.bf16.mxu0 %v5424_v3  ;;  %v475_v12 = vld [vmem:[%s6345_s6 + $0x98] sm:$0xff] }
 0x3de   : > { %5130 = vmatpush3.bf16.msra.mxu0 %v5683_v9 }
 0x3df   : > { %5131 = vmatprep.subr.bf16.mxu0 %v5424_v3 }
 0x405   : > { %v679_v13 = vpop.xlane.xlu0 %678 }
 0x406   : > { %v680_v14 = vmul.f32 0.03125, %v679_v13  ;;  %v5693_v13 = vpack.c.bf16 %v475_v12, %v474_v10  ;;  %v4429_v10 = vld [vmem:[%s6348_s9 + $0x5] ss:$0 sm:$0xff] }
 0x408   : > { %v681_v15 = vadd.f32 1e-05, %v680_v14  ;;  %5133 = vmatpush3.bf16.msra.mxu0 %v5693_v13 }
 0x409   : > { %5146 = vmatprep.subr.bf16.mxu0 %v5424_v3 }
 0x40a   : > { %5342 = vrsqrt.f32 %v681_v15 }
 0x414   : > { %v5343_v16 = vpop.eup %5342 }
 0x415   : > { %v683_v17 = vmul.f32 %v5343_v16, %v675_v56 }
 0x417   : > { %v688_v19 = vmul.f32 %v4404_v18, %v683_v17  ;;  %v484_v18 = vld [vmem:[%s6347_s8] sm:$0xff] }
 0x419   : > { %v5629_v22 = vadd.f32 %v4405_v20, %v688_v19  ;;  %v485_v19 = vld [vmem:[%s6347_s8 + $0x8] sm:$0xff] }
 0x41a   : > { %v5710_v20 = vpack.c.bf16 %v485_v19, %v484_v18  ;;  %v5793_v19 = vld [vmem:[%s6348_s9 + $0x2] ss:$0 sm:$0xff] }
 0x44d   : > { %v735_v21 = vpop.permute.xlu1 %734 }
 0x44e   : > { %4719 = vmatmul.mubr.msk.f32.vlgmr.msra.gmra.mrb[4].mxu1 %vm512_vm1, %v735_v21  ;;  %v486_v21 = vld [vmem:[%s6347_s8 + $0x10] sm:$0xff] }
 0x44f   : > { %4733 = vmatpush3.xpose.msk.msra.mxu1 %vm512_vm1, %v5629_v22  ;;  %4734 = vmatprep.mubr.msk.f32.mxu1 %vm5425_vm0, %v5426_v6 }
 0x450   : > { %4737 = vmatprep.subr.mxu1 %v5426_v6 }
 0x452   : > { %4735 = vmatmul.mubr.msk.f32.vlgmr.msra.gmra.mrb[6].mxu1 %vm512_vm1, %v900_v52 }
 0x453   : > { %4739 = vmatprep.mubr.msk.f32.mxu1 %vm5425_vm0, %v5426_v6 }
 0x521   : > { %v5642_v25 = vpop.f32.mrb[4].mxu1 }
 0x522   : > { %v4720_v26 = vpop.f32.mrb[5].mxu1  ;;  %4738 = vmatpush3.msk.msra.mxu1 %vm1037_vm5, %v5642_v25 }
 0x523   : > { %5134 = vmatprep.subr.bf16.mxu1 %v5424_v3  ;;  %v487_v26 = vld [vmem:[%s6347_s8 + $0x18] sm:$0xff] }
 0x525   : > { %v976_v27 = vpop.f32.mrb[6].mxu1 }
 0x526   : > { %992 = vperm.xlu1 %5317, %v976_v27   ;;  %982 = vperm.xlu0 %5316, %v976_v27   ;;  %v4736_v29 = vpop.f32.mrb[7].mxu1 }
 0x527   : > { %v5727_v29 = vld [vmem:[%s6346_s7 + $0x7] ss:$0 sm:$0xff] }
 0x52a   : > { %5318 = vset.pattern.permute.xlu1 %v5431_v30 }
 0x52b   : > { %1002 = vperm.xlu1 %5318, %v976_v27  }
 0x52f   : > { %5319 = vset.pattern.permute.xlu1 %v5432_v31 }
 0x530   : > { %1012 = vperm.xlu1 %5319, %v976_v27  }
 0x534   : > { %5321 = vset.pattern.permute.xlu1 %v5431_v30 }
 0x5a5   : > { %v993_v32 = vpop.permute.xlu1 %992  ;;  %v983_v34 = vpop.permute.xlu0 %982 }
 0x5a6   : > { %vm995_vm6 = vcmp.ge.f32.partialorder %v993_v32, %v976_v27  ;;  %vm985_vm7 = vcmp.ge.f32.partialorder %v983_v34, %v976_v27 }
 0x5a7   : > { %v4415_v36 = vsel %vm995_vm6, 1.0, %v5426_v6  ;;  %v4414_v37 = vsel %vm985_vm7, 1.0, %v5426_v6 }
 0x5a8   : > { %v998_v40 = vadd.f32 %v4415_v36, %v4414_v37  ;;  %v999_v44 = vmul.f32 %v4415_v36, %v993_v32  ;;  %v989_v45 = vmul.f32 %v4414_v37, %v983_v34 }
 0x5aa   : > { %v1003_v35 = vpop.permute.xlu1 %1002  ;;  %v1000_v49 = vadd.f32 %v999_v44, %v989_v45 }
 0x5ab   : > { %vm1005_vm8 = vcmp.ge.f32.partialorder %v1003_v35, %v976_v27 }
 0x5ac   : > { %v4416_v38 = vsel %vm1005_vm8, 1.0, %v5426_v6 }
 0x5ad   : > { %v1008_v43 = vadd.f32 %v4416_v38, %v998_v40  ;;  %v1009_v48 = vmul.f32 %v4416_v38, %v1003_v35 }
 0x5af   : > { %v1013_v42 = vpop.permute.xlu1 %1012  ;;  %v1010_v51 = vadd.f32 %v1009_v48, %v1000_v49 }
 0x5b0   : > { %vm1015_vm9 = vcmp.ge.f32.partialorder %v1013_v42, %v976_v27 }
 0x5b1   : > { %v4417_v46 = vsel %vm1015_vm9, 1.0, %v5426_v6 }
 0x5b2   : > { %v1018_v47 = vadd.f32 %v4417_v46, %v1008_v43  ;;  %v1019_v50 = vmul.f32 %v4417_v46, %v1013_v42 }
 0x5b4   : > { %5344 = vrcp.f32 %v1018_v47  ;;  %v1021_v52 = vmul.f32 %v1018_v47, %v976_v27  ;;  %v1020_v53 = vadd.f32 %v1019_v50, %v1010_v51  ;;  %v5742_v47 = vld [vmem:[%s6344_s5] sm:$0xf] }
 0x5b5   : > { %v4425_v50 = vld [vmem:[%s6348_s9] ss:$0 sm:$0xff] }
 0x5b6   : > { %v1022_v54 = vadd.f32 1.0, %v1021_v52  ;;  %v4418_v55 = vadd.f32 -1.0, %v1020_v53 }
 0x5b8   : > { %vm1023_vm11 = vcmp.gt.f32.partialorder %v1022_v54, %v1020_v53 }
 0x5be   : > { %v5345_v56 = vpop.eup %5344 }
 0x5bf   : > { %v1026_v57 = vmul.f32 %v5345_v56, %v4418_v55 }
 0x5c1   : > { %v1027_v58 = vsel %vm1023_vm11, %v1026_v57, -inf }
 0x5c2   : > { %v1029_v59 = vsel %vm1028_vm10, %v1027_v58, -inf }
 0x5c3   : > { %1030 = vmax.xlane.f32.xlu1 %v1029_v59 }
 0x650   : > { %v1031_v60 = vpop.xlane.xlu1 %1030 }
 0x651   : > { %v1032_v61 = vsub.f32 %v976_v27, %v1031_v60  ;;  %v5720_v27 = vpack.c.bf16 %v487_v26, %v486_v21 }
 0x653   : > { %v1033_v62 = vmax.f32 %v1032_v61, 0.0  ;;  %v488_v61 = vld [vmem:[%s6347_s8 + $0x20] sm:$0xff] }
 0x655   : > { %4740 = vmatmul.mubr.msk.f32.vlgmr.msra.gmra.mrb[8].mxu1 %vm1028_vm10, %v1033_v62  ;;  %v489_v62 = vld [vmem:[%s6347_s8 + $0x28] sm:$0xff] }
 0x656   : > { %4769 = vmatprep.mubr.msk.f32.mxu1 %vm5425_vm0, %v5426_v6  ;;  %5136 = vmatpush3.bf16.msra.mxu1 %v5710_v20  ;;  %v5766_v63 = vpack.c.bf16 %v489_v62, %v488_v61 }
 0x657   : > { %5137 = vmatprep.subr.bf16.mxu1 %v5424_v3 }
 0x65a   : > { %5139 = vmatpush3.bf16.msra.mxu1 %v5720_v27 }
 0x65b   : > { %4772 = vmatprep.subr.mxu1 %v5426_v6 }
 0x728   : > { %v1107_v14 = vpop.f32.mrb[8].mxu1 }
 0x729   : > { %1112 = vrot.lane.b32.xlu0 %v1107_v14, %s5428_s20  ;;  %v4741_v15 = vpop.f32.mrb[9].mxu1 }
 0x79b   : > { %v1113_v16 = vpop.permute.xlu0 %1112 }
 0x79c   : > { %v1115_v17 = vsel %vm512_vm1, %v5546_v11, %v1113_v16 }
 0x79d   : > { %4759 = vmatmul.mubr.msk.f32.vlgmr.msra.gmra.mrb[2].mxu0 %vm1120_vm12, %v1115_v17  ;;  %v5788_v17 = vld [vmem:[%s6348_s9 + $0x1] ss:$0 sm:$0xff] }
 0x79e   : > { %4796 = vmatprep.mubr.msk.f32.mxu0 %vm5425_vm0, %v5426_v6  ;;  %5148 = vmatpush3.bf16.msra.mxu0 %v5766_v63 }
 0x79f   : > { %5149 = vmatprep.subr.bf16.mxu0 %v5424_v3 }
 0x7a2   : > { %5151 = vmatpush3.bf16.msra.mxu0 %v5776_v4 }
 0x7a3   : > { %4804 = vmatprep.subr.mxu0 %v5426_v6 }
 0x870   : > { %v1190_v32 = vpop.f32.mrb[2].mxu0 }
 0x871   : > { %v1191_v34 = vadd.f32 %v5727_v29, %v1190_v32  ;;  %v4760_v35 = vpop.f32.mrb[3].mxu0 }
 0x873   : > { %v4423_v36 = vmul.f32 -1.442695, %v1191_v34 }
 0x875   : > { %5346 = vpow2.f32 %v4423_v36 }
 0x87f   : > { %v5347_v37 = vpop.eup %5346 }
 0x880   : > { %v1197_v38 = vadd.f32 1.0, %v5347_v37 }
 0x882   : > { %5348 = vrcp.f32 %v1197_v38 }
 0x88c   : > { %v5349_v40 = vpop.eup %5348 }
 0x88d   : > { %v1201_v42 = vsub.f32 1.0, %v5349_v40  ;;  %v1200_v43 = vmul.f32 %v5349_v40, %v5546_v11  ;;  %v1277_v11 = vsel %vm586_vm2, %v5742_v47, 0.0 }
 0x88e   : > { %1278 = vadd.xlane.f32.xlu0 %v1277_v11 }
 0x88f   : > { %v1202_v44 = vmul.f32 %v1201_v42, %v1107_v14  ;;  %v4430_v42 = vld [vmem:[%s6348_s9 + $0x6] ss:$0 sm:$0xff] }
 0x891   : > { %v5731_v45 = vadd.f32 %v1202_v44, %v1200_v43 }
 0x893   : > { %4770 = vmatmul.mubr.msk.f32.vlgmr.msra.gmra.mrb[10].mxu1 %vm512_vm1, %v5731_v45  ;;  %v1495_v46 = vsel %vm512_vm1, %v5731_v45, 0.0 }
 0x894   : > { %1496 = vadd.xlane.f32.xlu1 %v1495_v46  ;;  %4774 = vmatprep.mubr.msk.f32.mxu1 %vm5425_vm0, %v5426_v6 }
 0x91b   : > { %v1279_v51 = vpop.xlane.xlu0 %1278 }
 0x91c   : > { %v5754_v52 = vmul.f32 %v4425_v50, %v1279_v51  ;;  %v492_v51 = vld [vmem:[%s6347_s8 + $0x40] sm:$0xff] }
 0x921   : > { %v1497_v56 = vpop.xlane.xlu1 %1496 }
 0x922   : > { %v1498_v57 = vmul.f32 0.03125, %v1497_v56 }
 0x924   : > { %v1499_v58 = vsub.f32 %v5731_v45, %v1498_v57 }
 0x926   : > { %v1500_v59 = vmul.f32 %v1499_v58, %v1499_v58 }
 0x928   : > { %v1501_v60 = vsel %vm512_vm1, %v1500_v59, 0.0 }
 0x966   : > { %v1273_v48 = vpop.f32.mrb[10].mxu1 }
 0x967   : > { %v4771_v49 = vpop.f32.mrb[11].mxu1  ;;  %4773 = vmatpush3.msra.mxu1 %v1273_v48 }
 0x968   : > { %4775 = vmatmul.mubr.msk.f32.vlgmr.msra.gmra.mrb[12].mxu1 %vm595_vm3, %v5742_v47  ;;  %5140 = vmatprep.subr.bf16.mxu1 %v5424_v3 }
 0x969   : > { %4785 = vmatprep.mubr.msk.f32.mxu1 %vm5425_vm0, %v5426_v6 }
 0xa3b   : > { %v1354_v53 = vpop.f32.mrb[12].mxu1 }
 0xa3c   : > { %v1355_v54 = vadd.f32 %v1354_v53, %v5754_v52  ;;  %v4776_v55 = vpop.f32.mrb[13].mxu1  ;;  %v493_v53 = vld [vmem:[%s6347_s8 + $0x48] sm:$0xff] }
 0xa3d   : > { %v494_v55 = vld [vmem:[%s6347_s8 + $0x50] sm:$0xff]  ;;  %v5817_v56 = vpack.c.bf16 %v493_v53, %v492_v51 }
 0xa3e   : > { %1382 = vrot.lane.b32.xlu1 %v1355_v54, %s5427_s26  ;;  %v1358_v37 = vsel %vm669_vm4, %v1355_v54, 0.0 }
 0xa3f   : > { %5142 = vmatpush3.bf16.msra.mxu1 %v5817_v56 }
 0xa40   : > { %5143 = vmatprep.subr.bf16.mxu1 %v5424_v3 }
 0xa62   : > { %1502 = vadd.xlane.f32.xlu1 %v1501_v60 }
 0xa73   : > { %1407 = vrot.lane.b32.xlu1 %v4429_v10, %s5428_s20 }
 0xab0   : > { %v1383_v7 = vpop.permute.xlu1 %1382 }
 0xab1   : > { %v1385_v8 = vsel %vm669_vm4, %v1383_v7, 0.0 }
 0xab2   : > { %1386 = vadd.xlane.f32.xlu0 %v1385_v8 }
 0xaef   : > { %v1503_v12 = vpop.xlane.xlu1 %1502 }
 0xaf0   : > { %v1504_v14 = vmul.f32 0.03125, %v1503_v12 }
 0xaf2   : > { %v1505_v15 = vadd.f32 1e-05, %v1504_v14 }
 0xaf4   : > { %5350 = vrsqrt.f32 %v1505_v15 }
 0xafe   : > { %v5351_v16 = vpop.eup %5350 }
 0xaff   : > { %v1507_v18 = vmul.f32 %v5351_v16, %v1499_v58  ;;  %v5828_v58 = vpop.permute.xlu1 %1407 }
 0xb01   : > { %v1512_v21 = vmul.f32 %v5788_v17, %v1507_v18  ;;  %v5838_v18 = vld [vmem:[%s6348_s9 + $0x3] ss:$0 sm:$0xff] }
 0xb03   : > { %v1517_v26 = vadd.f32 %v5793_v19, %v1512_v21 }
 0xb05   : > { %4797 = vmatmul.mubr.msk.f32.vlgmr.msra.gmra.mrb[4].mxu0 %vm512_vm1, %v1517_v26  ;;  %v5844_v26 = vld [vmem:[%s6348_s9 + $0x4] ss:$0 sm:$0xff] }
 0xb06   : > { %4806 = vmatprep.mubr.msk.f32.mxu0 %vm5425_vm0, %v5426_v6 }
 0xb3f   : > { %v1387_v32 = vpop.xlane.xlu0 %1386 }
 0xb40   : > { %v1388_v34 = vmul.f32 0.03125, %v1387_v32 }
 0xb42   : > { %v1389_v35 = vsub.f32 %v1355_v54, %v1388_v34 }
 0xb44   : > { %v1390_v36 = vmul.f32 %v1389_v35, %v1389_v35 }
 0xb46   : > { %1392 = vrot.lane.b32.xlu0 %v1390_v36, %s5427_s26 }
 0xb65   : > { %1359 = vadd.xlane.f32.xlu0 %v1358_v37 }
 0xbb8   : > { %v1393_v38 = vpop.permute.xlu0 %1392 }
 0xbb9   : > { %v1395_v40 = vsel %vm669_vm4, %v1393_v38, 0.0 }
 0xbba   : > { %1396 = vadd.xlane.f32.xlu1 %v1395_v40 }
 0xbcb   : > { %1416 = vrot.lane.b32.xlu1 %v4430_v42, %s5428_s20 }
 0xbd8   : > { %v1587_v43 = vpop.f32.mrb[4].mxu0 }
 0xbd9   : > { %v4798_v44 = vpop.f32.mrb[5].mxu0 }
 0xbf2   : > { %v1360_v46 = vpop.xlane.xlu0 %1359 }
 0xbf3   : > { %v1361_v11 = vmul.f32 0.03125, %v1360_v46 }
 0xbf5   : > { %v1362_v48 = vsub.f32 %v1355_v54, %v1361_v11  ;;  %v495_v54 = vld [vmem:[%s6347_s8 + $0x58] sm:$0xff] }
 0xbf6   : > { %v5823_v57 = vpack.c.bf16 %v495_v54, %v494_v55 }
 0xbf7   : > { %v1363_v49 = vmul.f32 %v1362_v48, %v1362_v48 }
 0xbf8   : > { %5145 = vmatpush3.bf16.msra.mxu1 %v5823_v57 }
 0xbf9   : > { %v1364_v50 = vsel %vm669_vm4, %v1363_v49, 0.0  ;;  %4799 = vmatprep.subr.mxu1 %v5426_v6 }
 0xbfa   : > { %1365 = vadd.xlane.f32.xlu1 %v1364_v50 }
 0xc47   : > { %v1397_v59 = vpop.xlane.xlu1 %1396 }
 0xc48   : > { %v1398_v60 = vmul.f32 0.03125, %v1397_v59 }
 0xc4a   : > { %v1399_v61 = vadd.f32 1e-05, %v1398_v60 }
 0xc4b   : > { %v5830_v1 = vpop.permute.xlu1 %1416 }
 0xc4c   : > { %5352 = vrsqrt.f32 %v1399_v61 }
 0xc56   : > { %v5353_v62 = vpop.eup %5352 }
 0xc57   : > { %v1401_v0 = vmul.f32 %v5353_v62, %v1389_v35 }
 0xc59   : > { %v1410_v7 = vmul.f32 %v5828_v58, %v1401_v0 }
 0xc5b   : > { %v1419_v8 = vadd.f32 %v5830_v1, %v1410_v7 }
 0xc5d   : > { %1421 = vrot.lane.b32.xlu0 %v1419_v8, %s5427_s26 }
 0xc87   : > { %v1366_v10 = vpop.xlane.xlu1 %1365 }
 0xc88   : > { %v1367_v12 = vmul.f32 0.03125, %v1366_v10 }
 0xc8a   : > { %v1368_v14 = vadd.f32 1e-05, %v1367_v12 }
 0xc8c   : > { %5354 = vrsqrt.f32 %v1368_v14 }
 0xc96   : > { %v5355_v15 = vpop.eup %5354 }
 0xc97   : > { %v1370_v16 = vmul.f32 %v5355_v15, %v1362_v48 }
 0xc99   : > { %v1375_v21 = vmul.f32 %v5838_v18, %v1370_v16 }
 0xc9b   : > { %v1380_v34 = vadd.f32 %v5844_v26, %v1375_v21 }
 0xccf   : > { %v1422_v32 = vpop.permute.xlu0 %1421 }
 0xcd0   : > { %4786 = vmatmul.mubr.msk.f32.vlgmr.msra.gmra.mrb[14].mxu1 %vm512_vm1, %v1422_v32 }
 0xcd1   : > { %4800 = vmatpush3.xpose.msk.msra.mxu1 %vm512_vm1, %v1380_v34  ;;  %4801 = vmatprep.mubr.msk.f32.mxu1 %vm5425_vm0, %v5426_v6 }
 0xcd2   : > { %5152 = vmatprep.subr.bf16.mxu1 %v5424_v3 }
 0xcd4   : > { %4802 = vmatmul.mubr.msk.f32.vlgmr.msra.gmra.mrb[16].mxu1 %vm512_vm1, %v1587_v43 }
 0xcd5   : > { %4825 = vmatprep.mubr.msk.f32.mxu1 %vm5425_vm0, %v5426_v6 }
 0xda3   : > { %v1491_v35 = vpop.f32.mrb[14].mxu1 }
 0xda4   : > { %v4787_v36 = vpop.f32.mrb[15].mxu1  ;;  %4805 = vmatpush3.msk.msra.mxu0 %vm1037_vm5, %v1491_v35  ;;  %v496_v35 = vld [vmem:[%s6347_s8 + $0x60] sm:$0xff] }
 0xda5   : > { %5164 = vmatprep.subr.bf16.mxu0 %v5424_v3  ;;  %v497_v36 = vld [vmem:[%s6347_s8 + $0x68] sm:$0xff] }
 0xda7   : > { %v1663_v37 = vpop.f32.mrb[16].mxu1 }
 0xda8   : > { %1689 = vperm.xlu1 %5321, %v1663_v37   ;;  %1669 = vperm.xlu0 %5316, %v1663_v37   ;;  %v4803_v38 = vpop.f32.mrb[17].mxu1 }
 0xda9   : > { %v5882_v38 = vpack.c.bf16 %v497_v36, %v496_v35 }
 0xdab   : > { %5154 = vmatpush3.bf16.msra.mxu1 %v5882_v38 }
 0xdac   : > { %5320 = vset.pattern.permute.xlu0 %v5429_v23  ;;  %5324 = vset.pattern.permute.xlu1 %v5429_v23 }
 0xdad   : > { %1679 = vperm.xlu0 %5320, %v1663_v37   ;;  %5155 = vmatprep.subr.bf16.mxu1 %v5424_v3 }
 0xdb1   : > { %5322 = vset.pattern.permute.xlu0 %v5432_v31 }
 0xdb2   : > { %1699 = vperm.xlu0 %5322, %v1663_v37  }
 0xdb6   : > { %5323 = vset.pattern.permute.xlu0 %v5430_v24 }
 0xe27   : > { %v1670_v40 = vpop.permute.xlu0 %1669  ;;  %v1690_v42 = vpop.permute.xlu1 %1689 }
 0xe28   : > { %vm1672_vm13 = vcmp.ge.f32.partialorder %v1670_v40, %v1663_v37  ;;  %vm1692_vm14 = vcmp.ge.f32.partialorder %v1690_v42, %v1663_v37 }
 0xe29   : > { %v4437_v44 = vsel %vm1672_vm13, 1.0, %v5426_v6  ;;  %v4439_v49 = vsel %vm1692_vm14, 1.0, %v5426_v6 }
 0xe2a   : > { %v1676_v50 = vmul.f32 %v4437_v44, %v1670_v40  ;;  %v1696_v60 = vmul.f32 %v4439_v49, %v1690_v42  ;;  %v499_v40 = vld [vmem:[%s6347_s8 + $0x78] sm:$0xff] }
 0xe2c   : > { %v1680_v43 = vpop.permute.xlu0 %1679 }
 0xe2d   : > { %vm1682_vm15 = vcmp.ge.f32.partialorder %v1680_v43, %v1663_v37 }
 0xe2e   : > { %v4438_v46 = vsel %vm1682_vm15, 1.0, %v5426_v6 }
 0xe2f   : > { %v1685_v11 = vadd.f32 %v4438_v46, %v4437_v44  ;;  %v1686_v48 = vmul.f32 %v4438_v46, %v1680_v43  ;;  %v500_v43 = vld [vmem:[%s6347_s8 + $0x80] sm:$0xff]  ;;  %v501_v44 = vld [vmem:[%s6347_s8 + $0x88] sm:$0xff] }
 0xe30   : > { %v5898_v46 = vpack.c.bf16 %v501_v44, %v500_v43 }
 0xe31   : > { %v1695_v51 = vadd.f32 %v4439_v49, %v1685_v11  ;;  %v1700_v53 = vpop.permute.xlu0 %1699  ;;  %v1687_v55 = vadd.f32 %v1686_v48, %v1676_v50  ;;  %v502_v11 = vld [vmem:[%s6347_s8 + $0x90] sm:$0xff]  ;;  %v503_v48 = vld [vmem:[%s6347_s8 + $0x98] sm:$0xff] }
 0xe32   : > { %vm1702_vm2 = vcmp.ge.f32.partialorder %v1700_v53, %v1663_v37  ;;  %v5908_v49 = vpack.c.bf16 %v503_v48, %v502_v11 }
 0xe33   : > { %v4440_v54 = vsel %vm1702_vm2, 1.0, %v5426_v6  ;;  %v1697_v61 = vadd.f32 %v1696_v60, %v1687_v55 }
 0xe34   : > { %v1705_v59 = vadd.f32 %v4440_v54, %v1695_v51  ;;  %v1706_v62 = vmul.f32 %v4440_v54, %v1700_v53  ;;  %v5930_v54 = vld [vmem:[%s6348_s9 + $0x7] ss:$0 sm:$0xff] }
 0xe36   : > { %5356 = vrcp.f32 %v1705_v59  ;;  %v1708_v0 = vmul.f32 %v1705_v59, %v1663_v37  ;;  %v1707_v7 = vadd.f32 %v1706_v62, %v1697_v61 }
 0xe38   : > { %v1709_v8 = vadd.f32 1.0, %v1708_v0  ;;  %v4441_v10 = vadd.f32 -1.0, %v1707_v7 }
 0xe3a   : > { %vm1710_vm6 = vcmp.gt.f32.partialorder %v1709_v8, %v1707_v7 }
 0xe40   : > { %v5357_v12 = vpop.eup %5356 }
 0xe41   : > { %v1713_v14 = vmul.f32 %v5357_v12, %v4441_v10 }
 0xe43   : > { %v1714_v15 = vsel %vm1710_vm6, %v1713_v14, -inf }
 0xe44   : > { %v1715_v16 = vsel %vm1028_vm10, %v1714_v15, -inf }
 0xe45   : > { %1716 = vmax.xlane.f32.xlu0 %v1715_v16 }
 0xed2   : > { %v1717_v21 = vpop.xlane.xlu0 %1716 }
 0xed3   : > { %v1718_v32 = vsub.f32 %v1663_v37, %v1717_v21  ;;  %v498_v37 = vld [vmem:[%s6347_s8 + $0x70] sm:$0xff] }
 0xed4   : > { %v5888_v42 = vpack.c.bf16 %v499_v40, %v498_v37 }
 0xed5   : > { %v1719_v34 = vmax.f32 %v1718_v32, 0.0 }
 0xed6   : > { %5157 = vmatpush3.bf16.msra.mxu1 %v5888_v42 }
 0xed7   : > { %4807 = vmatmul.mubr.msk.f32.vlgmr.msra.gmra.mrb[6].mxu0 %vm1028_vm10, %v1719_v34  ;;  %5158 = vmatprep.subr.bf16.mxu1 %v5424_v3 }
 0xed8   : > { %5166 = vmatpush3.bf16.msra.mxu0 %v5566_v28  ;;  %4836 = vmatprep.mubr.msk.f32.mxu0 %vm5425_vm0, %v5426_v6 }
 0xed9   : > { %5167 = vmatprep.subr.bf16.mxu0 %v5424_v3 }
 0xeda   : > { %5160 = vmatpush3.bf16.msra.mxu1 %v5898_v46 }
 0xedb   : > { %5161 = vmatprep.subr.bf16.mxu1 %v5424_v3 }
 0xedc   : > { %5169 = vmatpush3.bf16.msra.mxu0 %v5577_v33 }
 0xedd   : > { %4839 = vmatprep.subr.mxu0 %v5426_v6 }
 0xede   : > { %5163 = vmatpush3.bf16.msra.mxu1 %v5908_v49 }
 0xedf   : > { %5170 = vmatprep.subr.bf16.mxu1 %v5424_v3 }
 0xfaa   : > { %v1792_v50 = vpop.f32.mrb[6].mxu0 }
 0xfab   : > { %1797 = vrot.lane.b32.xlu1 %v1792_v50, %s5428_s20  ;;  %v4808_v51 = vpop.f32.mrb[7].mxu0 }
0x101d   : > { %v1798_v53 = vpop.permute.xlu1 %1797 }
0x101e   : > { %v1800_v55 = vsel %vm512_vm1, %v5731_v45, %v1798_v53 }
0x101f   : > { %4826 = vmatmul.mubr.msk.f32.vlgmr.msra.gmra.mrb[18].mxu1 %vm1120_vm12, %v1800_v55 }
0x1020   : > { %5172 = vmatpush3.bf16.msra.mxu1 %v5667_v2  ;;  %4865 = vmatprep.mubr.msk.f32.mxu1 %vm5425_vm0, %v5426_v6 }
0x1021   : > { %5173 = vmatprep.subr.bf16.mxu1 %v5424_v3 }
0x1024   : > { %5175 = vmatpush3.bf16.msra.mxu1 %v5673_v5 }
0x1025   : > { %5176 = vmatprep.subr.bf16.mxu1 %v5424_v3 }
0x1028   : > { %5178 = vmatpush3.bf16.msra.mxu1 %v5683_v9 }
0x1029   : > { %5179 = vmatprep.subr.bf16.mxu1 %v5424_v3 }
0x102c   : > { %5181 = vmatpush3.bf16.msra.mxu1 %v5693_v13 }
0x102d   : > { %5194 = vmatprep.subr.bf16.mxu1 %v5424_v3 }
0x10f2   : > { %v1874_v59 = vpop.f32.mrb[18].mxu1 }
0x10f3   : > { %v1875_v60 = vadd.f32 %v5930_v54, %v1874_v59  ;;  %v4827_v61 = vpop.f32.mrb[19].mxu1 }
0x10f5   : > { %v4446_v62 = vmul.f32 -1.442695, %v1875_v60 }
0x10f7   : > { %5358 = vpow2.f32 %v4446_v62 }
0x1101   : > { %v5359_v0 = vpop.eup %5358 }
0x1102   : > { %v1881_v7 = vadd.f32 1.0, %v5359_v0 }
0x1104   : > { %5360 = vrcp.f32 %v1881_v7 }
0x110e   : > { %v5361_v8 = vpop.eup %5360 }
0x110f   : > { %v1885_v10 = vsub.f32 1.0, %v5361_v8  ;;  %v1884_v12 = vmul.f32 %v5361_v8, %v5731_v45 }
0x1111   : > { %v1886_v14 = vmul.f32 %v1885_v10, %v1792_v50 }
0x1113   : > { %v5934_v15 = vadd.f32 %v1886_v14, %v1884_v12 }
0x1115   : > { %v1888_v16 = vsel %vm512_vm1, %v5934_v15, 0.0 }
0x1116   : > { %1889 = vadd.xlane.f32.xlu1 %v1888_v16 }
0x11a3   : > { %v1890_v21 = vpop.xlane.xlu1 %1889 }
0x11a4   : > { %v1891_v32 = vmul.f32 0.03125, %v1890_v21 }
0x11a6   : > { %v1892_v34 = vsub.f32 %v5934_v15, %v1891_v32 }
0x11a8   : > { %v1893_v35 = vmul.f32 %v1892_v34, %v1892_v34 }
0x11aa   : > { %v1894_v36 = vsel %vm512_vm1, %v1893_v35, 0.0 }
0x11ab   : > { %1895 = vadd.xlane.f32.xlu0 %v1894_v36 }
0x1238   : > { %v1896_v37 = vpop.xlane.xlu0 %1895 }
0x1239   : > { %v1897_v40 = vmul.f32 0.03125, %v1896_v37 }
0x123b   : > { %v1898_v43 = vadd.f32 1e-05, %v1897_v40 }
0x123d   : > { %5362 = vrsqrt.f32 %v1898_v43 }
0x1247   : > { %v5363_v45 = vpop.eup %5362 }
0x1248   : > { %v1900_v44 = vmul.f32 %v5363_v45, %v1892_v34 }
0x124a   : > { %v1901_v11 = vmul.f32 %v5588_v39, %v1900_v44 }
0x124c   : > { %v1902_v48 = vadd.f32 %v5593_v41, %v1901_v11 }
0x124e   : > { %4837 = vmatmul.mubr.msk.f32.vlgmr.msra.gmra.mrb[8].mxu0 %vm512_vm1, %v1902_v48 }
0x124f   : > { %4840 = vmatpush3.xpose.msk.msra.mxu0 %vm512_vm1, %v5629_v22  ;;  %4841 = vmatprep.mubr.msk.f32.mxu0 %vm5425_vm0, %v5426_v6 }
0x1250   : > { %4844 = vmatprep.subr.mxu0 %v5426_v6 }
0x1321   : > { %v1972_v50 = vpop.f32.mrb[8].mxu0 }
0x1322   : > { %v4838_v51 = vpop.f32.mrb[9].mxu0  ;;  %4842 = vmatmul.mubr.msk.f32.vlgmr.msra.gmra.mrb[10].mxu0 %vm512_vm1, %v1972_v50 }
0x1323   : > { %4845 = vmatpush3.msk.msra.mxu0 %vm1037_vm5, %v5642_v25  ;;  %4846 = vmatprep.mubr.msk.f32.mxu0 %vm5425_vm0, %v5426_v6 }
0x1324   : > { %5182 = vmatprep.subr.bf16.mxu0 %v5424_v3 }
0x13f5   : > { %v2045_v39 = vpop.f32.mrb[10].mxu0 }
0x13f6   : > { %2061 = vperm.xlu1 %5324, %v2045_v39   ;;  %2051 = vperm.xlu0 %5323, %v2045_v39   ;;  %v4843_v41 = vpop.f32.mrb[11].mxu0 }
0x13fa   : > { %5325 = vset.pattern.permute.xlu1 %v5431_v30 }
0x13fb   : > { %2071 = vperm.xlu1 %5325, %v2045_v39  }
0x13ff   : > { %5326 = vset.pattern.permute.xlu1 %v5432_v31 }
0x1400   : > { %2081 = vperm.xlu1 %5326, %v2045_v39  }
0x1404   : > { %5327 = vset.pattern.permute.xlu1 %v5429_v23 }
0x1475   : > { %v2062_v53 = vpop.permute.xlu1 %2061  ;;  %v2052_v55 = vpop.permute.xlu0 %2051 }
0x1476   : > { %vm2064_vm7 = vcmp.ge.f32.partialorder %v2062_v53, %v2045_v39  ;;  %vm2054_vm8 = vcmp.ge.f32.partialorder %v2052_v55, %v2045_v39 }
0x1477   : > { %v4451_v60 = vsel %vm2064_vm7, 1.0, %v5426_v6  ;;  %v4450_v61 = vsel %vm2054_vm8, 1.0, %v5426_v6 }
0x1478   : > { %v2067_v0 = vadd.f32 %v4451_v60, %v4450_v61  ;;  %v2068_v10 = vmul.f32 %v4451_v60, %v2062_v53  ;;  %v2058_v12 = vmul.f32 %v4450_v61, %v2052_v55 }
0x147a   : > { %v2072_v59 = vpop.permute.xlu1 %2071  ;;  %v2069_v32 = vadd.f32 %v2068_v10, %v2058_v12 }
0x147b   : > { %vm2074_vm9 = vcmp.ge.f32.partialorder %v2072_v59, %v2045_v39 }
0x147c   : > { %v4452_v62 = vsel %vm2074_vm9, 1.0, %v5426_v6 }
0x147d   : > { %v2077_v8 = vadd.f32 %v4452_v62, %v2067_v0  ;;  %v2078_v21 = vmul.f32 %v4452_v62, %v2072_v59 }
0x147f   : > { %v2082_v7 = vpop.permute.xlu1 %2081  ;;  %v2079_v35 = vadd.f32 %v2078_v21, %v2069_v32 }
0x1480   : > { %vm2084_vm11 = vcmp.ge.f32.partialorder %v2082_v7, %v2045_v39 }
0x1481   : > { %v4453_v14 = vsel %vm2084_vm11, 1.0, %v5426_v6 }
0x1482   : > { %v2087_v16 = vadd.f32 %v4453_v14, %v2077_v8  ;;  %v2088_v34 = vmul.f32 %v4453_v14, %v2082_v7 }
0x1484   : > { %5364 = vrcp.f32 %v2087_v16  ;;  %v2090_v36 = vmul.f32 %v2087_v16, %v2045_v39  ;;  %v2089_v37 = vadd.f32 %v2088_v34, %v2079_v35 }
0x1486   : > { %v2091_v40 = vadd.f32 1.0, %v2090_v36  ;;  %v4454_v43 = vadd.f32 -1.0, %v2089_v37 }
0x1488   : > { %vm2092_vm13 = vcmp.gt.f32.partialorder %v2091_v40, %v2089_v37 }
0x148e   : > { %v5365_v45 = vpop.eup %5364 }
0x148f   : > { %v2095_v44 = vmul.f32 %v5365_v45, %v4454_v43 }
0x1491   : > { %v2096_v11 = vsel %vm2092_vm13, %v2095_v44, -inf }
0x1492   : > { %v2097_v48 = vsel %vm1028_vm10, %v2096_v11, -inf }
0x1493   : > { %2098 = vmax.xlane.f32.xlu1 %v2097_v48 }
0x1520   : > { %v2099_v50 = vpop.xlane.xlu1 %2098 }
0x1521   : > { %v2100_v51 = vsub.f32 %v2045_v39, %v2099_v50 }
0x1523   : > { %v2101_v41 = vmax.f32 %v2100_v51, 0.0 }
0x1525   : > { %4847 = vmatmul.mubr.msk.f32.vlgmr.msra.gmra.mrb[12].mxu0 %vm1028_vm10, %v2101_v41 }
0x1526   : > { %5184 = vmatpush3.bf16.msra.mxu0 %v5710_v20  ;;  %4876 = vmatprep.mubr.msk.f32.mxu0 %vm5425_vm0, %v5426_v6 }
0x1527   : > { %5185 = vmatprep.subr.bf16.mxu0 %v5424_v3 }
0x152a   : > { %5187 = vmatpush3.bf16.msra.mxu0 %v5720_v27 }
0x152b   : > { %4879 = vmatprep.subr.mxu0 %v5426_v6 }
0x15f8   : > { %v2171_v53 = vpop.f32.mrb[12].mxu0 }
0x15f9   : > { %2176 = vrot.lane.b32.xlu0 %v2171_v53, %s5428_s20  ;;  %v4848_v55 = vpop.f32.mrb[13].mxu0 }
0x166b   : > { %v2177_v59 = vpop.permute.xlu0 %2176 }
0x166c   : > { %v2179_v39 = vsel %vm512_vm1, %v5934_v15, %v2177_v59 }
0x166d   : > { %4866 = vmatmul.mubr.msk.f32.vlgmr.msra.gmra.mrb[20].mxu1 %vm1120_vm12, %v2179_v39 }
0x166e   : > { %5196 = vmatpush3.bf16.msra.mxu1 %v5766_v63  ;;  %4903 = vmatprep.mubr.msk.f32.mxu1 %vm5425_vm0, %v5426_v6 }
0x166f   : > { %5197 = vmatprep.subr.bf16.mxu1 %v5424_v3 }
0x1672   : > { %5199 = vmatpush3.bf16.msra.mxu1 %v5776_v4 }
0x1673   : > { %4911 = vmatprep.subr.mxu1 %v5426_v6 }
0x1740   : > { %v2249_v60 = vpop.f32.mrb[20].mxu1 }
0x1741   : > { %v2250_v61 = vadd.f32 %v5727_v29, %v2249_v60  ;;  %v4867_v62 = vpop.f32.mrb[21].mxu1 }
0x1743   : > { %v4458_v0 = vmul.f32 -1.442695, %v2250_v61 }
0x1745   : > { %5366 = vpow2.f32 %v4458_v0 }
0x174f   : > { %v5367_v7 = vpop.eup %5366 }
0x1750   : > { %v2256_v8 = vadd.f32 1.0, %v5367_v7 }
0x1752   : > { %5368 = vrcp.f32 %v2256_v8 }
0x175c   : > { %v5369_v10 = vpop.eup %5368 }
0x175d   : > { %v2260_v12 = vsub.f32 1.0, %v5369_v10  ;;  %v2259_v14 = vmul.f32 %v5369_v10, %v5934_v15 }
0x175f   : > { %v2261_v16 = vmul.f32 %v2260_v12, %v2171_v53 }
0x1761   : > { %v5981_v21 = vadd.f32 %v2261_v16, %v2259_v14 }
0x1763   : > { %4877 = vmatmul.mubr.msk.f32.vlgmr.msra.gmra.mrb[14].mxu0 %vm512_vm1, %v5981_v21  ;;  %v2519_v32 = vsel %vm512_vm1, %v5981_v21, 0.0 }
0x1764   : > { %2520 = vadd.xlane.f32.xlu0 %v2519_v32  ;;  %4881 = vmatprep.mubr.msk.f32.mxu0 %vm5425_vm0, %v5426_v6 }
0x17f1   : > { %v2521_v29 = vpop.xlane.xlu0 %2520 }
0x17f2   : > { %v2522_v34 = vmul.f32 0.03125, %v2521_v29 }
0x17f4   : > { %v2523_v35 = vsub.f32 %v5981_v21, %v2522_v34 }
0x17f6   : > { %v2524_v36 = vmul.f32 %v2523_v35, %v2523_v35 }
0x17f8   : > { %v2525_v15 = vsel %vm512_vm1, %v2524_v36, 0.0 }
0x17f9   : > { %2526 = vadd.xlane.f32.xlu0 %v2525_v15 }
0x1836   : > { %v2332_v37 = vpop.f32.mrb[14].mxu0 }
0x1837   : > { %v4878_v40 = vpop.f32.mrb[15].mxu0  ;;  %4880 = vmatpush3.msra.mxu0 %v2332_v37 }
0x1838   : > { %4882 = vmatmul.mubr.msk.f32.vlgmr.msra.gmra.mrb[16].mxu0 %vm595_vm3, %v5742_v47  ;;  %5188 = vmatprep.subr.bf16.mxu0 %v5424_v3 }
0x1839   : > { %5190 = vmatpush3.bf16.msra.mxu0 %v5817_v56  ;;  %4892 = vmatprep.mubr.msk.f32.mxu0 %vm5425_vm0, %v5426_v6 }
0x183a   : > { %5191 = vmatprep.subr.bf16.mxu0 %v5424_v3 }
0x183d   : > { %5193 = vmatpush3.bf16.msra.mxu0 %v5823_v57 }
0x183e   : > { %4906 = vmatprep.subr.mxu0 %v5426_v6 }
0x1886   : > { %v2527_v43 = vpop.xlane.xlu0 %2526 }
0x1887   : > { %v2528_v45 = vmul.f32 0.03125, %v2527_v43 }
0x1889   : > { %v2529_v44 = vadd.f32 1e-05, %v2528_v45 }
0x188b   : > { %5370 = vrsqrt.f32 %v2529_v44 }
0x1895   : > { %v5371_v11 = vpop.eup %5370 }
0x1896   : > { %v2531_v48 = vmul.f32 %v5371_v11, %v2523_v35 }
0x1898   : > { %v2532_v47 = vmul.f32 %v5788_v17, %v2531_v48 }
0x189a   : > { %v2533_v50 = vadd.f32 %v5793_v19, %v2532_v47 }
0x189c   : > { %4904 = vmatmul.mubr.msk.f32.vlgmr.msra.gmra.mrb[22].mxu1 %vm512_vm1, %v2533_v50 }
0x189d   : > { %4913 = vmatprep.mubr.msk.f32.mxu1 %vm5425_vm0, %v5426_v6 }
0x190b   : > { %v2402_v51 = vpop.f32.mrb[16].mxu0 }
0x190c   : > { %v2403_v41 = vadd.f32 %v2402_v51, %v5754_v52  ;;  %v4883_v53 = vpop.f32.mrb[17].mxu0 }
0x190e   : > { %2422 = vrot.lane.b32.xlu1 %v2403_v41, %s5427_s26  ;;  %v2406_v55 = vsel %vm669_vm4, %v2403_v41, 0.0 }
0x1932   : > { %2407 = vadd.xlane.f32.xlu1 %v2406_v55 }
0x196f   : > { %v2603_v59 = vpop.f32.mrb[22].mxu1 }
0x1970   : > { %v4905_v39 = vpop.f32.mrb[23].mxu1 }
0x1980   : > { %v2423_v60 = vpop.permute.xlu1 %2422 }
0x1981   : > { %v2425_v17 = vsel %vm669_vm4, %v2423_v60, 0.0 }
0x1982   : > { %2426 = vadd.xlane.f32.xlu0 %v2425_v17 }
0x19bf   : > { %v2408_v19 = vpop.xlane.xlu1 %2407 }
0x19c0   : > { %v2409_v61 = vmul.f32 0.03125, %v2408_v19 }
0x19c2   : > { %v2410_v62 = vsub.f32 %v2403_v41, %v2409_v61 }
0x19c4   : > { %v2411_v0 = vmul.f32 %v2410_v62, %v2410_v62 }
0x19c6   : > { %v2412_v7 = vsel %vm669_vm4, %v2411_v0, 0.0 }
0x19c7   : > { %2413 = vadd.xlane.f32.xlu1 %v2412_v7 }
0x1a0f   : > { %v2427_v8 = vpop.xlane.xlu0 %2426 }
0x1a10   : > { %v2428_v10 = vmul.f32 0.03125, %v2427_v8 }
0x1a12   : > { %v2429_v12 = vsub.f32 %v2403_v41, %v2428_v10 }
0x1a14   : > { %v2430_v14 = vmul.f32 %v2429_v12, %v2429_v12 }
0x1a16   : > { %2432 = vrot.lane.b32.xlu0 %v2430_v14, %s5427_s26 }
0x1a54   : > { %v2414_v43 = vpop.xlane.xlu1 %2413 }
0x1a55   : > { %v2415_v45 = vmul.f32 0.03125, %v2414_v43 }
0x1a57   : > { %v2416_v44 = vadd.f32 1e-05, %v2415_v45 }
0x1a88   : > { %v2433_v16 = vpop.permute.xlu0 %2432 }
0x1a89   : > { %v2435_v32 = vsel %vm669_vm4, %v2433_v16, 0.0 }
0x1a8a   : > { %2436 = vadd.xlane.f32.xlu0 %v2435_v32 }
0x1b17   : > { %v2437_v29 = vpop.xlane.xlu0 %2436 }
0x1b18   : > { %v2438_v34 = vmul.f32 0.03125, %v2437_v29 }
0x1b1a   : > { %v2439_v35 = vadd.f32 1e-05, %v2438_v34 }
0x1b1c   : > { %5372 = vrsqrt.f32 %v2439_v35 }
0x1b1d   : > { %5374 = vrsqrt.f32 %v2416_v44 }
0x1b26   : > { %v5373_v36 = vpop.eup %5372 }
0x1b27   : > { %v2441_v15 = vmul.f32 %v5373_v36, %v2429_v12  ;;  %v5375_v11 = vpop.eup %5374 }
0x1b28   : > { %v2418_v48 = vmul.f32 %v5375_v11, %v2410_v62 }
0x1b29   : > { %v2442_v37 = vmul.f32 %v2441_v15, %v5828_v58 }
0x1b2a   : > { %v2419_v47 = vmul.f32 %v5838_v18, %v2418_v48 }
0x1b2b   : > { %v2443_v40 = vadd.f32 %v2442_v37, %v5830_v1 }
0x1b2c   : > { %v2420_v51 = vadd.f32 %v5844_v26, %v2419_v47 }
0x1b2d   : > { %2445 = vrot.lane.b32.xlu1 %v2443_v40, %s5427_s26 }
0x1b9f   : > { %v2446_v50 = vpop.permute.xlu1 %2445 }
0x1ba0   : > { %4893 = vmatmul.mubr.msk.f32.vlgmr.msra.gmra.mrb[18].mxu0 %vm512_vm1, %v2446_v50 }
0x1ba1   : > { %4907 = vmatpush3.xpose.msk.msra.mxu0 %vm512_vm1, %v2420_v51  ;;  %4908 = vmatprep.mubr.msk.f32.mxu0 %vm5425_vm0, %v5426_v6 }
0x1ba2   : > { %5200 = vmatprep.subr.bf16.mxu0 %v5424_v3 }
0x1ba4   : > { %4909 = vmatmul.mubr.msk.f32.vlgmr.msra.gmra.mrb[20].mxu0 %vm512_vm1, %v2603_v59 }
0x1ba5   : > { %5202 = vmatpush3.bf16.msra.mxu0 %v5882_v38  ;;  %4932 = vmatprep.mubr.msk.f32.mxu0 %vm5425_vm0, %v5426_v6 }
0x1ba6   : > { %5203 = vmatprep.subr.bf16.mxu0 %v5424_v3 }
0x1ba9   : > { %5205 = vmatpush3.bf16.msra.mxu0 %v5888_v42 }
0x1baa   : > { %5206 = vmatprep.subr.bf16.mxu0 %v5424_v3 }
0x1bad   : > { %5208 = vmatpush3.bf16.msra.mxu0 %v5898_v46 }
0x1bae   : > { %5209 = vmatprep.subr.bf16.mxu0 %v5424_v3 }
0x1bb1   : > { %5211 = vmatpush3.bf16.msra.mxu0 %v5908_v49 }
0x1bb2   : > { %5218 = vmatprep.subr.bf16.mxu0 %v5424_v3 }
0x1c73   : > { %v2515_v18 = vpop.f32.mrb[18].mxu0 }
0x1c74   : > { %v4894_v26 = vpop.f32.mrb[19].mxu0  ;;  %4912 = vmatpush3.msk.msra.mxu1 %vm1037_vm5, %v2515_v18 }
0x1c75   : > { %5212 = vmatprep.subr.bf16.mxu1 %v5424_v3 }
0x1c77   : > { %v2679_v41 = vpop.f32.mrb[20].mxu0 }
0x1c78   : > { %2695 = vperm.xlu1 %5327, %v2679_v41   ;;  %2685 = vperm.xlu0 %5323, %v2679_v41   ;;  %v4910_v53 = vpop.f32.mrb[21].mxu0 }
0x1c7c   : > { %5328 = vset.pattern.permute.xlu1 %v5431_v30 }
0x1c7d   : > { %2705 = vperm.xlu1 %5328, %v2679_v41  }
0x1c81   : > { %5329 = vset.pattern.permute.xlu1 %v5432_v31 }
0x1c82   : > { %2715 = vperm.xlu1 %5329, %v2679_v41  }
0x1c86   : > { %5330 = vset.pattern.permute.xlu1 %v5429_v23 }
0x1cf7   : > { %v2696_v55 = vpop.permute.xlu1 %2695  ;;  %v2686_v59 = vpop.permute.xlu0 %2685 }
0x1cf8   : > { %vm2698_vm14 = vcmp.ge.f32.partialorder %v2696_v55, %v2679_v41  ;;  %vm2688_vm15 = vcmp.ge.f32.partialorder %v2686_v59, %v2679_v41 }
0x1cf9   : > { %v4466_v60 = vsel %vm2698_vm14, 1.0, %v5426_v6  ;;  %v4465_v17 = vsel %vm2688_vm15, 1.0, %v5426_v6 }
0x1cfa   : > { %v2701_v61 = vadd.f32 %v4466_v60, %v4465_v17  ;;  %v2702_v7 = vmul.f32 %v4466_v60, %v2696_v55  ;;  %v2692_v8 = vmul.f32 %v4465_v17, %v2686_v59 }
0x1cfc   : > { %v2706_v39 = vpop.permute.xlu1 %2705  ;;  %v2703_v16 = vadd.f32 %v2702_v7, %v2692_v8 }
0x1cfd   : > { %vm2708_vm2 = vcmp.ge.f32.partialorder %v2706_v39, %v2679_v41 }
0x1cfe   : > { %v4467_v19 = vsel %vm2708_vm2, 1.0, %v5426_v6 }
0x1cff   : > { %v2711_v0 = vadd.f32 %v4467_v19, %v2701_v61  ;;  %v2712_v14 = vmul.f32 %v4467_v19, %v2706_v39 }
0x1d01   : > { %v2716_v62 = vpop.permute.xlu1 %2715  ;;  %v2713_v29 = vadd.f32 %v2712_v14, %v2703_v16  ;;  %v5407_v14 = vld [vmem:[%s6346_s7 + $0x2] ss:$0 sm:$0xff] }
0x1d02   : > { %vm2718_vm6 = vcmp.ge.f32.partialorder %v2716_v62, %v2679_v41 }
0x1d03   : > { %v4468_v10 = vsel %vm2718_vm6, 1.0, %v5426_v6 }
0x1d04   : > { %v2721_v12 = vadd.f32 %v4468_v10, %v2711_v0  ;;  %v2722_v32 = vmul.f32 %v4468_v10, %v2716_v62  ;;  %v5406_v10 = vld [vmem:[%s6346_s7 + $0x1] ss:$0 sm:$0xff] }
0x1d06   : > { %5376 = vrcp.f32 %v2721_v12  ;;  %v2724_v34 = vmul.f32 %v2721_v12, %v2679_v41  ;;  %v2723_v35 = vadd.f32 %v2722_v32, %v2713_v29 }
0x1d08   : > { %v2725_v36 = vadd.f32 1.0, %v2724_v34  ;;  %v4469_v15 = vadd.f32 -1.0, %v2723_v35 }
0x1d0a   : > { %vm2726_vm7 = vcmp.gt.f32.partialorder %v2725_v36, %v2723_v35 }
0x1d10   : > { %v5377_v37 = vpop.eup %5376 }
0x1d11   : > { %v2729_v40 = vmul.f32 %v5377_v37, %v4469_v15 }
0x1d13   : > { %v2730_v43 = vsel %vm2726_vm7, %v2729_v40, -inf }
0x1d14   : > { %v2731_v45 = vsel %vm1028_vm10, %v2730_v43, -inf }
0x1d15   : > { %2732 = vmax.xlane.f32.xlu1 %v2731_v45 }
0x1da2   : > { %v2733_v44 = vpop.xlane.xlu1 %2732 }
0x1da3   : > { %v2734_v11 = vsub.f32 %v2679_v41, %v2733_v44 }
0x1da5   : > { %v2735_v48 = vmax.f32 %v2734_v11, 0.0 }
0x1da7   : > { %4914 = vmatmul.mubr.msk.f32.vlgmr.msra.gmra.mrb[24].mxu1 %vm1028_vm10, %v2735_v48 }
0x1da8   : > { %5214 = vmatpush3.bf16.msra.mxu1 %v5566_v28  ;;  %4943 = vmatprep.mubr.msk.f32.mxu1 %vm5425_vm0, %v5426_v6 }
0x1da9   : > { %5215 = vmatprep.subr.bf16.mxu1 %v5424_v3 }
0x1dac   : > { %5217 = vmatpush3.bf16.msra.mxu1 %v5577_v33 }
0x1dad   : > { %4946 = vmatprep.subr.mxu1 %v5426_v6 }
0x1e7a   : > { %v2808_v47 = vpop.f32.mrb[24].mxu1 }
0x1e7b   : > { %2813 = vrot.lane.b32.xlu0 %v2808_v47, %s5428_s20  ;;  %v4915_v50 = vpop.f32.mrb[25].mxu1 }
0x1eed   : > { %v2814_v51 = vpop.permute.xlu0 %2813 }
0x1eee   : > { %v2816_v18 = vsel %vm512_vm1, %v5981_v21, %v2814_v51 }
0x1eef   : > { %4933 = vmatmul.mubr.msk.f32.vlgmr.msra.gmra.mrb[22].mxu0 %vm1120_vm12, %v2816_v18 }
0x1ef0   : > { %5220 = vmatpush3.bf16.msra.mxu0 %v5667_v2  ;;  %4972 = vmatprep.mubr.msk.f32.mxu0 %vm5425_vm0, %v5426_v6 }
0x1ef1   : > { %5221 = vmatprep.subr.bf16.mxu0 %v5424_v3 }
0x1ef4   : > { %5223 = vmatpush3.bf16.msra.mxu0 %v5673_v5 }
0x1ef5   : > { %5224 = vmatprep.subr.bf16.mxu0 %v5424_v3 }
0x1ef8   : > { %5226 = vmatpush3.bf16.msra.mxu0 %v5683_v9 }
0x1ef9   : > { %5227 = vmatprep.subr.bf16.mxu0 %v5424_v3 }
0x1efc   : > { %5229 = vmatpush3.bf16.msra.mxu0 %v5693_v13 }
0x1efd   : > { %5242 = vmatprep.subr.bf16.mxu0 %v5424_v3 }
0x1fc2   : > { %v2886_v28 = vpop.f32.mrb[22].mxu0 }
0x1fc3   : > { %v2887_v33 = vadd.f32 %v5930_v54, %v2886_v28  ;;  %v4934_v2 = vpop.f32.mrb[23].mxu0 }
0x1fc5   : > { %v4473_v26 = vmul.f32 -1.442695, %v2887_v33 }
0x1fc7   : > { %5378 = vpow2.f32 %v4473_v26 }
0x1fd1   : > { %v5379_v41 = vpop.eup %5378 }
0x1fd2   : > { %v2893_v53 = vadd.f32 1.0, %v5379_v41 }
0x1fd4   : > { %5380 = vrcp.f32 %v2893_v53 }
0x1fde   : > { %v5381_v5 = vpop.eup %5380 }
0x1fdf   : > { %v2897_v55 = vsub.f32 1.0, %v5381_v5  ;;  %v2896_v59 = vmul.f32 %v5381_v5, %v5981_v21 }
0x1fe1   : > { %v2898_v9 = vmul.f32 %v2897_v55, %v2808_v47 }
0x1fe3   : > { %v6066_v39 = vadd.f32 %v2898_v9, %v2896_v59 }
0x1fe5   : > { %v2900_v13 = vsel %vm512_vm1, %v6066_v39, 0.0 }
0x1fe6   : > { %2901 = vadd.xlane.f32.xlu0 %v2900_v13 }
0x2073   : > { %v2902_v60 = vpop.xlane.xlu0 %2901 }
0x2074   : > { %v2903_v17 = vmul.f32 0.03125, %v2902_v60 }
0x2076   : > { %v2904_v54 = vsub.f32 %v6066_v39, %v2903_v17 }
0x2078   : > { %v2905_v19 = vmul.f32 %v2904_v54, %v2904_v54 }
0x207a   : > { %v2906_v61 = vsel %vm512_vm1, %v2905_v19, 0.0 }
0x207b   : > { %2907 = vadd.xlane.f32.xlu1 %v2906_v61 }
0x2108   : > { %v2908_v62 = vpop.xlane.xlu1 %2907 }
0x2109   : > { %v2909_v0 = vmul.f32 0.03125, %v2908_v62 }
0x210b   : > { %v2910_v7 = vadd.f32 1e-05, %v2909_v0 }
0x210d   : > { %5382 = vrsqrt.f32 %v2910_v7 }
0x2117   : > { %v5383_v21 = vpop.eup %5382 }
0x2118   : > { %v2912_v8 = vmul.f32 %v5383_v21, %v2904_v54 }
0x211a   : > { %v2913_v12 = vmul.f32 %v5406_v10, %v2912_v8 }
0x211c   : > { %v2914_v16 = vadd.f32 %v5407_v14, %v2913_v12 }
0x211e   : > { %4944 = vmatmul.mubr.msk.f32.vlgmr.msra.gmra.mrb[26].mxu1 %vm512_vm1, %v2914_v16 }
0x211f   : > { %4947 = vmatpush3.xpose.msk.msra.mxu1 %vm512_vm1, %v5629_v22  ;;  %4948 = vmatprep.mubr.msk.f32.mxu1 %vm5425_vm0, %v5426_v6 }
0x2120   : > { %4951 = vmatprep.subr.mxu1 %v5426_v6 }
0x21f1   : > { %v2984_v32 = vpop.f32.mrb[26].mxu1 }
0x21f2   : > { %v4945_v29 = vpop.f32.mrb[27].mxu1  ;;  %4949 = vmatmul.mubr.msk.f32.vlgmr.msra.gmra.mrb[28].mxu1 %vm512_vm1, %v2984_v32 }
0x21f3   : > { %4952 = vmatpush3.msk.msra.mxu1 %vm1037_vm5, %v5642_v25  ;;  %4953 = vmatprep.mubr.msk.f32.mxu1 %vm5425_vm0, %v5426_v6 }
0x21f4   : > { %5230 = vmatprep.subr.bf16.mxu1 %v5424_v3 }
0x22c5   : > { %v3057_v34 = vpop.f32.mrb[28].mxu1 }
0x22c6   : > { %3073 = vperm.xlu1 %5330, %v3057_v34   ;;  %3063 = vperm.xlu0 %5323, %v3057_v34   ;;  %v4950_v22 = vpop.f32.mrb[29].mxu1 }
0x22ca   : > { %5331 = vset.pattern.permute.xlu1 %v5431_v30  ;;  %5334 = vset.pattern.permute.xlu0 %v5429_v23 }
0x22cb   : > { %3083 = vperm.xlu1 %5331, %v3057_v34  }
0x22cf   : > { %5332 = vset.pattern.permute.xlu1 %v5432_v31 }
0x22d0   : > { %3093 = vperm.xlu1 %5332, %v3057_v34  }
0x22d4   : > { %5333 = vset.pattern.permute.xlu1 %v5430_v24 }
0x2345   : > { %v3074_v25 = vpop.permute.xlu1 %3073  ;;  %v3064_v35 = vpop.permute.xlu0 %3063 }
0x2346   : > { %vm3076_vm8 = vcmp.ge.f32.partialorder %v3074_v25, %v3057_v34  ;;  %vm3066_vm9 = vcmp.ge.f32.partialorder %v3064_v35, %v3057_v34 }
0x2347   : > { %v4478_v15 = vsel %vm3076_vm8, 1.0, %v5426_v6  ;;  %v4477_v37 = vsel %vm3066_vm9, 1.0, %v5426_v6 }
0x2348   : > { %v3079_v43 = vadd.f32 %v4478_v15, %v4477_v37  ;;  %v3080_v44 = vmul.f32 %v4478_v15, %v3074_v25  ;;  %v3070_v11 = vmul.f32 %v4477_v37, %v3064_v35 }
0x234a   : > { %v3084_v36 = vpop.permute.xlu1 %3083  ;;  %v3081_v51 = vadd.f32 %v3080_v44, %v3070_v11  ;;  %v5411_v44 = vld [vmem:[%s6348_s9 + $0x2] ss:$0 sm:$0xff] }
0x234b   : > { %vm3086_vm11 = vcmp.ge.f32.partialorder %v3084_v36, %v3057_v34 }
0x234c   : > { %v4479_v40 = vsel %vm3086_vm11, 1.0, %v5426_v6 }
0x234d   : > { %v3089_v45 = vadd.f32 %v4479_v40, %v3079_v43  ;;  %v3090_v50 = vmul.f32 %v4479_v40, %v3084_v36  ;;  %v5409_v36 = vld [vmem:[%s6344_s5] sm:$0xf] }
0x234f   : > { %v3094_v23 = vpop.permute.xlu1 %3093  ;;  %v3091_v28 = vadd.f32 %v3090_v50, %v3081_v51 }
0x2350   : > { %vm3096_vm13 = vcmp.ge.f32.partialorder %v3094_v23, %v3057_v34 }
0x2351   : > { %v4480_v48 = vsel %vm3096_vm13, 1.0, %v5426_v6 }
0x2352   : > { %v3099_v47 = vadd.f32 %v4480_v48, %v3089_v45  ;;  %v3100_v18 = vmul.f32 %v4480_v48, %v3094_v23  ;;  %v5410_v45 = vld [vmem:[%s6348_s9 + $0x1] ss:$0 sm:$0xff] }
0x2354   : > { %5384 = vrcp.f32 %v3099_v47  ;;  %v3102_v33 = vmul.f32 %v3099_v47, %v3057_v34  ;;  %v3101_v2 = vadd.f32 %v3100_v18, %v3091_v28 }
0x2356   : > { %v3103_v26 = vadd.f32 1.0, %v3102_v33  ;;  %v4481_v41 = vadd.f32 -1.0, %v3101_v2 }
0x2358   : > { %vm3104_vm14 = vcmp.gt.f32.partialorder %v3103_v26, %v3101_v2 }
0x235e   : > { %v5385_v53 = vpop.eup %5384 }
0x235f   : > { %v3107_v5 = vmul.f32 %v5385_v53, %v4481_v41 }
0x2361   : > { %v3108_v55 = vsel %vm3104_vm14, %v3107_v5, -inf }
0x2362   : > { %v3109_v59 = vsel %vm1028_vm10, %v3108_v55, -inf }
0x2363   : > { %3110 = vmax.xlane.f32.xlu0 %v3109_v59 }
0x23f0   : > { %v3111_v9 = vpop.xlane.xlu0 %3110 }
0x23f1   : > { %v3112_v13 = vsub.f32 %v3057_v34, %v3111_v9 }
0x23f3   : > { %v3113_v60 = vmax.f32 %v3112_v13, 0.0 }
0x23f5   : > { %4954 = vmatmul.mubr.msk.f32.vlgmr.msra.gmra.mrb[30].mxu1 %vm1028_vm10, %v3113_v60 }
0x23f6   : > { %5232 = vmatpush3.bf16.msra.mxu1 %v5710_v20  ;;  %4983 = vmatprep.mubr.msk.f32.mxu1 %vm5425_vm0, %v5426_v6 }
0x23f7   : > { %5233 = vmatprep.subr.bf16.mxu1 %v5424_v3 }
0x23fa   : > { %5235 = vmatpush3.bf16.msra.mxu1 %v5720_v27  ;;  %v5408_v27 = vld [vmem:[%s6346_s7 + $0x7] ss:$0 sm:$0xff] }
0x23fb   : > { %4986 = vmatprep.subr.mxu1 %v5426_v6 }
0x24c8   : > { %v3183_v17 = vpop.f32.mrb[30].mxu1 }
0x24c9   : > { %3188 = vrot.lane.b32.xlu1 %v3183_v17, %s5428_s20  ;;  %v4955_v54 = vpop.f32.mrb[31].mxu1 }
0x253b   : > { %v3189_v19 = vpop.permute.xlu1 %3188 }
0x253c   : > { %v3191_v61 = vsel %vm512_vm1, %v6066_v39, %v3189_v19 }
0x253d   : > { %4973 = vmatmul.mubr.msk.f32.vlgmr.msra.gmra.mrb[24].mxu0 %vm1120_vm12, %v3191_v61 }
0x253e   : > { %5244 = vmatpush3.bf16.msra.mxu0 %v5766_v63  ;;  %5010 = vmatprep.mubr.msk.f32.mxu0 %vm5425_vm0, %v5426_v6 }
0x253f   : > { %5245 = vmatprep.subr.bf16.mxu0 %v5424_v3 }
0x2542   : > { %5247 = vmatpush3.bf16.msra.mxu0 %v5776_v4 }
0x2543   : > { %5018 = vmatprep.subr.mxu0 %v5426_v6 }
0x2610   : > { %v3261_v20 = vpop.f32.mrb[24].mxu0 }
0x2611   : > { %v3262_v62 = vadd.f32 %v5408_v27, %v3261_v20  ;;  %v4974_v0 = vpop.f32.mrb[25].mxu0 }
0x2613   : > { %v4485_v7 = vmul.f32 -1.442695, %v3262_v62 }
0x2615   : > { %5386 = vpow2.f32 %v4485_v7 }
0x261f   : > { %v5387_v21 = vpop.eup %5386 }
0x2620   : > { %v3268_v63 = vadd.f32 1.0, %v5387_v21 }
0x2622   : > { %5388 = vrcp.f32 %v3268_v63 }
0x262c   : > { %v5389_v8 = vpop.eup %5388 }
0x262d   : > { %v3272_v10 = vsub.f32 1.0, %v5389_v8  ;;  %v3271_v12 = vmul.f32 %v5389_v8, %v6066_v39 }
0x262f   : > { %v3273_v14 = vmul.f32 %v3272_v10, %v3183_v17  ;;  %v5412_v10 = vld [vmem:[%s6348_s9 + $0x3] ss:$0 sm:$0xff] }
0x2631   : > { %v6120_v4 = vadd.f32 %v3273_v14, %v3271_v12 }
0x2633   : > { %4984 = vmatmul.mubr.msk.f32.vlgmr.msra.gmra.mrb[32].mxu1 %vm512_vm1, %v6120_v4  ;;  %v3531_v16 = vsel %vm512_vm1, %v6120_v4, 0.0 }
0x2634   : > { %3532 = vadd.xlane.f32.xlu1 %v3531_v16  ;;  %4988 = vmatprep.mubr.msk.f32.mxu1 %vm5425_vm0, %v5426_v6 }
0x26c1   : > { %v3533_v32 = vpop.xlane.xlu1 %3532 }
0x26c2   : > { %v3534_v29 = vmul.f32 0.03125, %v3533_v32 }
0x26c4   : > { %v3535_v34 = vsub.f32 %v6120_v4, %v3534_v29 }
0x26c6   : > { %v3536_v22 = vmul.f32 %v3535_v34, %v3535_v34 }
0x26c8   : > { %v3537_v39 = vsel %vm512_vm1, %v3536_v22, 0.0 }
0x26c9   : > { %3538 = vadd.xlane.f32.xlu1 %v3537_v39 }
0x2706   : > { %v3344_v25 = vpop.f32.mrb[32].mxu1 }
0x2707   : > { %v4985_v35 = vpop.f32.mrb[33].mxu1  ;;  %4987 = vmatpush3.msra.mxu1 %v3344_v25 }
0x2708   : > { %4989 = vmatmul.mubr.msk.f32.vlgmr.msra.gmra.mrb[34].mxu1 %vm595_vm3, %v5409_v36  ;;  %5236 = vmatprep.subr.bf16.mxu1 %v5424_v3 }
0x2709   : > { %5238 = vmatpush3.bf16.msra.mxu1 %v5817_v56  ;;  %4999 = vmatprep.mubr.msk.f32.mxu1 %vm5425_vm0, %v5426_v6 }
0x270a   : > { %5239 = vmatprep.subr.bf16.mxu1 %v5424_v3 }
0x270d   : > { %5241 = vmatpush3.bf16.msra.mxu1 %v5823_v57 }
0x270e   : > { %5013 = vmatprep.subr.mxu1 %v5426_v6 }
0x2756   : > { %v3539_v15 = vpop.xlane.xlu1 %3538 }
0x2757   : > { %v3540_v37 = vmul.f32 0.03125, %v3539_v15 }
0x2759   : > { %v3541_v40 = vadd.f32 1e-05, %v3540_v37 }
0x275b   : > { %5390 = vrsqrt.f32 %v3541_v40 }
0x2765   : > { %v5391_v43 = vpop.eup %5390 }
0x2766   : > { %v3543_v23 = vmul.f32 %v5391_v43, %v3535_v34 }
0x2768   : > { %v3544_v56 = vmul.f32 %v5410_v45, %v3543_v23 }
0x276a   : > { %v3545_v11 = vadd.f32 %v5411_v44, %v3544_v56 }
0x276c   : > { %5011 = vmatmul.mubr.msk.f32.vlgmr.msra.gmra.mrb[26].mxu0 %vm512_vm1, %v3545_v11 }
0x276d   : > { %5020 = vmatprep.mubr.msk.f32.mxu0 %vm5425_vm0, %v5426_v6 }
0x27db   : > { %v3414_v57 = vpop.f32.mrb[34].mxu1 }
0x27dc   : > { %v3415_v48 = vadd.f32 %v3414_v57, %v5754_v52  ;;  %v4990_v47 = vpop.f32.mrb[35].mxu1 }
0x27de   : > { %3434 = vrot.lane.b32.xlu0 %v3415_v48, %s5427_s26  ;;  %v3418_v50 = vsel %vm669_vm4, %v3415_v48, 0.0 }
0x27fd   : > { %3419 = vadd.xlane.f32.xlu0 %v3418_v50 }
0x283f   : > { %v3615_v51 = vpop.f32.mrb[26].mxu0 }
0x2840   : > { %v5012_v18 = vpop.f32.mrb[27].mxu0 }
0x2850   : > { %v3435_v28 = vpop.permute.xlu0 %3434 }
0x2851   : > { %v3437_v33 = vsel %vm669_vm4, %v3435_v28, 0.0 }
0x2852   : > { %3438 = vadd.xlane.f32.xlu1 %v3437_v33  ;;  %v5414_v33 = vld [vmem:[%s5532_s16] sm:$0xff]  ;;  %s5433_s16 = smov 64  }
0x288a   : > { %v3420_v2 = vpop.xlane.xlu0 %3419 }
0x288b   : > { %v3421_v26 = vmul.f32 0.03125, %v3420_v2 }
0x288d   : > { %v3422_v41 = vsub.f32 %v3415_v48, %v3421_v26 }
0x288f   : > { %v3423_v53 = vmul.f32 %v3422_v41, %v3422_v41 }
0x2891   : > { %v3424_v5 = vsel %vm669_vm4, %v3423_v53, 0.0 }
0x2892   : > { %3425 = vadd.xlane.f32.xlu0 %v3424_v5  ;;  %v3912_v5 = vld [vmem:[%s6349_s10] sm:$0xff] }
0x28df   : > { %v3439_v52 = vpop.xlane.xlu1 %3438 }
0x28e0   : > { %v3440_v55 = vmul.f32 0.03125, %v3439_v52  ;;  %v3913_v52 = vld [vmem:[%s6349_s10 + $0x8] sm:$0xff] }
0x28e2   : > { %v3441_v59 = vsub.f32 %v3415_v48, %v3440_v55  ;;  %v5260_v55 = vpack.c.bf16 %v3913_v52, %v3912_v5 }
0x28e4   : > { %v3442_v9 = vmul.f32 %v3441_v59, %v3441_v59 }
0x28e6   : > { %3444 = vrot.lane.b32.xlu1 %v3442_v9, %s5427_s26  ;;  %v3915_v9 = vld [vmem:[%s6349_s10 + $0x18] sm:$0xff] }
0x291f   : > { %v3426_v0 = vpop.xlane.xlu0 %3425 }
0x2920   : > { %v3427_v7 = vmul.f32 0.03125, %v3426_v0 }
0x2922   : > { %v3428_v21 = vadd.f32 1e-05, %v3427_v7 }
0x2958   : > { %v3445_v13 = vpop.permute.xlu1 %3444 }
0x2959   : > { %v3447_v60 = vsel %vm669_vm4, %v3445_v13, 0.0 }
0x295a   : > { %3448 = vadd.xlane.f32.xlu1 %v3447_v60 }
0x29e7   : > { %v3449_v17 = vpop.xlane.xlu1 %3448 }
0x29e8   : > { %v3450_v54 = vmul.f32 0.03125, %v3449_v17  ;;  %v5415_v17 = vld [vmem:[%s6348_s9 + $0x7] ss:$0 sm:$0xff] }
0x29ea   : > { %v3451_v19 = vadd.f32 1e-05, %v3450_v54 }
0x29ec   : > { %5392 = vrsqrt.f32 %v3451_v19 }
0x29ed   : > { %5394 = vrsqrt.f32 %v3428_v21 }
0x29f6   : > { %v5393_v61 = vpop.eup %5392 }
0x29f7   : > { %v3453_v20 = vmul.f32 %v5393_v61, %v3441_v59  ;;  %v5395_v63 = vpop.eup %5394  ;;  %v3914_v59 = vld [vmem:[%s6349_s10 + $0x10] sm:$0xff] }
0x29f8   : > { %v3430_v8 = vmul.f32 %v5395_v63, %v3422_v41  ;;  %v5264_v13 = vpack.c.bf16 %v3915_v9, %v3914_v59 }
0x29f9   : > { %v3454_v27 = vmul.f32 %v3453_v20, %v5828_v58  ;;  %v5413_v58 = vld [vmem:[%s6348_s9 + $0x4] ss:$0 sm:$0xff] }
0x29fa   : > { %v3431_v12 = vmul.f32 %v5412_v10, %v3430_v8  ;;  %v3941_v8 = vld [vmem:[%s445_s27] sm:$0x1] }
0x29fb   : > { %v3455_v62 = vadd.f32 %v3454_v27, %v5830_v1 }
0x29fc   : > { %v3432_v16 = vadd.f32 %v5413_v58, %v3431_v12 }
0x29fd   : > { %3457 = vrot.lane.b32.xlu0 %v3455_v62, %s5427_s26 }
0x2a6f   : > { %v3458_v14 = vpop.permute.xlu0 %3457 }
0x2a70   : > { %5000 = vmatmul.mubr.msk.f32.vlgmr.msra.gmra.mrb[36].mxu1 %vm512_vm1, %v3458_v14 }
0x2a71   : > { %5014 = vmatpush3.xpose.msk.msra.mxu1 %vm512_vm1, %v3432_v16  ;;  %5015 = vmatprep.mubr.msk.f32.mxu1 %vm5425_vm0, %v5426_v6 }
0x2a72   : > { %5248 = vmatprep.subr.bf16.mxu1 %v5424_v3 }
0x2a74   : > { %5016 = vmatmul.mubr.msk.f32.vlgmr.msra.gmra.mrb[38].mxu1 %vm512_vm1, %v3615_v51 }
0x2a75   : > { %5250 = vmatpush3.bf16.msra.mxu1 %v5882_v38  ;;  %5039 = vmatprep.mubr.msk.f32.mxu1 %vm5425_vm0, %v5426_v6 }
0x2a76   : > { %5251 = vmatprep.subr.bf16.mxu1 %v5424_v3 }
0x2a79   : > { %5253 = vmatpush3.bf16.msra.mxu1 %v5888_v42 }
0x2a7a   : > { %5254 = vmatprep.subr.bf16.mxu1 %v5424_v3 }
0x2a7d   : > { %5256 = vmatpush3.bf16.msra.mxu1 %v5898_v46 }
0x2a7e   : > { %5257 = vmatprep.subr.bf16.mxu1 %v5424_v3 }
0x2a81   : > { %5259 = vmatpush3.bf16.msra.mxu1 %v5908_v49 }
0x2a82   : > { %5292 = vmatprep.subr.bf16.mxu1 %v5424_v3 }
0x2b43   : > { %v3527_v1 = vpop.f32.mrb[36].mxu1 }
0x2b44   : > { %v5001_v32 = vpop.f32.mrb[37].mxu1  ;;  %5019 = vmatpush3.msk.msra.mxu0 %vm1037_vm5, %v3527_v1 }
0x2b45   : > { %5261 = vmatprep.subr.bf16.mxu0 %v5260_v55  ;;  %v3916_v32 = vld [vmem:[%s6349_s10 + $0x20] sm:$0xff] }
0x2b47   : > { %v3691_v38 = vpop.f32.mrb[38].mxu1 }
0x2b48   : > { %3707 = vperm.xlu0 %5334, %v3691_v38   ;;  %3697 = vperm.xlu1 %5333, %v3691_v38   ;;  %v5017_v29 = vpop.f32.mrb[39].mxu1 }
0x2b49   : > { %v3918_v29 = vld [vmem:[%s6349_s10 + $0x30] sm:$0xff] }
0x2b4c   : > { %5335 = vset.pattern.permute.xlu0 %v5431_v30  ;;  %5336 = vset.pattern.permute.xlu1 %v5432_v31 }
0x2b4d   : > { %3717 = vperm.xlu0 %5335, %v3691_v38   ;;  %3727 = vperm.xlu1 %5336, %v3691_v38  }
0x2b51   : > { %5337 = vset.pattern.permute.xlu0 %v5430_v24 }
0x2bc7   : > { %v3708_v42 = vpop.permute.xlu0 %3707  ;;  %v3698_v46 = vpop.permute.xlu1 %3697 }
0x2bc8   : > { %vm3710_vm4 = vcmp.ge.f32.partialorder %v3708_v42, %v3691_v38  ;;  %vm3700_vm15 = vcmp.ge.f32.partialorder %v3698_v46, %v3691_v38 }
0x2bc9   : > { %v4493_v49 = vsel %vm3710_vm4, 1.0, %v5426_v6  ;;  %v4492_v34 = vsel %vm3700_vm15, 1.0, %v5426_v6 }
0x2bca   : > { %v3713_v25 = vadd.f32 %v4493_v49, %v4492_v34  ;;  %v3714_v30 = vmul.f32 %v4493_v49, %v3708_v42  ;;  %v3704_v35 = vmul.f32 %v4492_v34, %v3698_v46 }
0x2bcc   : > { %v3718_v22 = vpop.permute.xlu0 %3717  ;;  %v3728_v39 = vpop.permute.xlu1 %3727  ;;  %v3715_v40 = vadd.f32 %v3714_v30, %v3704_v35 }
0x2bcd   : > { %vm3720_vm5 = vcmp.ge.f32.partialorder %v3718_v22, %v3691_v38  ;;  %vm3730_vm2 = vcmp.ge.f32.partialorder %v3728_v39, %v3691_v38 }
0x2bce   : > { %v4494_v31 = vsel %vm3720_vm5, 1.0, %v5426_v6  ;;  %v4495_v24 = vsel %vm3730_vm2, 1.0, %v5426_v6 }
0x2bcf   : > { %v3723_v36 = vadd.f32 %v4494_v31, %v3713_v25  ;;  %v3724_v15 = vmul.f32 %v4494_v31, %v3718_v22  ;;  %v3734_v23 = vmul.f32 %v4495_v24, %v3728_v39  ;;  %v3920_v22 = vld [vmem:[%s6349_s10 + $0x40] sm:$0xff]  ;;  %v3921_v39 = vld [vmem:[%s6349_s10 + $0x48] sm:$0xff]  ;;  %v3922_v31 = vld [vmem:[%s6349_s10 + $0x50] sm:$0xff] }
0x2bd0   : > { %v5275_v35 = vpack.c.bf16 %v3921_v39, %v3920_v22  ;;  %v3937_v39 = vld [vmem:[%s6349_s10 + $0xc8] sm:$0xf] }
0x2bd1   : > { %v3733_v37 = vadd.f32 %v4495_v24, %v3723_v36  ;;  %v3725_v43 = vadd.f32 %v3724_v15, %v3715_v40  ;;  %v3923_v36 = vld [vmem:[%s6349_s10 + $0x58] sm:$0xff]  ;;  %v3924_v24 = vld [vmem:[%s6349_s10 + $0x60] sm:$0xff] }
0x2bd2   : > { %v5278_v15 = vpack.c.bf16 %v3923_v36, %v3922_v31 }
0x2bd3   : > { %5396 = vrcp.f32 %v3733_v37  ;;  %v3736_v45 = vmul.f32 %v3733_v37, %v3691_v38  ;;  %v3735_v56 = vadd.f32 %v3734_v23, %v3725_v43  ;;  %v3925_v37 = vld [vmem:[%s6349_s10 + $0x68] sm:$0xff]  ;;  %v3926_v43 = vld [vmem:[%s6349_s10 + $0x70] sm:$0xff]  ;;  %v3927_v23 = vld [vmem:[%s6349_s10 + $0x78] sm:$0xff] }
0x2bd4   : > { %v5281_v40 = vpack.c.bf16 %v3925_v37, %v3924_v24  ;;  %v4306_v37 = vrot.slane %v3937_v39, 3 }
0x2bd5   : > { %v3737_v44 = vadd.f32 1.0, %v3736_v45  ;;  %v4496_v11 = vadd.f32 -1.0, %v3735_v56  ;;  %v5284_v45 = vpack.c.bf16 %v3927_v23, %v3926_v43 }
0x2bd7   : > { %vm3738_vm6 = vcmp.gt.f32.partialorder %v3737_v44, %v3735_v56  ;;  %v3928_v56 = vld [vmem:[%s6349_s10 + $0x80] sm:$0xff]  ;;  %v3929_v44 = vld [vmem:[%s6349_s10 + $0x88] sm:$0xff] }
0x2bdd   : > { %v5397_v57 = vpop.eup %5396 }
0x2bde   : > { %v3741_v48 = vmul.f32 %v5397_v57, %v4496_v11  ;;  %v5287_v11 = vpack.c.bf16 %v3929_v44, %v3928_v56  ;;  %v3940_v56 = vld [vmem:[%s6350_s11 + $0x2] sm:$0x1] }
0x2be0   : > { %v3742_v47 = vsel %vm3738_vm6, %v3741_v48, -inf }
0x2be1   : > { %v3743_v50 = vsel %vm1028_vm10, %v3742_v47, -inf }
0x2be2   : > { %3744 = vmax.xlane.f32.xlu1 %v3743_v50 }
0x2c6f   : > { %v3745_v51 = vpop.xlane.xlu1 %3744 }
0x2c70   : > { %v3746_v18 = vsub.f32 %v3691_v38, %v3745_v51  ;;  %v3917_v38 = vld [vmem:[%s6349_s10 + $0x28] sm:$0xff] }
0x2c71   : > { %v5269_v42 = vpack.c.bf16 %v3917_v38, %v3916_v32 }
0x2c72   : > { %v3747_v28 = vmax.f32 %v3746_v18, 0.0  ;;  %v3930_v18 = vld [vmem:[%s6349_s10 + $0x90] sm:$0xff] }
0x2c74   : > { %5021 = vmatmul.mubr.msk.f32.vlgmr.msra.gmra.mrb[28].mxu0 %vm1028_vm10, %v3747_v28  ;;  %vm3943_vm10 = vcmask 57344   ;;  %v3931_v28 = vld [vmem:[%s6349_s10 + $0x98] sm:$0xff] }
0x2c75   : > { %5050 = vmatprep.mubr.msk.f32.mxu0 %vm512_vm1, %v5414_v33  ;;  %5263 = vmatpush3.bf16.msra.mxu0 %v5260_v55  ;;  %v3944_v10 = vsel %vm3943_vm10, %v3941_v8, 0.0  ;;  %v3942_v55 = vld [vmem:[%s448_s15] sm:$0x1] }
0x2c76   : > { %5265 = vmatprep.subr.bf16.mxu0 %v5264_v13  ;;  %v3947_v59 = vsel %vm3943_vm10, %v3942_v55, 0.0 }
0x2c79   : > { %5267 = vmatpush3.bf16.msra.mxu0 %v5264_v13 }
0x2c7a   : > { %5053 = vmatprep.subr.mxu0 %v5426_v6 }
0x2d47   : > { %v3820_v2 = vpop.f32.mrb[28].mxu0 }
0x2d48   : > { %3825 = vrot.lane.b32.xlu0 %v3820_v2, %s5428_s20  ;;  %v5022_v26 = vpop.f32.mrb[29].mxu0 }
0x2d67   : > { %3945 = vadd.xlane.f32.xlu0 %v3944_v10 }
0x2dba   : > { %v3826_v41 = vpop.permute.xlu0 %3825 }
0x2dbb   : > { %v3828_v53 = vsel %vm512_vm1, %v6120_v4, %v3826_v41 }
0x2dbc   : > { %5040 = vmatmul.mubr.msk.f32.vlgmr.msra.gmra.mrb[40].mxu1 %vm1120_vm12, %v3828_v53 }
0x2dbd   : > { %5101 = vmatprep.mubr.msk.f32.mxu1 %vm5425_vm0, %v5426_v6 }
0x2df4   : > { %v6232_v1 = vpop.xlane.xlu0 %3945 }
0x2e8f   : > { %v3898_v60 = vpop.f32.mrb[40].mxu1 }
0x2e90   : > { %v3899_v54 = vadd.f32 %v5415_v17, %v3898_v60  ;;  %v5041_v19 = vpop.f32.mrb[41].mxu1 }
0x2e91   : > { %v3933_v19 = vld [vmem:[%s6349_s10 + $0xa8] sm:$0xff] }
0x2e92   : > { %v4500_v61 = vmul.f32 -1.442695, %v3899_v54 }
0x2e94   : > { %5398 = vpow2.f32 %v4500_v61  ;;  %v3934_v61 = vld [vmem:[%s6349_s10 + $0xb0] sm:$0xff] }
0x2e9e   : > { %v5399_v20 = vpop.eup %5398 }
0x2e9f   : > { %v3905_v27 = vadd.f32 1.0, %v5399_v20  ;;  %v5293_v20 = vpack.c.bf16 %v3934_v61, %v3933_v19 }
0x2ea1   : > { %5400 = vrcp.f32 %v3905_v27  ;;  %5294 = vmatpush3.bf16.msra.mxu1 %v5293_v20  ;;  %v3935_v27 = vld [vmem:[%s6349_s10 + $0xb8] sm:$0xff] }
0x2ea2   : > { %5402 = vrcp.f32 %v6232_v1  ;;  %5295 = vmatprep.subr.bf16.mxu1 %v5424_v3 }
0x2eab   : > { %v5401_v62 = vpop.eup %5400 }
0x2eac   : > { %v3909_v0 = vsub.f32 1.0, %v5401_v62  ;;  %v3908_v7 = vmul.f32 %v5401_v62, %v6120_v4  ;;  %v4501_v4 = vld [vmem:[%s6350_s11] ss:$0 sm:$0xff]  ;;  %v6247_v46 = vpop.eup %5402 }
0x2ead   : > { %v3936_v62 = vld [vmem:[%s6349_s10 + $0xc0] sm:$0xff] }
0x2eae   : > { %v3910_v21 = vmul.f32 %v3909_v0, %v3820_v2  ;;  %v5290_v2 = vpack.c.bf16 %v3931_v28, %v3930_v18  ;;  %v5296_v0 = vpack.c.bf16 %v3936_v62, %v3935_v27 }
0x2eb0   : > { %v3911_v63 = vadd.f32 %v3910_v21, %v3908_v7  ;;  %5297 = vmatpush3.bf16.msra.mxu1 %v5296_v0  ;;  %v3932_v21 = vld [vmem:[%s6349_s10 + $0xa0] sm:$0xf] }
0x2eb1   : > { %v4217_v10 = vrot.slane %v3932_v21, 3 }
0x2eb2   : > { %5051 = vmatmul.mubr.msk.f32.vlgmr.msra.gmra.mrb[30].mxu0 %vm512_vm1, %v3911_v63  ;;  %v4209_v63 = vrot.slane %v3932_v21, 1 }
0x2eb3   : > { %5055 = vmatprep.mubr.msk.f32.mxu0 %vm5425_vm0, %v5426_v6 }
0x2f85   : > { %v5052_v12 = vpop.f32.mrb[30].mxu0 }
0x2f86   : > { %v4033_v14 = vadd.f32 %v5052_v12, %v4501_v4  ;;  %v4027_v58 = vpop.f32.mrb[31].mxu0 }
0x2f87   : > { %v4028_v16 = vadd.f32 %v4501_v4, %v4027_v58 }
0x2f89   : > { %5054 = vmatpush3.msra.mxu0 %v4028_v16 }
0x2f8a   : > { %5056 = vmatmul.mubr.msk.f32.vlgmr.msra.gmra.mrb[32].mxu0 %vm595_vm3, %v3941_v8  ;;  %5268 = vmatprep.subr.bf16.mxu0 %v5424_v3  ;;  %vm4135_vm3 = vcmask 785408   ;;  %v4137_v8 = vmul.f32 %v6232_v1, %v3932_v21 }
0x2f8b   : > { %5090 = vmatprep.mubr.msk.f32.mxu0 %vm5425_vm0, %v5426_v6  ;;  %v3919_v6 = vld [vmem:[%s6349_s10 + $0x38] sm:$0xff]  ;;  %5270 = vmatpush3.bf16.msra.mxu0 %v5269_v42  ;;  %vm4110_vm0 = vcmask 523520  }
0x2f8c   : > { %v5272_v49 = vpack.c.bf16 %v3919_v6, %v3918_v29  ;;  %5271 = vmatprep.subr.bf16.mxu0 %v5424_v3  ;;  %v4111_v57 = vsel %vm4110_vm0, %v4033_v14, 0.0  ;;  %v3939_v6 = vld [vmem:[%s6350_s11 + $0x1] sm:$0x1] }
0x2f8d   : > { %v4112_v48 = vrot.slane %v4111_v57, 4 }
0x2f8f   : > { %5273 = vmatpush3.bf16.msra.mxu0 %v5272_v49  ;;  %v4113_v47 = vadd.f32 %v4112_v48, %v4111_v57 }
0x2f90   : > { %5274 = vmatprep.subr.bf16.mxu0 %v5424_v3 }
0x2f91   : > { %v4114_v50 = vrot.slane %v4113_v47, 2 }
0x2f93   : > { %5276 = vmatpush3.bf16.msra.mxu0 %v5275_v35  ;;  %v4115_v51 = vadd.f32 %v4114_v50, %v4113_v47  ;;  %v4302_v35 = vrot.slane %v3937_v39, 2 }
0x2f94   : > { %5277 = vmatprep.subr.bf16.mxu0 %v5424_v3 }
0x2f95   : > { %v4116_v33 = vrot.slane %v4115_v51, 1  ;;  %v4304_v43 = vmul.f32 %v6247_v46, %v4302_v35 }
0x2f97   : > { %5279 = vmatpush3.bf16.msra.mxu0 %v5278_v15  ;;  %v4117_v26 = vadd.f32 %v4116_v33, %v4115_v51 }
0x2f98   : > { %5280 = vmatprep.subr.bf16.mxu0 %v5424_v3 }
0x2f99   : > { %v4118_v41 = vmul.f32 0.125, %v4117_v26 }
0x2f9b   : > { %5282 = vmatpush3.bf16.msra.mxu0 %v5281_v40 }
0x2f9c   : > { %5283 = vmatprep.subr.bf16.mxu0 %v5424_v3 }
0x2f9f   : > { %5285 = vmatpush3.bf16.msra.mxu0 %v5284_v45 }
0x2fa0   : > { %5286 = vmatprep.subr.bf16.mxu0 %v5424_v3 }
0x2fa3   : > { %5288 = vmatpush3.bf16.msra.mxu0 %v5287_v11 }
0x2fa4   : > { %5289 = vmatprep.subr.bf16.mxu0 %v5424_v3  ;;  %v4213_v3 = vrot.slane %v3932_v21, 2 }
0x2fa6   : > { %v4215_v38 = vmul.f32 %v6247_v46, %v4213_v3 }
0x2fa7   : > { %5291 = vmatpush3.bf16.msra.mxu0 %v5290_v2 }
0x305d   : > { %v4105_v34 = vpop.f32.mrb[32].mxu0 }
0x305e   : > { %v4109_v25 = vmul.f32 %v6247_v46, %v4105_v34  ;;  %v5057_v30 = vpop.f32.mrb[33].mxu0 }
0x305f   : > { %v4223_v30 = vmul.f32 %v6232_v1, %v3937_v39 }
0x3060   : > { %4120 = vrot.lane.b32.xlu0 %v4109_v25, %s5428_s20  ;;  %v4133_v13 = vsel %vm512_vm1, %v4109_v25, %v4118_v41  ;;  %v4298_v25 = vrot.slane %v3937_v39, 1 }
0x30d2   : > { %v4121_v53 = vpop.permute.xlu0 %4120 }
0x30d3   : > { %v4123_v5 = vsub.f32 %v4118_v41, %v4121_v53  ;;  %v4124_v52 = vmul.f32 %v4121_v53, %v4118_v41 }
0x30d5   : > { %4126 = vrot.lane.b32.xlu1 %v4123_v5, %s5428_s20 }
0x30d9   : > { %4130 = vrot.lane.b32.xlu1 %v4124_v52, %s5433_s16 }
0x30fd   : > { %3948 = vadd.xlane.f32.xlu1 %v3947_v59 }
0x3147   : > { %v4127_v9 = vpop.permute.xlu1 %4126 }
0x3148   : > { %v4134_v60 = vsel %vm1120_vm12, %v4133_v13, %v4127_v9 }
0x314b   : > { %v4131_v17 = vpop.permute.xlu1 %4130 }
0x314c   : > { %v4136_v54 = vsel %vm4135_vm3, %v4134_v60, %v4131_v17 }
0x314d   : > { %5091 = vmatmul.mubr.f32.vlgmr.msra.gmra.mrb[34].mxu0 %v4136_v54 }
0x318a   : > { %v3949_v7 = vpop.xlane.xlu1 %3948 }
0x318b   : > { %5404 = vrcp.f32 %v3949_v7  ;;  %v4211_v14 = vmul.f32 %v4209_v63, %v3949_v7  ;;  %v4300_v36 = vmul.f32 %v4298_v25, %v3949_v7 }
0x3195   : > { %v5405_v4 = vpop.eup %5404 }
0x3196   : > { %v4219_v29 = vmul.f32 %v5405_v4, %v4217_v10  ;;  %v4308_v45 = vmul.f32 %v5405_v4, %v4306_v37 }
0x3220   : > { %v4204_v12 = vpop.f32.mrb[34].mxu0 }
0x3221   : > { %v4205_v58 = vadd.f32 %v4204_v12, %v4137_v8  ;;  %v5092_v16 = vpop.f32.mrb[35].mxu0 }
0x3223   : > { %v4212_v32 = vadd.f32 %v4211_v14, %v4205_v58 }
0x3225   : > { %v4216_v42 = vadd.f32 %v4215_v38, %v4212_v32 }
0x3227   : > { %v4220_v49 = vadd.f32 %v4219_v29, %v4216_v42 }
0x3229   : > { %v4221_v34 = vadd.f32 %v4220_v49, %v3939_v6 }
0x322b   : > { %v4222_v22 = vmax.f32 %v4221_v34, 0.0 }
0x322d   : > { %5102 = vmatmul.mubr.msk.f32.vlgmr.msra.gmra.mrb[42].mxu1 %vm512_vm1, %v4222_v22 }
0x3300   : > { %v4293_v31 = vpop.f32.mrb[42].mxu1 }
0x3301   : > { %v4294_v15 = vadd.f32 %v4293_v31, %v4223_v30  ;;  %v5103_v24 = vpop.f32.mrb[43].mxu1 }
0x3303   : > { %v4301_v40 = vadd.f32 %v4300_v36, %v4294_v15 }
0x3305   : > { %v4305_v23 = vadd.f32 %v4304_v43, %v4301_v40 }
0x3307   : > { %v4309_v44 = vadd.f32 %v4308_v45, %v4305_v23 }
0x3309   : > { %v4310_v11 = vadd.f32 %v4309_v44, %v3940_v56 }
0x330b   : > { %4313 = vperm.xlu0 %5337, %v4310_v11  }
0x338a   : > { %v4314_v1 = vpop.permute.xlu0 %4313 }
0x338b   : > { %4316 = vst [vmem:[%s451_s18] sm:$0x1] %v4314_v1 }
0x338c PF: > { %s22_s21 = sadd.s32 1, %s5422_s21  }
0x338d   : > { %p19_p4 = scmp.ge.s32.totalorder %s22_s21, 4  }
0x338f   :  { %21 = sbr.rel (!%p19_p4) target bundleno = 1 (0x1), region = 107 }

</bundles_post_ra>
